<compile_context>
chip_gen: v5e
topology: v5e:2x2
jax: 0.10.0
libtpu: 0.0.40
codegen_flags: <defaults>
</compile_context>

<pallas_src>
import random

import jax
import jax.numpy as jnp
from jax.experimental import pallas as pl
from jax.experimental.pallas import tpu as pltpu

# ----------------------------- model sizes ---------------------------------
INPUT_VOCAB = 16     # encoder.input_dim
OUTPUT_VOCAB = 16    # decoder.output_dim (trg_vocab_size)
EMB_DIM = 32
HIDDEN_DIM = 32
N_LAYERS = 2
BATCH = 2
SRC_LEN = 8
TRG_LEN = 8

VOCAB_PAD = 128      # lane-dense padded vocab for the output projection
_NEG = -1e30         # bias in padded logit columns (never wins the argmax)

_VMEM = pl.BlockSpec(memory_space=pltpu.MemorySpace.VMEM)
_SMEM = pl.BlockSpec(memory_space=pltpu.MemorySpace.SMEM)

# order must match the kernel's weight-ref arguments
_WEIGHT_KEYS = (
    "enc_whh0_bf", "enc_wih1_bf", "enc_whh1_bf", "enc_b1",
    "dec_whh0_bf", "dec_wih1_bf", "dec_whh1_bf", "dec_b1",
    "dec_emb_wih0_bf", "fc_w_pad_bf", "fc_b_pad",
)


# ------------------------------ kernel --------------------------------------
def _seq2seq_kernel(
    enc_g0_ref, trg_g0_ref, tf_ref,
    e_whh0, e_wih1, e_whh1, e_b1,
    d_whh0, d_wih1, d_whh1, d_b1,
    d_emb_wih0, fc_w, fc_b,
    out_ref,
    gin_ref,
):
    """Whole Seq2Seq forward in one kernel.

    enc_g0 : (SRC_LEN, B, 4H) f32   precomputed  emb(src)@W_ih0 + b0 (encoder)
    trg_g0 : (TRG_LEN, B, 4H) f32   precomputed  emb(trg)@W_ih0 + b0 (decoder)
    tf     : (TRG_LEN,) int32 in SMEM (host-side teacher-forcing draws)
    out    : (TRG_LEN, B, VOCAB_PAD) f32
    gin_ref: (B, 4H) f32 VMEM scratch — next-step decoder layer-0 input gates
    """
    B, H = BATCH, HIDDEN_DIM
    f32, bf16 = jnp.float32, jnp.bfloat16

    def cell(gates_in, h, c, whh_ref):
        # gates_in already contains x @ W_ih (+ folded biases where applicable)
        gates = gates_in + jnp.dot(h.astype(bf16), whh_ref[...],
                                   preferred_element_type=f32)
        # full-vreg nonlinearities (EUP), then slice the i/f/g/o quarters
        sig = jax.nn.sigmoid(gates)
        th = jnp.tanh(gates)
        i = sig[:, 0 * H:1 * H]
        f = sig[:, 1 * H:2 * H]
        g = th[:, 2 * H:3 * H]
        o = sig[:, 3 * H:4 * H]
        c_new = f * c + i * g
        h_new = o * jnp.tanh(c_new)
        return h_new, c_new

    # hoist layer-1 / fc bias broadcasts out of the loops (no per-iter vld)
    e_b1_b = jnp.broadcast_to(e_b1[...], (B, 4 * H))
    d_b1_b = jnp.broadcast_to(d_b1[...], (B, 4 * H))
    fc_b_b = jnp.broadcast_to(fc_b[...], (B, VOCAB_PAD))

    zeros = jnp.zeros((B, H), f32)
    h0 = c0 = h1 = c1 = zeros

    # ------------------------------ encoder ---------------------------------
    # TODO(synk): inter-layer LSTM dropout treated as identity (eval mode).
    for t in range(SRC_LEN):
        h0, c0 = cell(enc_g0_ref[t], h0, c0, e_whh0)
        g1 = jnp.dot(h0.astype(bf16), e_wih1[...],
                     preferred_element_type=f32) + e_b1_b
        h1, c1 = cell(g1, h1, c1, e_whh1)

    # ------------------------------ decoder ---------------------------------
    out_ref[0] = jnp.zeros((B, VOCAB_PAD), f32)      # outputs[0] stays 0
    gin_ref[...] = trg_g0_ref[0]                     # input = trg[0]
    for t in range(1, TRG_LEN):
        h0, c0 = cell(gin_ref[...], h0, c0, d_whh0)
        g1 = jnp.dot(h0.astype(bf16), d_wih1[...],
                     preferred_element_type=f32) + d_b1_b
        h1, c1 = cell(g1, h1, c1, d_whh1)
        logits = jnp.dot(h1.astype(bf16), fc_w[...],
                         preferred_element_type=f32) + fc_b_b  # (B, VOCAB_PAD)
        out_ref[t] = logits

        # teacher-forced step: precomputed gates, skip argmax + matmul
        @pl.when(tf_ref[t] > 0)
        def _():
            gin_ref[...] = trg_g0_ref[t]

        # generated step: single XLU max, one-hot, one MXU dot
        # (padded columns sit at -1e30 so they never win; float ties are
        #  measure-zero, so (logits == max) is effectively one-hot)
        @pl.when(tf_ref[t] == 0)
        def _():
            m = jnp.max(logits, axis=-1, keepdims=True)
            top1_oh = (logits == m).astype(bf16)
            gin_ref[...] = jnp.dot(top1_oh, d_emb_wih0[...],
                                   preferred_element_type=f32)


def _fused_forward(enc_g0, trg_g0, tf_mask, weights):
    return pl.pallas_call(
        _seq2seq_kernel,
        out_shape=jax.ShapeDtypeStruct((TRG_LEN, BATCH, VOCAB_PAD), jnp.float32),
        in_specs=[_VMEM, _VMEM, _SMEM] + [_VMEM] * len(weights),
        out_specs=_VMEM,
        scratch_shapes=[pltpu.VMEM((BATCH, 4 * HIDDEN_DIM), jnp.float32)],
    )(enc_g0, trg_g0, tf_mask, *weights)


# ------------------------- parameter construction ---------------------------
def init_params(key):
    def nrm(k, shape, scale=0.1):
        return (scale * jax.random.normal(k, shape)).astype(jnp.float32)

    keys = iter(jax.random.split(key, 32))
    p = {}

    # raw (PyTorch-equivalent) parameters
    enc_emb = nrm(next(keys), (INPUT_VOCAB, EMB_DIM))
    dec_emb = nrm(next(keys), (OUTPUT_VOCAB, EMB_DIM))
    raw = {}
    for side in ("enc", "dec"):
        for l in range(N_LAYERS):
            in_dim = EMB_DIM if l == 0 else HIDDEN_DIM
            raw[f"{side}_wih{l}"] = nrm(next(keys), (in_dim, 4 * HIDDEN_DIM))
            raw[f"{side}_whh{l}"] = nrm(next(keys), (HIDDEN_DIM, 4 * HIDDEN_DIM))
            raw[f"{side}_b{l}"] = nrm(next(keys), (1, 4 * HIDDEN_DIM))  # b_ih+b_hh
    fc_w = nrm(next(keys), (HIDDEN_DIM, OUTPUT_VOCAB))
    fc_b = nrm(next(keys), (1, OUTPUT_VOCAB))

    # kernel-facing fused / padded / bf16 weights ----------------------------
    # encoder: embedding @ W_ih0 + b0 folded into a per-token gate table (f32)
    p["enc_tok_gates0"] = enc_emb @ raw["enc_wih0"] + raw["enc_b0"]   # (V_in,4H)
    # decoder: padded embedding @ W_ih0 + b0 fused into one bf16 MXU operand
    dec_emb_pad = (jnp.zeros((VOCAB_PAD, EMB_DIM), jnp.float32)
                   .at[:OUTPUT_VOCAB].set(dec_emb))
    p["dec_emb_wih0_bf"] = (dec_emb_pad @ raw["dec_wih0"]
                            + raw["dec_b0"]).astype(jnp.bfloat16)      # (128,4H)
    # recurrent / layer-1 weights as bf16 MXU operands; biases stay f32
    for side in ("enc", "dec"):
        p[f"{side}_whh0_bf"] = raw[f"{side}_whh0"].astype(jnp.bfloat16)
        p[f"{side}_wih1_bf"] = raw[f"{side}_wih1"].astype(jnp.bfloat16)
        p[f"{side}_whh1_bf"] = raw[f"{side}_whh1"].astype(jnp.bfloat16)
        p[f"{side}_b1"] = raw[f"{side}_b1"]
    # vocab projection padded to 128 lanes; padded columns biased to -1e30
    p["fc_w_pad_bf"] = (jnp.zeros((HIDDEN_DIM, VOCAB_PAD), jnp.float32)
                        .at[:, :OUTPUT_VOCAB].set(fc_w)).astype(jnp.bfloat16)
    p["fc_b_pad"] = (jnp.full((1, VOCAB_PAD), _NEG, jnp.float32)
                     .at[:, :OUTPUT_VOCAB].set(fc_b))
    return p


# ------------------------------ model glue ----------------------------------
@jax.jit
def seq2seq_forward(src, trg, tf_mask, params):
    """Mirrors Seq2Seq.forward: returns (TRG_LEN, B, OUTPUT_VOCAB) logits.

    src/trg: (T, B) int32 (time-major).  tf_mask: (TRG_LEN,) int32, the
    host-side `random.random() < teacher_forcing_ratio` decisions."""
    # recurrence-independent input projections hoisted out of the kernel loop:
    # embedding lookup + layer-0 W_ih + b0 == one gather of a fused table.
    enc_g0 = jnp.take(params["enc_tok_gates0"], src, axis=0)            # (S,B,4H)
    trg_g0 = jnp.take(params["dec_emb_wih0_bf"], trg,
                      axis=0).astype(jnp.float32)                       # (T,B,4H)
    weights = [params[k] for k in _WEIGHT_KEYS]
    out_pad = _fused_forward(enc_g0, trg_g0, tf_mask, weights)
    return out_pad[:, :, :OUTPUT_VOCAB]


# --------------------------------- main --------------------------------------
if __name__ == "__main__":
    random.seed(0)  # deterministic teacher-forcing draws
    key = jax.random.PRNGKey(0)
    kp, ks, kt = jax.random.split(key, 3)

    params = init_params(kp)
    src = jax.random.randint(ks, (SRC_LEN, BATCH), 0, INPUT_VOCAB, dtype=jnp.int32)
    trg = jax.random.randint(kt, (TRG_LEN, BATCH), 0, OUTPUT_VOCAB, dtype=jnp.int32)

    teacher_forcing_ratio = 0.5
    # reference semantics: one Python random.random() draw per decoding step
    tf_mask = jnp.array(
        [0] + [1 if random.random() < teacher_forcing_ratio else 0
               for _ in range(1, TRG_LEN)],
        dtype=jnp.int32)

    outputs = seq2seq_forward(src, trg, tf_mask, params)
    outputs = jax.block_until_ready(outputs)

    assert outputs.shape == (TRG_LEN, BATCH, OUTPUT_VOCAB)
    assert outputs.dtype == jnp.float32
    print("KERNEL_OK")
</pallas_src>

<mosaic_0001>
module attributes {stable_mosaic.version = 11 : i64} {
  func.func @_seq2seq_kernel(%arg0: memref<8x2x128xf32, #tpu.memory_space<vmem>>, %arg1: memref<8x2x128xf32, #tpu.memory_space<vmem>>, %arg2: memref<8xi32, #tpu.memory_space<smem>>, %arg3: memref<32x128xbf16, #tpu.memory_space<vmem>>, %arg4: memref<32x128xbf16, #tpu.memory_space<vmem>>, %arg5: memref<32x128xbf16, #tpu.memory_space<vmem>>, %arg6: memref<1x128xf32, #tpu.memory_space<vmem>>, %arg7: memref<32x128xbf16, #tpu.memory_space<vmem>>, %arg8: memref<32x128xbf16, #tpu.memory_space<vmem>>, %arg9: memref<32x128xbf16, #tpu.memory_space<vmem>>, %arg10: memref<1x128xf32, #tpu.memory_space<vmem>>, %arg11: memref<128x128xbf16, #tpu.memory_space<vmem>>, %arg12: memref<32x128xbf16, #tpu.memory_space<vmem>>, %arg13: memref<1x128xf32, #tpu.memory_space<vmem>>, %arg14: memref<8x2x128xf32, #tpu.memory_space<vmem>>, %arg15: memref<2x128xf32, #tpu.memory_space<vmem>>) attributes {dimension_semantics = [], scalar_prefetch = 0 : i64, scratch_operands = 1 : i64, tpu.core_type = #tpu.core_type<tc>} {
    %c0 = arith.constant 0 : index
    %c0_0 = arith.constant 0 : index
    %0 = vector.load %arg6[%c0, %c0_0] : memref<1x128xf32, #tpu.memory_space<vmem>>, vector<1x128xf32>
    %1 = vector.shape_cast %0 : vector<1x128xf32> to vector<1x128xf32>
    %2 = vector.broadcast %1 : vector<1x128xf32> to vector<2x128xf32>
    %c0_1 = arith.constant 0 : index
    %c0_2 = arith.constant 0 : index
    %3 = vector.load %arg10[%c0_1, %c0_2] : memref<1x128xf32, #tpu.memory_space<vmem>>, vector<1x128xf32>
    %4 = vector.shape_cast %3 : vector<1x128xf32> to vector<1x128xf32>
    %5 = vector.broadcast %4 : vector<1x128xf32> to vector<2x128xf32>
    %c0_3 = arith.constant 0 : index
    %c0_4 = arith.constant 0 : index
    %6 = vector.load %arg13[%c0_3, %c0_4] : memref<1x128xf32, #tpu.memory_space<vmem>>, vector<1x128xf32>
    %7 = vector.shape_cast %6 : vector<1x128xf32> to vector<1x128xf32>
    %8 = vector.broadcast %7 : vector<1x128xf32> to vector<2x128xf32>
    %cst = arith.constant 0.000000e+00 : f32
    %9 = vector.broadcast %cst : f32 to vector<2x32xf32>
    %c0_5 = arith.constant 0 : index
    %c0_6 = arith.constant 0 : index
    %c0_7 = arith.constant 0 : index
    %10 = vector.load %arg0[%c0_5, %c0_6, %c0_7] : memref<8x2x128xf32, #tpu.memory_space<vmem>>, vector<1x2x128xf32>
    %11 = vector.shape_cast %10 : vector<1x2x128xf32> to vector<2x128xf32>
    %12 = arith.truncf %9 : vector<2x32xf32> to vector<2x32xbf16>
    %c0_8 = arith.constant 0 : index
    %c0_9 = arith.constant 0 : index
    %13 = vector.load %arg3[%c0_8, %c0_9] : memref<32x128xbf16, #tpu.memory_space<vmem>>, vector<32x128xbf16>
    %cst_10 = arith.constant dense<0.000000e+00> : vector<2x128xf32>
    %14 = tpu.matmul %12, %13, %cst_10 {dimension_numbers = #tpu.dot_dimension_numbers<[1], [0], [0], [1], [0, 0, 1, 1], [], []>} : vector<2x32xbf16>, vector<32x128xbf16>, vector<2x128xf32> -> vector<2x128xf32>
    %15 = arith.addf %11, %14 : vector<2x128xf32>
    %16 = arith.negf %15 : vector<2x128xf32>
    %17 = math.exp %16 : vector<2x128xf32>
    %cst_11 = arith.constant 1.000000e+00 : f32
    %18 = vector.broadcast %cst_11 : f32 to vector<2x128xf32>
    %19 = arith.addf %18, %17 : vector<2x128xf32>
    %20 = arith.divf %18, %19 : vector<2x128xf32>
    %21 = math.tanh %15 : vector<2x128xf32>
    %22 = vector.extract_strided_slice %20 {offsets = [0, 0], sizes = [2, 32], strides = [1, 1]} : vector<2x128xf32> to vector<2x32xf32>
    %23 = vector.extract_strided_slice %20 {offsets = [0, 32], sizes = [2, 32], strides = [1, 1]} : vector<2x128xf32> to vector<2x32xf32>
    %24 = vector.extract_strided_slice %21 {offsets = [0, 64], sizes = [2, 32], strides = [1, 1]} : vector<2x128xf32> to vector<2x32xf32>
    %25 = vector.extract_strided_slice %20 {offsets = [0, 96], sizes = [2, 32], strides = [1, 1]} : vector<2x128xf32> to vector<2x32xf32>
    %26 = arith.mulf %23, %9 : vector<2x32xf32>
    %27 = arith.mulf %22, %24 : vector<2x32xf32>
    %28 = arith.addf %26, %27 : vector<2x32xf32>
    %29 = math.tanh %28 : vector<2x32xf32>
    %30 = arith.mulf %25, %29 : vector<2x32xf32>
    %31 = arith.truncf %30 : vector<2x32xf32> to vector<2x32xbf16>
    %c0_12 = arith.constant 0 : index
    %c0_13 = arith.constant 0 : index
    %32 = vector.load %arg4[%c0_12, %c0_13] : memref<32x128xbf16, #tpu.memory_space<vmem>>, vector<32x128xbf16>
    %cst_14 = arith.constant dense<0.000000e+00> : vector<2x128xf32>
    %33 = tpu.matmul %31, %32, %cst_14 {dimension_numbers = #tpu.dot_dimension_numbers<[1], [0], [0], [1], [0, 0, 1, 1], [], []>} : vector<2x32xbf16>, vector<32x128xbf16>, vector<2x128xf32> -> vector<2x128xf32>
    %34 = arith.addf %33, %2 : vector<2x128xf32>
    %35 = arith.truncf %9 : vector<2x32xf32> to vector<2x32xbf16>
    %c0_15 = arith.constant 0 : index
    %c0_16 = arith.constant 0 : index
    %36 = vector.load %arg5[%c0_15, %c0_16] : memref<32x128xbf16, #tpu.memory_space<vmem>>, vector<32x128xbf16>
    %cst_17 = arith.constant dense<0.000000e+00> : vector<2x128xf32>
    %37 = tpu.matmul %35, %36, %cst_17 {dimension_numbers = #tpu.dot_dimension_numbers<[1], [0], [0], [1], [0, 0, 1, 1], [], []>} : vector<2x32xbf16>, vector<32x128xbf16>, vector<2x128xf32> -> vector<2x128xf32>
    %38 = arith.addf %34, %37 : vector<2x128xf32>
    %39 = arith.negf %38 : vector<2x128xf32>
    %40 = math.exp %39 : vector<2x128xf32>
    %cst_18 = arith.constant 1.000000e+00 : f32
    %41 = vector.broadcast %cst_18 : f32 to vector<2x128xf32>
    %42 = arith.addf %41, %40 : vector<2x128xf32>
    %43 = arith.divf %41, %42 : vector<2x128xf32>
    %44 = math.tanh %38 : vector<2x128xf32>
    %45 = vector.extract_strided_slice %43 {offsets = [0, 0], sizes = [2, 32], strides = [1, 1]} : vector<2x128xf32> to vector<2x32xf32>
    %46 = vector.extract_strided_slice %43 {offsets = [0, 32], sizes = [2, 32], strides = [1, 1]} : vector<2x128xf32> to vector<2x32xf32>
    %47 = vector.extract_strided_slice %44 {offsets = [0, 64], sizes = [2, 32], strides = [1, 1]} : vector<2x128xf32> to vector<2x32xf32>
    %48 = vector.extract_strided_slice %43 {offsets = [0, 96], sizes = [2, 32], strides = [1, 1]} : vector<2x128xf32> to vector<2x32xf32>
    %49 = arith.mulf %46, %9 : vector<2x32xf32>
    %50 = arith.mulf %45, %47 : vector<2x32xf32>
    %51 = arith.addf %49, %50 : vector<2x32xf32>
    %52 = math.tanh %51 : vector<2x32xf32>
    %53 = arith.mulf %48, %52 : vector<2x32xf32>
    %c1 = arith.constant 1 : index
    %c0_19 = arith.constant 0 : index
    %c0_20 = arith.constant 0 : index
    %54 = vector.load %arg0[%c1, %c0_19, %c0_20] : memref<8x2x128xf32, #tpu.memory_space<vmem>>, vector<1x2x128xf32>
    %55 = vector.shape_cast %54 : vector<1x2x128xf32> to vector<2x128xf32>
    %56 = arith.truncf %30 : vector<2x32xf32> to vector<2x32xbf16>
    %c0_21 = arith.constant 0 : index
    %c0_22 = arith.constant 0 : index
    %57 = vector.load %arg3[%c0_21, %c0_22] : memref<32x128xbf16, #tpu.memory_space<vmem>>, vector<32x128xbf16>
    %cst_23 = arith.constant dense<0.000000e+00> : vector<2x128xf32>
    %58 = tpu.matmul %56, %57, %cst_23 {dimension_numbers = #tpu.dot_dimension_numbers<[1], [0], [0], [1], [0, 0, 1, 1], [], []>} : vector<2x32xbf16>, vector<32x128xbf16>, vector<2x128xf32> -> vector<2x128xf32>
    %59 = arith.addf %55, %58 : vector<2x128xf32>
    %60 = arith.negf %59 : vector<2x128xf32>
    %61 = math.exp %60 : vector<2x128xf32>
    %cst_24 = arith.constant 1.000000e+00 : f32
    %62 = vector.broadcast %cst_24 : f32 to vector<2x128xf32>
    %63 = arith.addf %62, %61 : vector<2x128xf32>
    %64 = arith.divf %62, %63 : vector<2x128xf32>
    %65 = math.tanh %59 : vector<2x128xf32>
    %66 = vector.extract_strided_slice %64 {offsets = [0, 0], sizes = [2, 32], strides = [1, 1]} : vector<2x128xf32> to vector<2x32xf32>
    %67 = vector.extract_strided_slice %64 {offsets = [0, 32], sizes = [2, 32], strides = [1, 1]} : vector<2x128xf32> to vector<2x32xf32>
    %68 = vector.extract_strided_slice %65 {offsets = [0, 64], sizes = [2, 32], strides = [1, 1]} : vector<2x128xf32> to vector<2x32xf32>
    %69 = vector.extract_strided_slice %64 {offsets = [0, 96], sizes = [2, 32], strides = [1, 1]} : vector<2x128xf32> to vector<2x32xf32>
    %70 = arith.mulf %67, %28 : vector<2x32xf32>
    %71 = arith.mulf %66, %68 : vector<2x32xf32>
    %72 = arith.addf %70, %71 : vector<2x32xf32>
    %73 = math.tanh %72 : vector<2x32xf32>
    %74 = arith.mulf %69, %73 : vector<2x32xf32>
    %75 = arith.truncf %74 : vector<2x32xf32> to vector<2x32xbf16>
    %c0_25 = arith.constant 0 : index
    %c0_26 = arith.constant 0 : index
    %76 = vector.load %arg4[%c0_25, %c0_26] : memref<32x128xbf16, #tpu.memory_space<vmem>>, vector<32x128xbf16>
    %cst_27 = arith.constant dense<0.000000e+00> : vector<2x128xf32>
    %77 = tpu.matmul %75, %76, %cst_27 {dimension_numbers = #tpu.dot_dimension_numbers<[1], [0], [0], [1], [0, 0, 1, 1], [], []>} : vector<2x32xbf16>, vector<32x128xbf16>, vector<2x128xf32> -> vector<2x128xf32>
    %78 = arith.addf %77, %2 : vector<2x128xf32>
    %79 = arith.truncf %53 : vector<2x32xf32> to vector<2x32xbf16>
    %c0_28 = arith.constant 0 : index
    %c0_29 = arith.constant 0 : index
    %80 = vector.load %arg5[%c0_28, %c0_29] : memref<32x128xbf16, #tpu.memory_space<vmem>>, vector<32x128xbf16>
    %cst_30 = arith.constant dense<0.000000e+00> : vector<2x128xf32>
    %81 = tpu.matmul %79, %80, %cst_30 {dimension_numbers = #tpu.dot_dimension_numbers<[1], [0], [0], [1], [0, 0, 1, 1], [], []>} : vector<2x32xbf16>, vector<32x128xbf16>, vector<2x128xf32> -> vector<2x128xf32>
    %82 = arith.addf %78, %81 : vector<2x128xf32>
    %83 = arith.negf %82 : vector<2x128xf32>
    %84 = math.exp %83 : vector<2x128xf32>
    %cst_31 = arith.constant 1.000000e+00 : f32
    %85 = vector.broadcast %cst_31 : f32 to vector<2x128xf32>
    %86 = arith.addf %85, %84 : vector<2x128xf32>
    %87 = arith.divf %85, %86 : vector<2x128xf32>
    %88 = math.tanh %82 : vector<2x128xf32>
    %89 = vector.extract_strided_slice %87 {offsets = [0, 0], sizes = [2, 32], strides = [1, 1]} : vector<2x128xf32> to vector<2x32xf32>
    %90 = vector.extract_strided_slice %87 {offsets = [0, 32], sizes = [2, 32], strides = [1, 1]} : vector<2x128xf32> to vector<2x32xf32>
    %91 = vector.extract_strided_slice %88 {offsets = [0, 64], sizes = [2, 32], strides = [1, 1]} : vector<2x128xf32> to vector<2x32xf32>
    %92 = vector.extract_strided_slice %87 {offsets = [0, 96], sizes = [2, 32], strides = [1, 1]} : vector<2x128xf32> to vector<2x32xf32>
    %93 = arith.mulf %90, %51 : vector<2x32xf32>
    %94 = arith.mulf %89, %91 : vector<2x32xf32>
    %95 = arith.addf %93, %94 : vector<2x32xf32>
    %96 = math.tanh %95 : vector<2x32xf32>
    %97 = arith.mulf %92, %96 : vector<2x32xf32>
    %c2 = arith.constant 2 : index
    %c0_32 = arith.constant 0 : index
    %c0_33 = arith.constant 0 : index
    %98 = vector.load %arg0[%c2, %c0_32, %c0_33] : memref<8x2x128xf32, #tpu.memory_space<vmem>>, vector<1x2x128xf32>
    %99 = vector.shape_cast %98 : vector<1x2x128xf32> to vector<2x128xf32>
    %100 = arith.truncf %74 : vector<2x32xf32> to vector<2x32xbf16>
    %c0_34 = arith.constant 0 : index
    %c0_35 = arith.constant 0 : index
    %101 = vector.load %arg3[%c0_34, %c0_35] : memref<32x128xbf16, #tpu.memory_space<vmem>>, vector<32x128xbf16>
    %cst_36 = arith.constant dense<0.000000e+00> : vector<2x128xf32>
    %102 = tpu.matmul %100, %101, %cst_36 {dimension_numbers = #tpu.dot_dimension_numbers<[1], [0], [0], [1], [0, 0, 1, 1], [], []>} : vector<2x32xbf16>, vector<32x128xbf16>, vector<2x128xf32> -> vector<2x128xf32>
    %103 = arith.addf %99, %102 : vector<2x128xf32>
    %104 = arith.negf %103 : vector<2x128xf32>
    %105 = math.exp %104 : vector<2x128xf32>
    %cst_37 = arith.constant 1.000000e+00 : f32
    %106 = vector.broadcast %cst_37 : f32 to vector<2x128xf32>
    %107 = arith.addf %106, %105 : vector<2x128xf32>
    %108 = arith.divf %106, %107 : vector<2x128xf32>
    %109 = math.tanh %103 : vector<2x128xf32>
    %110 = vector.extract_strided_slice %108 {offsets = [0, 0], sizes = [2, 32], strides = [1, 1]} : vector<2x128xf32> to vector<2x32xf32>
    %111 = vector.extract_strided_slice %108 {offsets = [0, 32], sizes = [2, 32], strides = [1, 1]} : vector<2x128xf32> to vector<2x32xf32>
    %112 = vector.extract_strided_slice %109 {offsets = [0, 64], sizes = [2, 32], strides = [1, 1]} : vector<2x128xf32> to vector<2x32xf32>
    %113 = vector.extract_strided_slice %108 {offsets = [0, 96], sizes = [2, 32], strides = [1, 1]} : vector<2x128xf32> to vector<2x32xf32>
    %114 = arith.mulf %111, %72 : vector<2x32xf32>
    %115 = arith.mulf %110, %112 : vector<2x32xf32>
    %116 = arith.addf %114, %115 : vector<2x32xf32>
    %117 = math.tanh %116 : vector<2x32xf32>
    %118 = arith.mulf %113, %117 : vector<2x32xf32>
    %119 = arith.truncf %118 : vector<2x32xf32> to vector<2x32xbf16>
    %c0_38 = arith.constant 0 : index
    %c0_39 = arith.constant 0 : index
    %120 = vector.load %arg4[%c0_38, %c0_39] : memref<32x128xbf16, #tpu.memory_space<vmem>>, vector<32x128xbf16>
    %cst_40 = arith.constant dense<0.000000e+00> : vector<2x128xf32>
    %121 = tpu.matmul %119, %120, %cst_40 {dimension_numbers = #tpu.dot_dimension_numbers<[1], [0], [0], [1], [0, 0, 1, 1], [], []>} : vector<2x32xbf16>, vector<32x128xbf16>, vector<2x128xf32> -> vector<2x128xf32>
    %122 = arith.addf %121, %2 : vector<2x128xf32>
    %123 = arith.truncf %97 : vector<2x32xf32> to vector<2x32xbf16>
    %c0_41 = arith.constant 0 : index
    %c0_42 = arith.constant 0 : index
    %124 = vector.load %arg5[%c0_41, %c0_42] : memref<32x128xbf16, #tpu.memory_space<vmem>>, vector<32x128xbf16>
    %cst_43 = arith.constant dense<0.000000e+00> : vector<2x128xf32>
    %125 = tpu.matmul %123, %124, %cst_43 {dimension_numbers = #tpu.dot_dimension_numbers<[1], [0], [0], [1], [0, 0, 1, 1], [], []>} : vector<2x32xbf16>, vector<32x128xbf16>, vector<2x128xf32> -> vector<2x128xf32>
    %126 = arith.addf %122, %125 : vector<2x128xf32>
    %127 = arith.negf %126 : vector<2x128xf32>
    %128 = math.exp %127 : vector<2x128xf32>
    %cst_44 = arith.constant 1.000000e+00 : f32
    %129 = vector.broadcast %cst_44 : f32 to vector<2x128xf32>
    %130 = arith.addf %129, %128 : vector<2x128xf32>
    %131 = arith.divf %129, %130 : vector<2x128xf32>
    %132 = math.tanh %126 : vector<2x128xf32>
    %133 = vector.extract_strided_slice %131 {offsets = [0, 0], sizes = [2, 32], strides = [1, 1]} : vector<2x128xf32> to vector<2x32xf32>
    %134 = vector.extract_strided_slice %131 {offsets = [0, 32], sizes = [2, 32], strides = [1, 1]} : vector<2x128xf32> to vector<2x32xf32>
    %135 = vector.extract_strided_slice %132 {offsets = [0, 64], sizes = [2, 32], strides = [1, 1]} : vector<2x128xf32> to vector<2x32xf32>
    %136 = vector.extract_strided_slice %131 {offsets = [0, 96], sizes = [2, 32], strides = [1, 1]} : vector<2x128xf32> to vector<2x32xf32>
    %137 = arith.mulf %134, %95 : vector<2x32xf32>
    %138 = arith.mulf %133, %135 : vector<2x32xf32>
    %139 = arith.addf %137, %138 : vector<2x32xf32>
    %140 = math.tanh %139 : vector<2x32xf32>
    %141 = arith.mulf %136, %140 : vector<2x32xf32>
    %c3 = arith.constant 3 : index
    %c0_45 = arith.constant 0 : index
    %c0_46 = arith.constant 0 : index
    %142 = vector.load %arg0[%c3, %c0_45, %c0_46] : memref<8x2x128xf32, #tpu.memory_space<vmem>>, vector<1x2x128xf32>
    %143 = vector.shape_cast %142 : vector<1x2x128xf32> to vector<2x128xf32>
    %144 = arith.truncf %118 : vector<2x32xf32> to vector<2x32xbf16>
    %c0_47 = arith.constant 0 : index
    %c0_48 = arith.constant 0 : index
    %145 = vector.load %arg3[%c0_47, %c0_48] : memref<32x128xbf16, #tpu.memory_space<vmem>>, vector<32x128xbf16>
    %cst_49 = arith.constant dense<0.000000e+00> : vector<2x128xf32>
    %146 = tpu.matmul %144, %145, %cst_49 {dimension_numbers = #tpu.dot_dimension_numbers<[1], [0], [0], [1], [0, 0, 1, 1], [], []>} : vector<2x32xbf16>, vector<32x128xbf16>, vector<2x128xf32> -> vector<2x128xf32>
    %147 = arith.addf %143, %146 : vector<2x128xf32>
    %148 = arith.negf %147 : vector<2x128xf32>
    %149 = math.exp %148 : vector<2x128xf32>
    %cst_50 = arith.constant 1.000000e+00 : f32
    %150 = vector.broadcast %cst_50 : f32 to vector<2x128xf32>
    %151 = arith.addf %150, %149 : vector<2x128xf32>
    %152 = arith.divf %150, %151 : vector<2x128xf32>
    %153 = math.tanh %147 : vector<2x128xf32>
    %154 = vector.extract_strided_slice %152 {offsets = [0, 0], sizes = [2, 32], strides = [1, 1]} : vector<2x128xf32> to vector<2x32xf32>
    %155 = vector.extract_strided_slice %152 {offsets = [0, 32], sizes = [2, 32], strides = [1, 1]} : vector<2x128xf32> to vector<2x32xf32>
    %156 = vector.extract_strided_slice %153 {offsets = [0, 64], sizes = [2, 32], strides = [1, 1]} : vector<2x128xf32> to vector<2x32xf32>
    %157 = vector.extract_strided_slice %152 {offsets = [0, 96], sizes = [2, 32], strides = [1, 1]} : vector<2x128xf32> to vector<2x32xf32>
    %158 = arith.mulf %155, %116 : vector<2x32xf32>
    %159 = arith.mulf %154, %156 : vector<2x32xf32>
    %160 = arith.addf %158, %159 : vector<2x32xf32>
    %161 = math.tanh %160 : vector<2x32xf32>
    %162 = arith.mulf %157, %161 : vector<2x32xf32>
    %163 = arith.truncf %162 : vector<2x32xf32> to vector<2x32xbf16>
    %c0_51 = arith.constant 0 : index
    %c0_52 = arith.constant 0 : index
    %164 = vector.load %arg4[%c0_51, %c0_52] : memref<32x128xbf16, #tpu.memory_space<vmem>>, vector<32x128xbf16>
    %cst_53 = arith.constant dense<0.000000e+00> : vector<2x128xf32>
    %165 = tpu.matmul %163, %164, %cst_53 {dimension_numbers = #tpu.dot_dimension_numbers<[1], [0], [0], [1], [0, 0, 1, 1], [], []>} : vector<2x32xbf16>, vector<32x128xbf16>, vector<2x128xf32> -> vector<2x128xf32>
    %166 = arith.addf %165, %2 : vector<2x128xf32>
    %167 = arith.truncf %141 : vector<2x32xf32> to vector<2x32xbf16>
    %c0_54 = arith.constant 0 : index
    %c0_55 = arith.constant 0 : index
    %168 = vector.load %arg5[%c0_54, %c0_55] : memref<32x128xbf16, #tpu.memory_space<vmem>>, vector<32x128xbf16>
    %cst_56 = arith.constant dense<0.000000e+00> : vector<2x128xf32>
    %169 = tpu.matmul %167, %168, %cst_56 {dimension_numbers = #tpu.dot_dimension_numbers<[1], [0], [0], [1], [0, 0, 1, 1], [], []>} : vector<2x32xbf16>, vector<32x128xbf16>, vector<2x128xf32> -> vector<2x128xf32>
    %170 = arith.addf %166, %169 : vector<2x128xf32>
    %171 = arith.negf %170 : vector<2x128xf32>
    %172 = math.exp %171 : vector<2x128xf32>
    %cst_57 = arith.constant 1.000000e+00 : f32
    %173 = vector.broadcast %cst_57 : f32 to vector<2x128xf32>
    %174 = arith.addf %173, %172 : vector<2x128xf32>
    %175 = arith.divf %173, %174 : vector<2x128xf32>
    %176 = math.tanh %170 : vector<2x128xf32>
    %177 = vector.extract_strided_slice %175 {offsets = [0, 0], sizes = [2, 32], strides = [1, 1]} : vector<2x128xf32> to vector<2x32xf32>
    %178 = vector.extract_strided_slice %175 {offsets = [0, 32], sizes = [2, 32], strides = [1, 1]} : vector<2x128xf32> to vector<2x32xf32>
    %179 = vector.extract_strided_slice %176 {offsets = [0, 64], sizes = [2, 32], strides = [1, 1]} : vector<2x128xf32> to vector<2x32xf32>
    %180 = vector.extract_strided_slice %175 {offsets = [0, 96], sizes = [2, 32], strides = [1, 1]} : vector<2x128xf32> to vector<2x32xf32>
    %181 = arith.mulf %178, %139 : vector<2x32xf32>
    %182 = arith.mulf %177, %179 : vector<2x32xf32>
    %183 = arith.addf %181, %182 : vector<2x32xf32>
    %184 = math.tanh %183 : vector<2x32xf32>
    %185 = arith.mulf %180, %184 : vector<2x32xf32>
    %c4 = arith.constant 4 : index
    %c0_58 = arith.constant 0 : index
    %c0_59 = arith.constant 0 : index
    %186 = vector.load %arg0[%c4, %c0_58, %c0_59] : memref<8x2x128xf32, #tpu.memory_space<vmem>>, vector<1x2x128xf32>
    %187 = vector.shape_cast %186 : vector<1x2x128xf32> to vector<2x128xf32>
    %188 = arith.truncf %162 : vector<2x32xf32> to vector<2x32xbf16>
    %c0_60 = arith.constant 0 : index
    %c0_61 = arith.constant 0 : index
    %189 = vector.load %arg3[%c0_60, %c0_61] : memref<32x128xbf16, #tpu.memory_space<vmem>>, vector<32x128xbf16>
    %cst_62 = arith.constant dense<0.000000e+00> : vector<2x128xf32>
    %190 = tpu.matmul %188, %189, %cst_62 {dimension_numbers = #tpu.dot_dimension_numbers<[1], [0], [0], [1], [0, 0, 1, 1], [], []>} : vector<2x32xbf16>, vector<32x128xbf16>, vector<2x128xf32> -> vector<2x128xf32>
    %191 = arith.addf %187, %190 : vector<2x128xf32>
    %192 = arith.negf %191 : vector<2x128xf32>
    %193 = math.exp %192 : vector<2x128xf32>
    %cst_63 = arith.constant 1.000000e+00 : f32
    %194 = vector.broadcast %cst_63 : f32 to vector<2x128xf32>
    %195 = arith.addf %194, %193 : vector<2x128xf32>
    %196 = arith.divf %194, %195 : vector<2x128xf32>
    %197 = math.tanh %191 : vector<2x128xf32>
    %198 = vector.extract_strided_slice %196 {offsets = [0, 0], sizes = [2, 32], strides = [1, 1]} : vector<2x128xf32> to vector<2x32xf32>
    %199 = vector.extract_strided_slice %196 {offsets = [0, 32], sizes = [2, 32], strides = [1, 1]} : vector<2x128xf32> to vector<2x32xf32>
    %200 = vector.extract_strided_slice %197 {offsets = [0, 64], sizes = [2, 32], strides = [1, 1]} : vector<2x128xf32> to vector<2x32xf32>
    %201 = vector.extract_strided_slice %196 {offsets = [0, 96], sizes = [2, 32], strides = [1, 1]} : vector<2x128xf32> to vector<2x32xf32>
    %202 = arith.mulf %199, %160 : vector<2x32xf32>
    %203 = arith.mulf %198, %200 : vector<2x32xf32>
    %204 = arith.addf %202, %203 : vector<2x32xf32>
    %205 = math.tanh %204 : vector<2x32xf32>
    %206 = arith.mulf %201, %205 : vector<2x32xf32>
    %207 = arith.truncf %206 : vector<2x32xf32> to vector<2x32xbf16>
    %c0_64 = arith.constant 0 : index
    %c0_65 = arith.constant 0 : index
    %208 = vector.load %arg4[%c0_64, %c0_65] : memref<32x128xbf16, #tpu.memory_space<vmem>>, vector<32x128xbf16>
    %cst_66 = arith.constant dense<0.000000e+00> : vector<2x128xf32>
    %209 = tpu.matmul %207, %208, %cst_66 {dimension_numbers = #tpu.dot_dimension_numbers<[1], [0], [0], [1], [0, 0, 1, 1], [], []>} : vector<2x32xbf16>, vector<32x128xbf16>, vector<2x128xf32> -> vector<2x128xf32>
    %210 = arith.addf %209, %2 : vector<2x128xf32>
    %211 = arith.truncf %185 : vector<2x32xf32> to vector<2x32xbf16>
    %c0_67 = arith.constant 0 : index
    %c0_68 = arith.constant 0 : index
    %212 = vector.load %arg5[%c0_67, %c0_68] : memref<32x128xbf16, #tpu.memory_space<vmem>>, vector<32x128xbf16>
    %cst_69 = arith.constant dense<0.000000e+00> : vector<2x128xf32>
    %213 = tpu.matmul %211, %212, %cst_69 {dimension_numbers = #tpu.dot_dimension_numbers<[1], [0], [0], [1], [0, 0, 1, 1], [], []>} : vector<2x32xbf16>, vector<32x128xbf16>, vector<2x128xf32> -> vector<2x128xf32>
    %214 = arith.addf %210, %213 : vector<2x128xf32>
    %215 = arith.negf %214 : vector<2x128xf32>
    %216 = math.exp %215 : vector<2x128xf32>
    %cst_70 = arith.constant 1.000000e+00 : f32
    %217 = vector.broadcast %cst_70 : f32 to vector<2x128xf32>
    %218 = arith.addf %217, %216 : vector<2x128xf32>
    %219 = arith.divf %217, %218 : vector<2x128xf32>
    %220 = math.tanh %214 : vector<2x128xf32>
    %221 = vector.extract_strided_slice %219 {offsets = [0, 0], sizes = [2, 32], strides = [1, 1]} : vector<2x128xf32> to vector<2x32xf32>
    %222 = vector.extract_strided_slice %219 {offsets = [0, 32], sizes = [2, 32], strides = [1, 1]} : vector<2x128xf32> to vector<2x32xf32>
    %223 = vector.extract_strided_slice %220 {offsets = [0, 64], sizes = [2, 32], strides = [1, 1]} : vector<2x128xf32> to vector<2x32xf32>
    %224 = vector.extract_strided_slice %219 {offsets = [0, 96], sizes = [2, 32], strides = [1, 1]} : vector<2x128xf32> to vector<2x32xf32>
    %225 = arith.mulf %222, %183 : vector<2x32xf32>
    %226 = arith.mulf %221, %223 : vector<2x32xf32>
    %227 = arith.addf %225, %226 : vector<2x32xf32>
    %228 = math.tanh %227 : vector<2x32xf32>
    %229 = arith.mulf %224, %228 : vector<2x32xf32>
    %c5 = arith.constant 5 : index
    %c0_71 = arith.constant 0 : index
    %c0_72 = arith.constant 0 : index
    %230 = vector.load %arg0[%c5, %c0_71, %c0_72] : memref<8x2x128xf32, #tpu.memory_space<vmem>>, vector<1x2x128xf32>
    %231 = vector.shape_cast %230 : vector<1x2x128xf32> to vector<2x128xf32>
    %232 = arith.truncf %206 : vector<2x32xf32> to vector<2x32xbf16>
    %c0_73 = arith.constant 0 : index
    %c0_74 = arith.constant 0 : index
    %233 = vector.load %arg3[%c0_73, %c0_74] : memref<32x128xbf16, #tpu.memory_space<vmem>>, vector<32x128xbf16>
    %cst_75 = arith.constant dense<0.000000e+00> : vector<2x128xf32>
    %234 = tpu.matmul %232, %233, %cst_75 {dimension_numbers = #tpu.dot_dimension_numbers<[1], [0], [0], [1], [0, 0, 1, 1], [], []>} : vector<2x32xbf16>, vector<32x128xbf16>, vector<2x128xf32> -> vector<2x128xf32>
    %235 = arith.addf %231, %234 : vector<2x128xf32>
    %236 = arith.negf %235 : vector<2x128xf32>
    %237 = math.exp %236 : vector<2x128xf32>
    %cst_76 = arith.constant 1.000000e+00 : f32
    %238 = vector.broadcast %cst_76 : f32 to vector<2x128xf32>
    %239 = arith.addf %238, %237 : vector<2x128xf32>
    %240 = arith.divf %238, %239 : vector<2x128xf32>
    %241 = math.tanh %235 : vector<2x128xf32>
    %242 = vector.extract_strided_slice %240 {offsets = [0, 0], sizes = [2, 32], strides = [1, 1]} : vector<2x128xf32> to vector<2x32xf32>
    %243 = vector.extract_strided_slice %240 {offsets = [0, 32], sizes = [2, 32], strides = [1, 1]} : vector<2x128xf32> to vector<2x32xf32>
    %244 = vector.extract_strided_slice %241 {offsets = [0, 64], sizes = [2, 32], strides = [1, 1]} : vector<2x128xf32> to vector<2x32xf32>
    %245 = vector.extract_strided_slice %240 {offsets = [0, 96], sizes = [2, 32], strides = [1, 1]} : vector<2x128xf32> to vector<2x32xf32>
    %246 = arith.mulf %243, %204 : vector<2x32xf32>
    %247 = arith.mulf %242, %244 : vector<2x32xf32>
    %248 = arith.addf %246, %247 : vector<2x32xf32>
    %249 = math.tanh %248 : vector<2x32xf32>
    %250 = arith.mulf %245, %249 : vector<2x32xf32>
    %251 = arith.truncf %250 : vector<2x32xf32> to vector<2x32xbf16>
    %c0_77 = arith.constant 0 : index
    %c0_78 = arith.constant 0 : index
    %252 = vector.load %arg4[%c0_77, %c0_78] : memref<32x128xbf16, #tpu.memory_space<vmem>>, vector<32x128xbf16>
    %cst_79 = arith.constant dense<0.000000e+00> : vector<2x128xf32>
    %253 = tpu.matmul %251, %252, %cst_79 {dimension_numbers = #tpu.dot_dimension_numbers<[1], [0], [0], [1], [0, 0, 1, 1], [], []>} : vector<2x32xbf16>, vector<32x128xbf16>, vector<2x128xf32> -> vector<2x128xf32>
    %254 = arith.addf %253, %2 : vector<2x128xf32>
    %255 = arith.truncf %229 : vector<2x32xf32> to vector<2x32xbf16>
    %c0_80 = arith.constant 0 : index
    %c0_81 = arith.constant 0 : index
    %256 = vector.load %arg5[%c0_80, %c0_81] : memref<32x128xbf16, #tpu.memory_space<vmem>>, vector<32x128xbf16>
    %cst_82 = arith.constant dense<0.000000e+00> : vector<2x128xf32>
    %257 = tpu.matmul %255, %256, %cst_82 {dimension_numbers = #tpu.dot_dimension_numbers<[1], [0], [0], [1], [0, 0, 1, 1], [], []>} : vector<2x32xbf16>, vector<32x128xbf16>, vector<2x128xf32> -> vector<2x128xf32>
    %258 = arith.addf %254, %257 : vector<2x128xf32>
    %259 = arith.negf %258 : vector<2x128xf32>
    %260 = math.exp %259 : vector<2x128xf32>
    %cst_83 = arith.constant 1.000000e+00 : f32
    %261 = vector.broadcast %cst_83 : f32 to vector<2x128xf32>
    %262 = arith.addf %261, %260 : vector<2x128xf32>
    %263 = arith.divf %261, %262 : vector<2x128xf32>
    %264 = math.tanh %258 : vector<2x128xf32>
    %265 = vector.extract_strided_slice %263 {offsets = [0, 0], sizes = [2, 32], strides = [1, 1]} : vector<2x128xf32> to vector<2x32xf32>
    %266 = vector.extract_strided_slice %263 {offsets = [0, 32], sizes = [2, 32], strides = [1, 1]} : vector<2x128xf32> to vector<2x32xf32>
    %267 = vector.extract_strided_slice %264 {offsets = [0, 64], sizes = [2, 32], strides = [1, 1]} : vector<2x128xf32> to vector<2x32xf32>
    %268 = vector.extract_strided_slice %263 {offsets = [0, 96], sizes = [2, 32], strides = [1, 1]} : vector<2x128xf32> to vector<2x32xf32>
    %269 = arith.mulf %266, %227 : vector<2x32xf32>
    %270 = arith.mulf %265, %267 : vector<2x32xf32>
    %271 = arith.addf %269, %270 : vector<2x32xf32>
    %272 = math.tanh %271 : vector<2x32xf32>
    %273 = arith.mulf %268, %272 : vector<2x32xf32>
    %c6 = arith.constant 6 : index
    %c0_84 = arith.constant 0 : index
    %c0_85 = arith.constant 0 : index
    %274 = vector.load %arg0[%c6, %c0_84, %c0_85] : memref<8x2x128xf32, #tpu.memory_space<vmem>>, vector<1x2x128xf32>
    %275 = vector.shape_cast %274 : vector<1x2x128xf32> to vector<2x128xf32>
    %276 = arith.truncf %250 : vector<2x32xf32> to vector<2x32xbf16>
    %c0_86 = arith.constant 0 : index
    %c0_87 = arith.constant 0 : index
    %277 = vector.load %arg3[%c0_86, %c0_87] : memref<32x128xbf16, #tpu.memory_space<vmem>>, vector<32x128xbf16>
    %cst_88 = arith.constant dense<0.000000e+00> : vector<2x128xf32>
    %278 = tpu.matmul %276, %277, %cst_88 {dimension_numbers = #tpu.dot_dimension_numbers<[1], [0], [0], [1], [0, 0, 1, 1], [], []>} : vector<2x32xbf16>, vector<32x128xbf16>, vector<2x128xf32> -> vector<2x128xf32>
    %279 = arith.addf %275, %278 : vector<2x128xf32>
    %280 = arith.negf %279 : vector<2x128xf32>
    %281 = math.exp %280 : vector<2x128xf32>
    %cst_89 = arith.constant 1.000000e+00 : f32
    %282 = vector.broadcast %cst_89 : f32 to vector<2x128xf32>
    %283 = arith.addf %282, %281 : vector<2x128xf32>
    %284 = arith.divf %282, %283 : vector<2x128xf32>
    %285 = math.tanh %279 : vector<2x128xf32>
    %286 = vector.extract_strided_slice %284 {offsets = [0, 0], sizes = [2, 32], strides = [1, 1]} : vector<2x128xf32> to vector<2x32xf32>
    %287 = vector.extract_strided_slice %284 {offsets = [0, 32], sizes = [2, 32], strides = [1, 1]} : vector<2x128xf32> to vector<2x32xf32>
    %288 = vector.extract_strided_slice %285 {offsets = [0, 64], sizes = [2, 32], strides = [1, 1]} : vector<2x128xf32> to vector<2x32xf32>
    %289 = vector.extract_strided_slice %284 {offsets = [0, 96], sizes = [2, 32], strides = [1, 1]} : vector<2x128xf32> to vector<2x32xf32>
    %290 = arith.mulf %287, %248 : vector<2x32xf32>
    %291 = arith.mulf %286, %288 : vector<2x32xf32>
    %292 = arith.addf %290, %291 : vector<2x32xf32>
    %293 = math.tanh %292 : vector<2x32xf32>
    %294 = arith.mulf %289, %293 : vector<2x32xf32>
    %295 = arith.truncf %294 : vector<2x32xf32> to vector<2x32xbf16>
    %c0_90 = arith.constant 0 : index
    %c0_91 = arith.constant 0 : index
    %296 = vector.load %arg4[%c0_90, %c0_91] : memref<32x128xbf16, #tpu.memory_space<vmem>>, vector<32x128xbf16>
    %cst_92 = arith.constant dense<0.000000e+00> : vector<2x128xf32>
    %297 = tpu.matmul %295, %296, %cst_92 {dimension_numbers = #tpu.dot_dimension_numbers<[1], [0], [0], [1], [0, 0, 1, 1], [], []>} : vector<2x32xbf16>, vector<32x128xbf16>, vector<2x128xf32> -> vector<2x128xf32>
    %298 = arith.addf %297, %2 : vector<2x128xf32>
    %299 = arith.truncf %273 : vector<2x32xf32> to vector<2x32xbf16>
    %c0_93 = arith.constant 0 : index
    %c0_94 = arith.constant 0 : index
    %300 = vector.load %arg5[%c0_93, %c0_94] : memref<32x128xbf16, #tpu.memory_space<vmem>>, vector<32x128xbf16>
    %cst_95 = arith.constant dense<0.000000e+00> : vector<2x128xf32>
    %301 = tpu.matmul %299, %300, %cst_95 {dimension_numbers = #tpu.dot_dimension_numbers<[1], [0], [0], [1], [0, 0, 1, 1], [], []>} : vector<2x32xbf16>, vector<32x128xbf16>, vector<2x128xf32> -> vector<2x128xf32>
    %302 = arith.addf %298, %301 : vector<2x128xf32>
    %303 = arith.negf %302 : vector<2x128xf32>
    %304 = math.exp %303 : vector<2x128xf32>
    %cst_96 = arith.constant 1.000000e+00 : f32
    %305 = vector.broadcast %cst_96 : f32 to vector<2x128xf32>
    %306 = arith.addf %305, %304 : vector<2x128xf32>
    %307 = arith.divf %305, %306 : vector<2x128xf32>
    %308 = math.tanh %302 : vector<2x128xf32>
    %309 = vector.extract_strided_slice %307 {offsets = [0, 0], sizes = [2, 32], strides = [1, 1]} : vector<2x128xf32> to vector<2x32xf32>
    %310 = vector.extract_strided_slice %307 {offsets = [0, 32], sizes = [2, 32], strides = [1, 1]} : vector<2x128xf32> to vector<2x32xf32>
    %311 = vector.extract_strided_slice %308 {offsets = [0, 64], sizes = [2, 32], strides = [1, 1]} : vector<2x128xf32> to vector<2x32xf32>
    %312 = vector.extract_strided_slice %307 {offsets = [0, 96], sizes = [2, 32], strides = [1, 1]} : vector<2x128xf32> to vector<2x32xf32>
    %313 = arith.mulf %310, %271 : vector<2x32xf32>
    %314 = arith.mulf %309, %311 : vector<2x32xf32>
    %315 = arith.addf %313, %314 : vector<2x32xf32>
    %316 = math.tanh %315 : vector<2x32xf32>
    %317 = arith.mulf %312, %316 : vector<2x32xf32>
    %c7 = arith.constant 7 : index
    %c0_97 = arith.constant 0 : index
    %c0_98 = arith.constant 0 : index
    %318 = vector.load %arg0[%c7, %c0_97, %c0_98] : memref<8x2x128xf32, #tpu.memory_space<vmem>>, vector<1x2x128xf32>
    %319 = vector.shape_cast %318 : vector<1x2x128xf32> to vector<2x128xf32>
    %320 = arith.truncf %294 : vector<2x32xf32> to vector<2x32xbf16>
    %c0_99 = arith.constant 0 : index
    %c0_100 = arith.constant 0 : index
    %321 = vector.load %arg3[%c0_99, %c0_100] : memref<32x128xbf16, #tpu.memory_space<vmem>>, vector<32x128xbf16>
    %cst_101 = arith.constant dense<0.000000e+00> : vector<2x128xf32>
    %322 = tpu.matmul %320, %321, %cst_101 {dimension_numbers = #tpu.dot_dimension_numbers<[1], [0], [0], [1], [0, 0, 1, 1], [], []>} : vector<2x32xbf16>, vector<32x128xbf16>, vector<2x128xf32> -> vector<2x128xf32>
    %323 = arith.addf %319, %322 : vector<2x128xf32>
    %324 = arith.negf %323 : vector<2x128xf32>
    %325 = math.exp %324 : vector<2x128xf32>
    %cst_102 = arith.constant 1.000000e+00 : f32
    %326 = vector.broadcast %cst_102 : f32 to vector<2x128xf32>
    %327 = arith.addf %326, %325 : vector<2x128xf32>
    %328 = arith.divf %326, %327 : vector<2x128xf32>
    %329 = math.tanh %323 : vector<2x128xf32>
    %330 = vector.extract_strided_slice %328 {offsets = [0, 0], sizes = [2, 32], strides = [1, 1]} : vector<2x128xf32> to vector<2x32xf32>
    %331 = vector.extract_strided_slice %328 {offsets = [0, 32], sizes = [2, 32], strides = [1, 1]} : vector<2x128xf32> to vector<2x32xf32>
    %332 = vector.extract_strided_slice %329 {offsets = [0, 64], sizes = [2, 32], strides = [1, 1]} : vector<2x128xf32> to vector<2x32xf32>
    %333 = vector.extract_strided_slice %328 {offsets = [0, 96], sizes = [2, 32], strides = [1, 1]} : vector<2x128xf32> to vector<2x32xf32>
    %334 = arith.mulf %331, %292 : vector<2x32xf32>
    %335 = arith.mulf %330, %332 : vector<2x32xf32>
    %336 = arith.addf %334, %335 : vector<2x32xf32>
    %337 = math.tanh %336 : vector<2x32xf32>
    %338 = arith.mulf %333, %337 : vector<2x32xf32>
    %339 = arith.truncf %338 : vector<2x32xf32> to vector<2x32xbf16>
    %c0_103 = arith.constant 0 : index
    %c0_104 = arith.constant 0 : index
    %340 = vector.load %arg4[%c0_103, %c0_104] : memref<32x128xbf16, #tpu.memory_space<vmem>>, vector<32x128xbf16>
    %cst_105 = arith.constant dense<0.000000e+00> : vector<2x128xf32>
    %341 = tpu.matmul %339, %340, %cst_105 {dimension_numbers = #tpu.dot_dimension_numbers<[1], [0], [0], [1], [0, 0, 1, 1], [], []>} : vector<2x32xbf16>, vector<32x128xbf16>, vector<2x128xf32> -> vector<2x128xf32>
    %342 = arith.addf %341, %2 : vector<2x128xf32>
    %343 = arith.truncf %317 : vector<2x32xf32> to vector<2x32xbf16>
    %c0_106 = arith.constant 0 : index
    %c0_107 = arith.constant 0 : index
    %344 = vector.load %arg5[%c0_106, %c0_107] : memref<32x128xbf16, #tpu.memory_space<vmem>>, vector<32x128xbf16>
    %cst_108 = arith.constant dense<0.000000e+00> : vector<2x128xf32>
    %345 = tpu.matmul %343, %344, %cst_108 {dimension_numbers = #tpu.dot_dimension_numbers<[1], [0], [0], [1], [0, 0, 1, 1], [], []>} : vector<2x32xbf16>, vector<32x128xbf16>, vector<2x128xf32> -> vector<2x128xf32>
    %346 = arith.addf %342, %345 : vector<2x128xf32>
    %347 = arith.negf %346 : vector<2x128xf32>
    %348 = math.exp %347 : vector<2x128xf32>
    %cst_109 = arith.constant 1.000000e+00 : f32
    %349 = vector.broadcast %cst_109 : f32 to vector<2x128xf32>
    %350 = arith.addf %349, %348 : vector<2x128xf32>
    %351 = arith.divf %349, %350 : vector<2x128xf32>
    %352 = math.tanh %346 : vector<2x128xf32>
    %353 = vector.extract_strided_slice %351 {offsets = [0, 0], sizes = [2, 32], strides = [1, 1]} : vector<2x128xf32> to vector<2x32xf32>
    %354 = vector.extract_strided_slice %351 {offsets = [0, 32], sizes = [2, 32], strides = [1, 1]} : vector<2x128xf32> to vector<2x32xf32>
    %355 = vector.extract_strided_slice %352 {offsets = [0, 64], sizes = [2, 32], strides = [1, 1]} : vector<2x128xf32> to vector<2x32xf32>
    %356 = vector.extract_strided_slice %351 {offsets = [0, 96], sizes = [2, 32], strides = [1, 1]} : vector<2x128xf32> to vector<2x32xf32>
    %357 = arith.mulf %354, %315 : vector<2x32xf32>
    %358 = arith.mulf %353, %355 : vector<2x32xf32>
    %359 = arith.addf %357, %358 : vector<2x32xf32>
    %360 = math.tanh %359 : vector<2x32xf32>
    %361 = arith.mulf %356, %360 : vector<2x32xf32>
    %cst_110 = arith.constant 0.000000e+00 : f32
    %362 = vector.broadcast %cst_110 : f32 to vector<2x128xf32>
    %c0_111 = arith.constant 0 : index
    %c0_112 = arith.constant 0 : index
    %c0_113 = arith.constant 0 : index
    %363 = vector.load %arg14[%c0_111, %c0_112, %c0_113] : memref<8x2x128xf32, #tpu.memory_space<vmem>>, vector<1x2x128xf32>
    %364 = vector.shape_cast %363 : vector<1x2x128xf32> to vector<2x128xf32>
    %365 = vector.shape_cast %362 : vector<2x128xf32> to vector<1x2x128xf32>
    tpu.vector_store %arg14[%c0_111, %c0_112, %c0_113], %365 {strides = array<i32>} : memref<8x2x128xf32, #tpu.memory_space<vmem>>, vector<1x2x128xf32>,
    %c0_114 = arith.constant 0 : index
    %c0_115 = arith.constant 0 : index
    %c0_116 = arith.constant 0 : index
    %366 = vector.load %arg1[%c0_114, %c0_115, %c0_116] : memref<8x2x128xf32, #tpu.memory_space<vmem>>, vector<1x2x128xf32>
    %367 = vector.shape_cast %366 : vector<1x2x128xf32> to vector<2x128xf32>
    %c0_117 = arith.constant 0 : index
    %c0_118 = arith.constant 0 : index
    %368 = vector.load %arg15[%c0_117, %c0_118] : memref<2x128xf32, #tpu.memory_space<vmem>>, vector<2x128xf32>
    tpu.vector_store %arg15[%c0_117, %c0_118], %367 {strides = array<i32>} : memref<2x128xf32, #tpu.memory_space<vmem>>, vector<2x128xf32>,
    %c0_119 = arith.constant 0 : index
    %c0_120 = arith.constant 0 : index
    %369 = vector.load %arg15[%c0_119, %c0_120] : memref<2x128xf32, #tpu.memory_space<vmem>>, vector<2x128xf32>
    %370 = arith.truncf %338 : vector<2x32xf32> to vector<2x32xbf16>
    %c0_121 = arith.constant 0 : index
    %c0_122 = arith.constant 0 : index
    %371 = vector.load %arg7[%c0_121, %c0_122] : memref<32x128xbf16, #tpu.memory_space<vmem>>, vector<32x128xbf16>
    %cst_123 = arith.constant dense<0.000000e+00> : vector<2x128xf32>
    %372 = tpu.matmul %370, %371, %cst_123 {dimension_numbers = #tpu.dot_dimension_numbers<[1], [0], [0], [1], [0, 0, 1, 1], [], []>} : vector<2x32xbf16>, vector<32x128xbf16>, vector<2x128xf32> -> vector<2x128xf32>
    %373 = arith.addf %369, %372 : vector<2x128xf32>
    %374 = arith.negf %373 : vector<2x128xf32>
    %375 = math.exp %374 : vector<2x128xf32>
    %cst_124 = arith.constant 1.000000e+00 : f32
    %376 = vector.broadcast %cst_124 : f32 to vector<2x128xf32>
    %377 = arith.addf %376, %375 : vector<2x128xf32>
    %378 = arith.divf %376, %377 : vector<2x128xf32>
    %379 = math.tanh %373 : vector<2x128xf32>
    %380 = vector.extract_strided_slice %378 {offsets = [0, 0], sizes = [2, 32], strides = [1, 1]} : vector<2x128xf32> to vector<2x32xf32>
    %381 = vector.extract_strided_slice %378 {offsets = [0, 32], sizes = [2, 32], strides = [1, 1]} : vector<2x128xf32> to vector<2x32xf32>
    %382 = vector.extract_strided_slice %379 {offsets = [0, 64], sizes = [2, 32], strides = [1, 1]} : vector<2x128xf32> to vector<2x32xf32>
    %383 = vector.extract_strided_slice %378 {offsets = [0, 96], sizes = [2, 32], strides = [1, 1]} : vector<2x128xf32> to vector<2x32xf32>
    %384 = arith.mulf %381, %336 : vector<2x32xf32>
    %385 = arith.mulf %380, %382 : vector<2x32xf32>
    %386 = arith.addf %384, %385 : vector<2x32xf32>
    %387 = math.tanh %386 : vector<2x32xf32>
    %388 = arith.mulf %383, %387 : vector<2x32xf32>
    %389 = arith.truncf %388 : vector<2x32xf32> to vector<2x32xbf16>
    %c0_125 = arith.constant 0 : index
    %c0_126 = arith.constant 0 : index
    %390 = vector.load %arg8[%c0_125, %c0_126] : memref<32x128xbf16, #tpu.memory_space<vmem>>, vector<32x128xbf16>
    %cst_127 = arith.constant dense<0.000000e+00> : vector<2x128xf32>
    %391 = tpu.matmul %389, %390, %cst_127 {dimension_numbers = #tpu.dot_dimension_numbers<[1], [0], [0], [1], [0, 0, 1, 1], [], []>} : vector<2x32xbf16>, vector<32x128xbf16>, vector<2x128xf32> -> vector<2x128xf32>
    %392 = arith.addf %391, %5 : vector<2x128xf32>
    %393 = arith.truncf %361 : vector<2x32xf32> to vector<2x32xbf16>
    %c0_128 = arith.constant 0 : index
    %c0_129 = arith.constant 0 : index
    %394 = vector.load %arg9[%c0_128, %c0_129] : memref<32x128xbf16, #tpu.memory_space<vmem>>, vector<32x128xbf16>
    %cst_130 = arith.constant dense<0.000000e+00> : vector<2x128xf32>
    %395 = tpu.matmul %393, %394, %cst_130 {dimension_numbers = #tpu.dot_dimension_numbers<[1], [0], [0], [1], [0, 0, 1, 1], [], []>} : vector<2x32xbf16>, vector<32x128xbf16>, vector<2x128xf32> -> vector<2x128xf32>
    %396 = arith.addf %392, %395 : vector<2x128xf32>
    %397 = arith.negf %396 : vector<2x128xf32>
    %398 = math.exp %397 : vector<2x128xf32>
    %cst_131 = arith.constant 1.000000e+00 : f32
    %399 = vector.broadcast %cst_131 : f32 to vector<2x128xf32>
    %400 = arith.addf %399, %398 : vector<2x128xf32>
    %401 = arith.divf %399, %400 : vector<2x128xf32>
    %402 = math.tanh %396 : vector<2x128xf32>
    %403 = vector.extract_strided_slice %401 {offsets = [0, 0], sizes = [2, 32], strides = [1, 1]} : vector<2x128xf32> to vector<2x32xf32>
    %404 = vector.extract_strided_slice %401 {offsets = [0, 32], sizes = [2, 32], strides = [1, 1]} : vector<2x128xf32> to vector<2x32xf32>
    %405 = vector.extract_strided_slice %402 {offsets = [0, 64], sizes = [2, 32], strides = [1, 1]} : vector<2x128xf32> to vector<2x32xf32>
    %406 = vector.extract_strided_slice %401 {offsets = [0, 96], sizes = [2, 32], strides = [1, 1]} : vector<2x128xf32> to vector<2x32xf32>
    %407 = arith.mulf %404, %359 : vector<2x32xf32>
    %408 = arith.mulf %403, %405 : vector<2x32xf32>
    %409 = arith.addf %407, %408 : vector<2x32xf32>
    %410 = math.tanh %409 : vector<2x32xf32>
    %411 = arith.mulf %406, %410 : vector<2x32xf32>
    %412 = arith.truncf %411 : vector<2x32xf32> to vector<2x32xbf16>
    %c0_132 = arith.constant 0 : index
    %c0_133 = arith.constant 0 : index
    %413 = vector.load %arg12[%c0_132, %c0_133] : memref<32x128xbf16, #tpu.memory_space<vmem>>, vector<32x128xbf16>
    %cst_134 = arith.constant dense<0.000000e+00> : vector<2x128xf32>
    %414 = tpu.matmul %412, %413, %cst_134 {dimension_numbers = #tpu.dot_dimension_numbers<[1], [0], [0], [1], [0, 0, 1, 1], [], []>} : vector<2x32xbf16>, vector<32x128xbf16>, vector<2x128xf32> -> vector<2x128xf32>
    %415 = arith.addf %414, %8 : vector<2x128xf32>
    %c1_135 = arith.constant 1 : index
    %c0_136 = arith.constant 0 : index
    %c0_137 = arith.constant 0 : index
    %416 = vector.load %arg14[%c1_135, %c0_136, %c0_137] : memref<8x2x128xf32, #tpu.memory_space<vmem>>, vector<1x2x128xf32>
    %417 = vector.shape_cast %416 : vector<1x2x128xf32> to vector<2x128xf32>
    %418 = vector.shape_cast %415 : vector<2x128xf32> to vector<1x2x128xf32>
    tpu.vector_store %arg14[%c1_135, %c0_136, %c0_137], %418 {strides = array<i32>} : memref<8x2x128xf32, #tpu.memory_space<vmem>>, vector<1x2x128xf32>,
    %c1_138 = arith.constant 1 : index
    %419 = memref.load %arg2[%c1_138] : memref<8xi32, #tpu.memory_space<smem>>
    %c0_i32 = arith.constant 0 : i32
    %420 = arith.cmpi sgt, %419, %c0_i32 : i32
    %421 = arith.extui %420 : i1 to i32
    %c0_i32_139 = arith.constant 0 : i32
    %422 = arith.cmpi ne, %421, %c0_i32_139 : i32
    scf.if %422 {
      %c1_293 = arith.constant 1 : index
      %c0_294 = arith.constant 0 : index
      %c0_295 = arith.constant 0 : index
      %775 = vector.load %arg1[%c1_293, %c0_294, %c0_295] : memref<8x2x128xf32, #tpu.memory_space<vmem>>, vector<1x2x128xf32>
      %776 = vector.shape_cast %775 : vector<1x2x128xf32> to vector<2x128xf32>
      %c0_296 = arith.constant 0 : index
      %c0_297 = arith.constant 0 : index
      %777 = vector.load %arg15[%c0_296, %c0_297] : memref<2x128xf32, #tpu.memory_space<vmem>>, vector<2x128xf32>
      tpu.vector_store %arg15[%c0_296, %c0_297], %776 {strides = array<i32>} : memref<2x128xf32, #tpu.memory_space<vmem>>, vector<2x128xf32>,
    } else {
    }
    %c1_140 = arith.constant 1 : index
    %423 = memref.load %arg2[%c1_140] : memref<8xi32, #tpu.memory_space<smem>>
    %c0_i32_141 = arith.constant 0 : i32
    %424 = arith.cmpi eq, %423, %c0_i32_141 : i32
    %425 = arith.extui %424 : i1 to i32
    %c0_i32_142 = arith.constant 0 : i32
    %426 = arith.cmpi ne, %425, %c0_i32_142 : i32
    scf.if %426 {
      %cst_293 = arith.constant dense<0xFF800000> : vector<2xf32>
      %775 = vector.multi_reduction <maximumf>, %415, %cst_293 [1] : vector<2x128xf32> to vector<2xf32>
      %776 = vector.shape_cast %775 : vector<2xf32> to vector<2x1xf32>
      %777 = vector.broadcast %776 : vector<2x1xf32> to vector<2x128xf32>
      %778 = arith.cmpf oeq, %415, %777 : vector<2x128xf32>
      %779 = arith.extui %778 : vector<2x128xi1> to vector<2x128xi32>
      %780 = arith.sitofp %779 : vector<2x128xi32> to vector<2x128xf32>
      %781 = arith.truncf %780 : vector<2x128xf32> to vector<2x128xbf16>
      %c0_294 = arith.constant 0 : index
      %c0_295 = arith.constant 0 : index
      %782 = vector.load %arg11[%c0_294, %c0_295] : memref<128x128xbf16, #tpu.memory_space<vmem>>, vector<128x128xbf16>
      %cst_296 = arith.constant dense<0.000000e+00> : vector<2x128xf32>
      %783 = tpu.matmul %781, %782, %cst_296 {dimension_numbers = #tpu.dot_dimension_numbers<[1], [0], [0], [1], [0, 0, 1, 1], [], []>} : vector<2x128xbf16>, vector<128x128xbf16>, vector<2x128xf32> -> vector<2x128xf32>
      %c0_297 = arith.constant 0 : index
      %c0_298 = arith.constant 0 : index
      %784 = vector.load %arg15[%c0_297, %c0_298] : memref<2x128xf32, #tpu.memory_space<vmem>>, vector<2x128xf32>
      tpu.vector_store %arg15[%c0_297, %c0_298], %783 {strides = array<i32>} : memref<2x128xf32, #tpu.memory_space<vmem>>, vector<2x128xf32>,
    } else {
    }
    %c0_143 = arith.constant 0 : index
    %c0_144 = arith.constant 0 : index
    %427 = vector.load %arg15[%c0_143, %c0_144] : memref<2x128xf32, #tpu.memory_space<vmem>>, vector<2x128xf32>
    %428 = arith.truncf %388 : vector<2x32xf32> to vector<2x32xbf16>
    %c0_145 = arith.constant 0 : index
    %c0_146 = arith.constant 0 : index
    %429 = vector.load %arg7[%c0_145, %c0_146] : memref<32x128xbf16, #tpu.memory_space<vmem>>, vector<32x128xbf16>
    %cst_147 = arith.constant dense<0.000000e+00> : vector<2x128xf32>
    %430 = tpu.matmul %428, %429, %cst_147 {dimension_numbers = #tpu.dot_dimension_numbers<[1], [0], [0], [1], [0, 0, 1, 1], [], []>} : vector<2x32xbf16>, vector<32x128xbf16>, vector<2x128xf32> -> vector<2x128xf32>
    %431 = arith.addf %427, %430 : vector<2x128xf32>
    %432 = arith.negf %431 : vector<2x128xf32>
    %433 = math.exp %432 : vector<2x128xf32>
    %cst_148 = arith.constant 1.000000e+00 : f32
    %434 = vector.broadcast %cst_148 : f32 to vector<2x128xf32>
    %435 = arith.addf %434, %433 : vector<2x128xf32>
    %436 = arith.divf %434, %435 : vector<2x128xf32>
    %437 = math.tanh %431 : vector<2x128xf32>
    %438 = vector.extract_strided_slice %436 {offsets = [0, 0], sizes = [2, 32], strides = [1, 1]} : vector<2x128xf32> to vector<2x32xf32>
    %439 = vector.extract_strided_slice %436 {offsets = [0, 32], sizes = [2, 32], strides = [1, 1]} : vector<2x128xf32> to vector<2x32xf32>
    %440 = vector.extract_strided_slice %437 {offsets = [0, 64], sizes = [2, 32], strides = [1, 1]} : vector<2x128xf32> to vector<2x32xf32>
    %441 = vector.extract_strided_slice %436 {offsets = [0, 96], sizes = [2, 32], strides = [1, 1]} : vector<2x128xf32> to vector<2x32xf32>
    %442 = arith.mulf %439, %386 : vector<2x32xf32>
    %443 = arith.mulf %438, %440 : vector<2x32xf32>
    %444 = arith.addf %442, %443 : vector<2x32xf32>
    %445 = math.tanh %444 : vector<2x32xf32>
    %446 = arith.mulf %441, %445 : vector<2x32xf32>
    %447 = arith.truncf %446 : vector<2x32xf32> to vector<2x32xbf16>
    %c0_149 = arith.constant 0 : index
    %c0_150 = arith.constant 0 : index
    %448 = vector.load %arg8[%c0_149, %c0_150] : memref<32x128xbf16, #tpu.memory_space<vmem>>, vector<32x128xbf16>
    %cst_151 = arith.constant dense<0.000000e+00> : vector<2x128xf32>
    %449 = tpu.matmul %447, %448, %cst_151 {dimension_numbers = #tpu.dot_dimension_numbers<[1], [0], [0], [1], [0, 0, 1, 1], [], []>} : vector<2x32xbf16>, vector<32x128xbf16>, vector<2x128xf32> -> vector<2x128xf32>
    %450 = arith.addf %449, %5 : vector<2x128xf32>
    %451 = arith.truncf %411 : vector<2x32xf32> to vector<2x32xbf16>
    %c0_152 = arith.constant 0 : index
    %c0_153 = arith.constant 0 : index
    %452 = vector.load %arg9[%c0_152, %c0_153] : memref<32x128xbf16, #tpu.memory_space<vmem>>, vector<32x128xbf16>
    %cst_154 = arith.constant dense<0.000000e+00> : vector<2x128xf32>
    %453 = tpu.matmul %451, %452, %cst_154 {dimension_numbers = #tpu.dot_dimension_numbers<[1], [0], [0], [1], [0, 0, 1, 1], [], []>} : vector<2x32xbf16>, vector<32x128xbf16>, vector<2x128xf32> -> vector<2x128xf32>
    %454 = arith.addf %450, %453 : vector<2x128xf32>
    %455 = arith.negf %454 : vector<2x128xf32>
    %456 = math.exp %455 : vector<2x128xf32>
    %cst_155 = arith.constant 1.000000e+00 : f32
    %457 = vector.broadcast %cst_155 : f32 to vector<2x128xf32>
    %458 = arith.addf %457, %456 : vector<2x128xf32>
    %459 = arith.divf %457, %458 : vector<2x128xf32>
    %460 = math.tanh %454 : vector<2x128xf32>
    %461 = vector.extract_strided_slice %459 {offsets = [0, 0], sizes = [2, 32], strides = [1, 1]} : vector<2x128xf32> to vector<2x32xf32>
    %462 = vector.extract_strided_slice %459 {offsets = [0, 32], sizes = [2, 32], strides = [1, 1]} : vector<2x128xf32> to vector<2x32xf32>
    %463 = vector.extract_strided_slice %460 {offsets = [0, 64], sizes = [2, 32], strides = [1, 1]} : vector<2x128xf32> to vector<2x32xf32>
    %464 = vector.extract_strided_slice %459 {offsets = [0, 96], sizes = [2, 32], strides = [1, 1]} : vector<2x128xf32> to vector<2x32xf32>
    %465 = arith.mulf %462, %409 : vector<2x32xf32>
    %466 = arith.mulf %461, %463 : vector<2x32xf32>
    %467 = arith.addf %465, %466 : vector<2x32xf32>
    %468 = math.tanh %467 : vector<2x32xf32>
    %469 = arith.mulf %464, %468 : vector<2x32xf32>
    %470 = arith.truncf %469 : vector<2x32xf32> to vector<2x32xbf16>
    %c0_156 = arith.constant 0 : index
    %c0_157 = arith.constant 0 : index
    %471 = vector.load %arg12[%c0_156, %c0_157] : memref<32x128xbf16, #tpu.memory_space<vmem>>, vector<32x128xbf16>
    %cst_158 = arith.constant dense<0.000000e+00> : vector<2x128xf32>
    %472 = tpu.matmul %470, %471, %cst_158 {dimension_numbers = #tpu.dot_dimension_numbers<[1], [0], [0], [1], [0, 0, 1, 1], [], []>} : vector<2x32xbf16>, vector<32x128xbf16>, vector<2x128xf32> -> vector<2x128xf32>
    %473 = arith.addf %472, %8 : vector<2x128xf32>
    %c2_159 = arith.constant 2 : index
    %c0_160 = arith.constant 0 : index
    %c0_161 = arith.constant 0 : index
    %474 = vector.load %arg14[%c2_159, %c0_160, %c0_161] : memref<8x2x128xf32, #tpu.memory_space<vmem>>, vector<1x2x128xf32>
    %475 = vector.shape_cast %474 : vector<1x2x128xf32> to vector<2x128xf32>
    %476 = vector.shape_cast %473 : vector<2x128xf32> to vector<1x2x128xf32>
    tpu.vector_store %arg14[%c2_159, %c0_160, %c0_161], %476 {strides = array<i32>} : memref<8x2x128xf32, #tpu.memory_space<vmem>>, vector<1x2x128xf32>,
    %c2_162 = arith.constant 2 : index
    %477 = memref.load %arg2[%c2_162] : memref<8xi32, #tpu.memory_space<smem>>
    %c0_i32_163 = arith.constant 0 : i32
    %478 = arith.cmpi sgt, %477, %c0_i32_163 : i32
    %479 = arith.extui %478 : i1 to i32
    %c0_i32_164 = arith.constant 0 : i32
    %480 = arith.cmpi ne, %479, %c0_i32_164 : i32
    scf.if %480 {
      %c2_293 = arith.constant 2 : index
      %c0_294 = arith.constant 0 : index
      %c0_295 = arith.constant 0 : index
      %775 = vector.load %arg1[%c2_293, %c0_294, %c0_295] : memref<8x2x128xf32, #tpu.memory_space<vmem>>, vector<1x2x128xf32>
      %776 = vector.shape_cast %775 : vector<1x2x128xf32> to vector<2x128xf32>
      %c0_296 = arith.constant 0 : index
      %c0_297 = arith.constant 0 : index
      %777 = vector.load %arg15[%c0_296, %c0_297] : memref<2x128xf32, #tpu.memory_space<vmem>>, vector<2x128xf32>
      tpu.vector_store %arg15[%c0_296, %c0_297], %776 {strides = array<i32>} : memref<2x128xf32, #tpu.memory_space<vmem>>, vector<2x128xf32>,
    } else {
    }
    %c2_165 = arith.constant 2 : index
    %481 = memref.load %arg2[%c2_165] : memref<8xi32, #tpu.memory_space<smem>>
    %c0_i32_166 = arith.constant 0 : i32
    %482 = arith.cmpi eq, %481, %c0_i32_166 : i32
    %483 = arith.extui %482 : i1 to i32
    %c0_i32_167 = arith.constant 0 : i32
    %484 = arith.cmpi ne, %483, %c0_i32_167 : i32
    scf.if %484 {
      %cst_293 = arith.constant dense<0xFF800000> : vector<2xf32>
      %775 = vector.multi_reduction <maximumf>, %473, %cst_293 [1] : vector<2x128xf32> to vector<2xf32>
      %776 = vector.shape_cast %775 : vector<2xf32> to vector<2x1xf32>
      %777 = vector.broadcast %776 : vector<2x1xf32> to vector<2x128xf32>
      %778 = arith.cmpf oeq, %473, %777 : vector<2x128xf32>
      %779 = arith.extui %778 : vector<2x128xi1> to vector<2x128xi32>
      %780 = arith.sitofp %779 : vector<2x128xi32> to vector<2x128xf32>
      %781 = arith.truncf %780 : vector<2x128xf32> to vector<2x128xbf16>
      %c0_294 = arith.constant 0 : index
      %c0_295 = arith.constant 0 : index
      %782 = vector.load %arg11[%c0_294, %c0_295] : memref<128x128xbf16, #tpu.memory_space<vmem>>, vector<128x128xbf16>
      %cst_296 = arith.constant dense<0.000000e+00> : vector<2x128xf32>
      %783 = tpu.matmul %781, %782, %cst_296 {dimension_numbers = #tpu.dot_dimension_numbers<[1], [0], [0], [1], [0, 0, 1, 1], [], []>} : vector<2x128xbf16>, vector<128x128xbf16>, vector<2x128xf32> -> vector<2x128xf32>
      %c0_297 = arith.constant 0 : index
      %c0_298 = arith.constant 0 : index
      %784 = vector.load %arg15[%c0_297, %c0_298] : memref<2x128xf32, #tpu.memory_space<vmem>>, vector<2x128xf32>
      tpu.vector_store %arg15[%c0_297, %c0_298], %783 {strides = array<i32>} : memref<2x128xf32, #tpu.memory_space<vmem>>, vector<2x128xf32>,
    } else {
    }
    %c0_168 = arith.constant 0 : index
    %c0_169 = arith.constant 0 : index
    %485 = vector.load %arg15[%c0_168, %c0_169] : memref<2x128xf32, #tpu.memory_space<vmem>>, vector<2x128xf32>
    %486 = arith.truncf %446 : vector<2x32xf32> to vector<2x32xbf16>
    %c0_170 = arith.constant 0 : index
    %c0_171 = arith.constant 0 : index
    %487 = vector.load %arg7[%c0_170, %c0_171] : memref<32x128xbf16, #tpu.memory_space<vmem>>, vector<32x128xbf16>
    %cst_172 = arith.constant dense<0.000000e+00> : vector<2x128xf32>
    %488 = tpu.matmul %486, %487, %cst_172 {dimension_numbers = #tpu.dot_dimension_numbers<[1], [0], [0], [1], [0, 0, 1, 1], [], []>} : vector<2x32xbf16>, vector<32x128xbf16>, vector<2x128xf32> -> vector<2x128xf32>
    %489 = arith.addf %485, %488 : vector<2x128xf32>
    %490 = arith.negf %489 : vector<2x128xf32>
    %491 = math.exp %490 : vector<2x128xf32>
    %cst_173 = arith.constant 1.000000e+00 : f32
    %492 = vector.broadcast %cst_173 : f32 to vector<2x128xf32>
    %493 = arith.addf %492, %491 : vector<2x128xf32>
    %494 = arith.divf %492, %493 : vector<2x128xf32>
    %495 = math.tanh %489 : vector<2x128xf32>
    %496 = vector.extract_strided_slice %494 {offsets = [0, 0], sizes = [2, 32], strides = [1, 1]} : vector<2x128xf32> to vector<2x32xf32>
    %497 = vector.extract_strided_slice %494 {offsets = [0, 32], sizes = [2, 32], strides = [1, 1]} : vector<2x128xf32> to vector<2x32xf32>
    %498 = vector.extract_strided_slice %495 {offsets = [0, 64], sizes = [2, 32], strides = [1, 1]} : vector<2x128xf32> to vector<2x32xf32>
    %499 = vector.extract_strided_slice %494 {offsets = [0, 96], sizes = [2, 32], strides = [1, 1]} : vector<2x128xf32> to vector<2x32xf32>
    %500 = arith.mulf %497, %444 : vector<2x32xf32>
    %501 = arith.mulf %496, %498 : vector<2x32xf32>
    %502 = arith.addf %500, %501 : vector<2x32xf32>
    %503 = math.tanh %502 : vector<2x32xf32>
    %504 = arith.mulf %499, %503 : vector<2x32xf32>
    %505 = arith.truncf %504 : vector<2x32xf32> to vector<2x32xbf16>
    %c0_174 = arith.constant 0 : index
    %c0_175 = arith.constant 0 : index
    %506 = vector.load %arg8[%c0_174, %c0_175] : memref<32x128xbf16, #tpu.memory_space<vmem>>, vector<32x128xbf16>
    %cst_176 = arith.constant dense<0.000000e+00> : vector<2x128xf32>
    %507 = tpu.matmul %505, %506, %cst_176 {dimension_numbers = #tpu.dot_dimension_numbers<[1], [0], [0], [1], [0, 0, 1, 1], [], []>} : vector<2x32xbf16>, vector<32x128xbf16>, vector<2x128xf32> -> vector<2x128xf32>
    %508 = arith.addf %507, %5 : vector<2x128xf32>
    %509 = arith.truncf %469 : vector<2x32xf32> to vector<2x32xbf16>
    %c0_177 = arith.constant 0 : index
    %c0_178 = arith.constant 0 : index
    %510 = vector.load %arg9[%c0_177, %c0_178] : memref<32x128xbf16, #tpu.memory_space<vmem>>, vector<32x128xbf16>
    %cst_179 = arith.constant dense<0.000000e+00> : vector<2x128xf32>
    %511 = tpu.matmul %509, %510, %cst_179 {dimension_numbers = #tpu.dot_dimension_numbers<[1], [0], [0], [1], [0, 0, 1, 1], [], []>} : vector<2x32xbf16>, vector<32x128xbf16>, vector<2x128xf32> -> vector<2x128xf32>
    %512 = arith.addf %508, %511 : vector<2x128xf32>
    %513 = arith.negf %512 : vector<2x128xf32>
    %514 = math.exp %513 : vector<2x128xf32>
    %cst_180 = arith.constant 1.000000e+00 : f32
    %515 = vector.broadcast %cst_180 : f32 to vector<2x128xf32>
    %516 = arith.addf %515, %514 : vector<2x128xf32>
    %517 = arith.divf %515, %516 : vector<2x128xf32>
    %518 = math.tanh %512 : vector<2x128xf32>
    %519 = vector.extract_strided_slice %517 {offsets = [0, 0], sizes = [2, 32], strides = [1, 1]} : vector<2x128xf32> to vector<2x32xf32>
    %520 = vector.extract_strided_slice %517 {offsets = [0, 32], sizes = [2, 32], strides = [1, 1]} : vector<2x128xf32> to vector<2x32xf32>
    %521 = vector.extract_strided_slice %518 {offsets = [0, 64], sizes = [2, 32], strides = [1, 1]} : vector<2x128xf32> to vector<2x32xf32>
    %522 = vector.extract_strided_slice %517 {offsets = [0, 96], sizes = [2, 32], strides = [1, 1]} : vector<2x128xf32> to vector<2x32xf32>
    %523 = arith.mulf %520, %467 : vector<2x32xf32>
    %524 = arith.mulf %519, %521 : vector<2x32xf32>
    %525 = arith.addf %523, %524 : vector<2x32xf32>
    %526 = math.tanh %525 : vector<2x32xf32>
    %527 = arith.mulf %522, %526 : vector<2x32xf32>
    %528 = arith.truncf %527 : vector<2x32xf32> to vector<2x32xbf16>
    %c0_181 = arith.constant 0 : index
    %c0_182 = arith.constant 0 : index
    %529 = vector.load %arg12[%c0_181, %c0_182] : memref<32x128xbf16, #tpu.memory_space<vmem>>, vector<32x128xbf16>
    %cst_183 = arith.constant dense<0.000000e+00> : vector<2x128xf32>
    %530 = tpu.matmul %528, %529, %cst_183 {dimension_numbers = #tpu.dot_dimension_numbers<[1], [0], [0], [1], [0, 0, 1, 1], [], []>} : vector<2x32xbf16>, vector<32x128xbf16>, vector<2x128xf32> -> vector<2x128xf32>
    %531 = arith.addf %530, %8 : vector<2x128xf32>
    %c3_184 = arith.constant 3 : index
    %c0_185 = arith.constant 0 : index
    %c0_186 = arith.constant 0 : index
    %532 = vector.load %arg14[%c3_184, %c0_185, %c0_186] : memref<8x2x128xf32, #tpu.memory_space<vmem>>, vector<1x2x128xf32>
    %533 = vector.shape_cast %532 : vector<1x2x128xf32> to vector<2x128xf32>
    %534 = vector.shape_cast %531 : vector<2x128xf32> to vector<1x2x128xf32>
    tpu.vector_store %arg14[%c3_184, %c0_185, %c0_186], %534 {strides = array<i32>} : memref<8x2x128xf32, #tpu.memory_space<vmem>>, vector<1x2x128xf32>,
    %c3_187 = arith.constant 3 : index
    %535 = memref.load %arg2[%c3_187] : memref<8xi32, #tpu.memory_space<smem>>
    %c0_i32_188 = arith.constant 0 : i32
    %536 = arith.cmpi sgt, %535, %c0_i32_188 : i32
    %537 = arith.extui %536 : i1 to i32
    %c0_i32_189 = arith.constant 0 : i32
    %538 = arith.cmpi ne, %537, %c0_i32_189 : i32
    scf.if %538 {
      %c3_293 = arith.constant 3 : index
      %c0_294 = arith.constant 0 : index
      %c0_295 = arith.constant 0 : index
      %775 = vector.load %arg1[%c3_293, %c0_294, %c0_295] : memref<8x2x128xf32, #tpu.memory_space<vmem>>, vector<1x2x128xf32>
      %776 = vector.shape_cast %775 : vector<1x2x128xf32> to vector<2x128xf32>
      %c0_296 = arith.constant 0 : index
      %c0_297 = arith.constant 0 : index
      %777 = vector.load %arg15[%c0_296, %c0_297] : memref<2x128xf32, #tpu.memory_space<vmem>>, vector<2x128xf32>
      tpu.vector_store %arg15[%c0_296, %c0_297], %776 {strides = array<i32>} : memref<2x128xf32, #tpu.memory_space<vmem>>, vector<2x128xf32>,
    } else {
    }
    %c3_190 = arith.constant 3 : index
    %539 = memref.load %arg2[%c3_190] : memref<8xi32, #tpu.memory_space<smem>>
    %c0_i32_191 = arith.constant 0 : i32
    %540 = arith.cmpi eq, %539, %c0_i32_191 : i32
    %541 = arith.extui %540 : i1 to i32
    %c0_i32_192 = arith.constant 0 : i32
    %542 = arith.cmpi ne, %541, %c0_i32_192 : i32
    scf.if %542 {
      %cst_293 = arith.constant dense<0xFF800000> : vector<2xf32>
      %775 = vector.multi_reduction <maximumf>, %531, %cst_293 [1] : vector<2x128xf32> to vector<2xf32>
      %776 = vector.shape_cast %775 : vector<2xf32> to vector<2x1xf32>
      %777 = vector.broadcast %776 : vector<2x1xf32> to vector<2x128xf32>
      %778 = arith.cmpf oeq, %531, %777 : vector<2x128xf32>
      %779 = arith.extui %778 : vector<2x128xi1> to vector<2x128xi32>
      %780 = arith.sitofp %779 : vector<2x128xi32> to vector<2x128xf32>
      %781 = arith.truncf %780 : vector<2x128xf32> to vector<2x128xbf16>
      %c0_294 = arith.constant 0 : index
      %c0_295 = arith.constant 0 : index
      %782 = vector.load %arg11[%c0_294, %c0_295] : memref<128x128xbf16, #tpu.memory_space<vmem>>, vector<128x128xbf16>
      %cst_296 = arith.constant dense<0.000000e+00> : vector<2x128xf32>
      %783 = tpu.matmul %781, %782, %cst_296 {dimension_numbers = #tpu.dot_dimension_numbers<[1], [0], [0], [1], [0, 0, 1, 1], [], []>} : vector<2x128xbf16>, vector<128x128xbf16>, vector<2x128xf32> -> vector<2x128xf32>
      %c0_297 = arith.constant 0 : index
      %c0_298 = arith.constant 0 : index
      %784 = vector.load %arg15[%c0_297, %c0_298] : memref<2x128xf32, #tpu.memory_space<vmem>>, vector<2x128xf32>
      tpu.vector_store %arg15[%c0_297, %c0_298], %783 {strides = array<i32>} : memref<2x128xf32, #tpu.memory_space<vmem>>, vector<2x128xf32>,
    } else {
    }
    %c0_193 = arith.constant 0 : index
    %c0_194 = arith.constant 0 : index
    %543 = vector.load %arg15[%c0_193, %c0_194] : memref<2x128xf32, #tpu.memory_space<vmem>>, vector<2x128xf32>
    %544 = arith.truncf %504 : vector<2x32xf32> to vector<2x32xbf16>
    %c0_195 = arith.constant 0 : index
    %c0_196 = arith.constant 0 : index
    %545 = vector.load %arg7[%c0_195, %c0_196] : memref<32x128xbf16, #tpu.memory_space<vmem>>, vector<32x128xbf16>
    %cst_197 = arith.constant dense<0.000000e+00> : vector<2x128xf32>
    %546 = tpu.matmul %544, %545, %cst_197 {dimension_numbers = #tpu.dot_dimension_numbers<[1], [0], [0], [1], [0, 0, 1, 1], [], []>} : vector<2x32xbf16>, vector<32x128xbf16>, vector<2x128xf32> -> vector<2x128xf32>
    %547 = arith.addf %543, %546 : vector<2x128xf32>
    %548 = arith.negf %547 : vector<2x128xf32>
    %549 = math.exp %548 : vector<2x128xf32>
    %cst_198 = arith.constant 1.000000e+00 : f32
    %550 = vector.broadcast %cst_198 : f32 to vector<2x128xf32>
    %551 = arith.addf %550, %549 : vector<2x128xf32>
    %552 = arith.divf %550, %551 : vector<2x128xf32>
    %553 = math.tanh %547 : vector<2x128xf32>
    %554 = vector.extract_strided_slice %552 {offsets = [0, 0], sizes = [2, 32], strides = [1, 1]} : vector<2x128xf32> to vector<2x32xf32>
    %555 = vector.extract_strided_slice %552 {offsets = [0, 32], sizes = [2, 32], strides = [1, 1]} : vector<2x128xf32> to vector<2x32xf32>
    %556 = vector.extract_strided_slice %553 {offsets = [0, 64], sizes = [2, 32], strides = [1, 1]} : vector<2x128xf32> to vector<2x32xf32>
    %557 = vector.extract_strided_slice %552 {offsets = [0, 96], sizes = [2, 32], strides = [1, 1]} : vector<2x128xf32> to vector<2x32xf32>
    %558 = arith.mulf %555, %502 : vector<2x32xf32>
    %559 = arith.mulf %554, %556 : vector<2x32xf32>
    %560 = arith.addf %558, %559 : vector<2x32xf32>
    %561 = math.tanh %560 : vector<2x32xf32>
    %562 = arith.mulf %557, %561 : vector<2x32xf32>
    %563 = arith.truncf %562 : vector<2x32xf32> to vector<2x32xbf16>
    %c0_199 = arith.constant 0 : index
    %c0_200 = arith.constant 0 : index
    %564 = vector.load %arg8[%c0_199, %c0_200] : memref<32x128xbf16, #tpu.memory_space<vmem>>, vector<32x128xbf16>
    %cst_201 = arith.constant dense<0.000000e+00> : vector<2x128xf32>
    %565 = tpu.matmul %563, %564, %cst_201 {dimension_numbers = #tpu.dot_dimension_numbers<[1], [0], [0], [1], [0, 0, 1, 1], [], []>} : vector<2x32xbf16>, vector<32x128xbf16>, vector<2x128xf32> -> vector<2x128xf32>
    %566 = arith.addf %565, %5 : vector<2x128xf32>
    %567 = arith.truncf %527 : vector<2x32xf32> to vector<2x32xbf16>
    %c0_202 = arith.constant 0 : index
    %c0_203 = arith.constant 0 : index
    %568 = vector.load %arg9[%c0_202, %c0_203] : memref<32x128xbf16, #tpu.memory_space<vmem>>, vector<32x128xbf16>
    %cst_204 = arith.constant dense<0.000000e+00> : vector<2x128xf32>
    %569 = tpu.matmul %567, %568, %cst_204 {dimension_numbers = #tpu.dot_dimension_numbers<[1], [0], [0], [1], [0, 0, 1, 1], [], []>} : vector<2x32xbf16>, vector<32x128xbf16>, vector<2x128xf32> -> vector<2x128xf32>
    %570 = arith.addf %566, %569 : vector<2x128xf32>
    %571 = arith.negf %570 : vector<2x128xf32>
    %572 = math.exp %571 : vector<2x128xf32>
    %cst_205 = arith.constant 1.000000e+00 : f32
    %573 = vector.broadcast %cst_205 : f32 to vector<2x128xf32>
    %574 = arith.addf %573, %572 : vector<2x128xf32>
    %575 = arith.divf %573, %574 : vector<2x128xf32>
    %576 = math.tanh %570 : vector<2x128xf32>
    %577 = vector.extract_strided_slice %575 {offsets = [0, 0], sizes = [2, 32], strides = [1, 1]} : vector<2x128xf32> to vector<2x32xf32>
    %578 = vector.extract_strided_slice %575 {offsets = [0, 32], sizes = [2, 32], strides = [1, 1]} : vector<2x128xf32> to vector<2x32xf32>
    %579 = vector.extract_strided_slice %576 {offsets = [0, 64], sizes = [2, 32], strides = [1, 1]} : vector<2x128xf32> to vector<2x32xf32>
    %580 = vector.extract_strided_slice %575 {offsets = [0, 96], sizes = [2, 32], strides = [1, 1]} : vector<2x128xf32> to vector<2x32xf32>
    %581 = arith.mulf %578, %525 : vector<2x32xf32>
    %582 = arith.mulf %577, %579 : vector<2x32xf32>
    %583 = arith.addf %581, %582 : vector<2x32xf32>
    %584 = math.tanh %583 : vector<2x32xf32>
    %585 = arith.mulf %580, %584 : vector<2x32xf32>
    %586 = arith.truncf %585 : vector<2x32xf32> to vector<2x32xbf16>
    %c0_206 = arith.constant 0 : index
    %c0_207 = arith.constant 0 : index
    %587 = vector.load %arg12[%c0_206, %c0_207] : memref<32x128xbf16, #tpu.memory_space<vmem>>, vector<32x128xbf16>
    %cst_208 = arith.constant dense<0.000000e+00> : vector<2x128xf32>
    %588 = tpu.matmul %586, %587, %cst_208 {dimension_numbers = #tpu.dot_dimension_numbers<[1], [0], [0], [1], [0, 0, 1, 1], [], []>} : vector<2x32xbf16>, vector<32x128xbf16>, vector<2x128xf32> -> vector<2x128xf32>
    %589 = arith.addf %588, %8 : vector<2x128xf32>
    %c4_209 = arith.constant 4 : index
    %c0_210 = arith.constant 0 : index
    %c0_211 = arith.constant 0 : index
    %590 = vector.load %arg14[%c4_209, %c0_210, %c0_211] : memref<8x2x128xf32, #tpu.memory_space<vmem>>, vector<1x2x128xf32>
    %591 = vector.shape_cast %590 : vector<1x2x128xf32> to vector<2x128xf32>
    %592 = vector.shape_cast %589 : vector<2x128xf32> to vector<1x2x128xf32>
    tpu.vector_store %arg14[%c4_209, %c0_210, %c0_211], %592 {strides = array<i32>} : memref<8x2x128xf32, #tpu.memory_space<vmem>>, vector<1x2x128xf32>,
    %c4_212 = arith.constant 4 : index
    %593 = memref.load %arg2[%c4_212] : memref<8xi32, #tpu.memory_space<smem>>
    %c0_i32_213 = arith.constant 0 : i32
    %594 = arith.cmpi sgt, %593, %c0_i32_213 : i32
    %595 = arith.extui %594 : i1 to i32
    %c0_i32_214 = arith.constant 0 : i32
    %596 = arith.cmpi ne, %595, %c0_i32_214 : i32
    scf.if %596 {
      %c4_293 = arith.constant 4 : index
      %c0_294 = arith.constant 0 : index
      %c0_295 = arith.constant 0 : index
      %775 = vector.load %arg1[%c4_293, %c0_294, %c0_295] : memref<8x2x128xf32, #tpu.memory_space<vmem>>, vector<1x2x128xf32>
      %776 = vector.shape_cast %775 : vector<1x2x128xf32> to vector<2x128xf32>
      %c0_296 = arith.constant 0 : index
      %c0_297 = arith.constant 0 : index
      %777 = vector.load %arg15[%c0_296, %c0_297] : memref<2x128xf32, #tpu.memory_space<vmem>>, vector<2x128xf32>
      tpu.vector_store %arg15[%c0_296, %c0_297], %776 {strides = array<i32>} : memref<2x128xf32, #tpu.memory_space<vmem>>, vector<2x128xf32>,
    } else {
    }
    %c4_215 = arith.constant 4 : index
    %597 = memref.load %arg2[%c4_215] : memref<8xi32, #tpu.memory_space<smem>>
    %c0_i32_216 = arith.constant 0 : i32
    %598 = arith.cmpi eq, %597, %c0_i32_216 : i32
    %599 = arith.extui %598 : i1 to i32
    %c0_i32_217 = arith.constant 0 : i32
    %600 = arith.cmpi ne, %599, %c0_i32_217 : i32
    scf.if %600 {
      %cst_293 = arith.constant dense<0xFF800000> : vector<2xf32>
      %775 = vector.multi_reduction <maximumf>, %589, %cst_293 [1] : vector<2x128xf32> to vector<2xf32>
      %776 = vector.shape_cast %775 : vector<2xf32> to vector<2x1xf32>
      %777 = vector.broadcast %776 : vector<2x1xf32> to vector<2x128xf32>
      %778 = arith.cmpf oeq, %589, %777 : vector<2x128xf32>
      %779 = arith.extui %778 : vector<2x128xi1> to vector<2x128xi32>
      %780 = arith.sitofp %779 : vector<2x128xi32> to vector<2x128xf32>
      %781 = arith.truncf %780 : vector<2x128xf32> to vector<2x128xbf16>
      %c0_294 = arith.constant 0 : index
      %c0_295 = arith.constant 0 : index
      %782 = vector.load %arg11[%c0_294, %c0_295] : memref<128x128xbf16, #tpu.memory_space<vmem>>, vector<128x128xbf16>
      %cst_296 = arith.constant dense<0.000000e+00> : vector<2x128xf32>
      %783 = tpu.matmul %781, %782, %cst_296 {dimension_numbers = #tpu.dot_dimension_numbers<[1], [0], [0], [1], [0, 0, 1, 1], [], []>} : vector<2x128xbf16>, vector<128x128xbf16>, vector<2x128xf32> -> vector<2x128xf32>
      %c0_297 = arith.constant 0 : index
      %c0_298 = arith.constant 0 : index
      %784 = vector.load %arg15[%c0_297, %c0_298] : memref<2x128xf32, #tpu.memory_space<vmem>>, vector<2x128xf32>
      tpu.vector_store %arg15[%c0_297, %c0_298], %783 {strides = array<i32>} : memref<2x128xf32, #tpu.memory_space<vmem>>, vector<2x128xf32>,
    } else {
    }
    %c0_218 = arith.constant 0 : index
    %c0_219 = arith.constant 0 : index
    %601 = vector.load %arg15[%c0_218, %c0_219] : memref<2x128xf32, #tpu.memory_space<vmem>>, vector<2x128xf32>
    %602 = arith.truncf %562 : vector<2x32xf32> to vector<2x32xbf16>
    %c0_220 = arith.constant 0 : index
    %c0_221 = arith.constant 0 : index
    %603 = vector.load %arg7[%c0_220, %c0_221] : memref<32x128xbf16, #tpu.memory_space<vmem>>, vector<32x128xbf16>
    %cst_222 = arith.constant dense<0.000000e+00> : vector<2x128xf32>
    %604 = tpu.matmul %602, %603, %cst_222 {dimension_numbers = #tpu.dot_dimension_numbers<[1], [0], [0], [1], [0, 0, 1, 1], [], []>} : vector<2x32xbf16>, vector<32x128xbf16>, vector<2x128xf32> -> vector<2x128xf32>
    %605 = arith.addf %601, %604 : vector<2x128xf32>
    %606 = arith.negf %605 : vector<2x128xf32>
    %607 = math.exp %606 : vector<2x128xf32>
    %cst_223 = arith.constant 1.000000e+00 : f32
    %608 = vector.broadcast %cst_223 : f32 to vector<2x128xf32>
    %609 = arith.addf %608, %607 : vector<2x128xf32>
    %610 = arith.divf %608, %609 : vector<2x128xf32>
    %611 = math.tanh %605 : vector<2x128xf32>
    %612 = vector.extract_strided_slice %610 {offsets = [0, 0], sizes = [2, 32], strides = [1, 1]} : vector<2x128xf32> to vector<2x32xf32>
    %613 = vector.extract_strided_slice %610 {offsets = [0, 32], sizes = [2, 32], strides = [1, 1]} : vector<2x128xf32> to vector<2x32xf32>
    %614 = vector.extract_strided_slice %611 {offsets = [0, 64], sizes = [2, 32], strides = [1, 1]} : vector<2x128xf32> to vector<2x32xf32>
    %615 = vector.extract_strided_slice %610 {offsets = [0, 96], sizes = [2, 32], strides = [1, 1]} : vector<2x128xf32> to vector<2x32xf32>
    %616 = arith.mulf %613, %560 : vector<2x32xf32>
    %617 = arith.mulf %612, %614 : vector<2x32xf32>
    %618 = arith.addf %616, %617 : vector<2x32xf32>
    %619 = math.tanh %618 : vector<2x32xf32>
    %620 = arith.mulf %615, %619 : vector<2x32xf32>
    %621 = arith.truncf %620 : vector<2x32xf32> to vector<2x32xbf16>
    %c0_224 = arith.constant 0 : index
    %c0_225 = arith.constant 0 : index
    %622 = vector.load %arg8[%c0_224, %c0_225] : memref<32x128xbf16, #tpu.memory_space<vmem>>, vector<32x128xbf16>
    %cst_226 = arith.constant dense<0.000000e+00> : vector<2x128xf32>
    %623 = tpu.matmul %621, %622, %cst_226 {dimension_numbers = #tpu.dot_dimension_numbers<[1], [0], [0], [1], [0, 0, 1, 1], [], []>} : vector<2x32xbf16>, vector<32x128xbf16>, vector<2x128xf32> -> vector<2x128xf32>
    %624 = arith.addf %623, %5 : vector<2x128xf32>
    %625 = arith.truncf %585 : vector<2x32xf32> to vector<2x32xbf16>
    %c0_227 = arith.constant 0 : index
    %c0_228 = arith.constant 0 : index
    %626 = vector.load %arg9[%c0_227, %c0_228] : memref<32x128xbf16, #tpu.memory_space<vmem>>, vector<32x128xbf16>
    %cst_229 = arith.constant dense<0.000000e+00> : vector<2x128xf32>
    %627 = tpu.matmul %625, %626, %cst_229 {dimension_numbers = #tpu.dot_dimension_numbers<[1], [0], [0], [1], [0, 0, 1, 1], [], []>} : vector<2x32xbf16>, vector<32x128xbf16>, vector<2x128xf32> -> vector<2x128xf32>
    %628 = arith.addf %624, %627 : vector<2x128xf32>
    %629 = arith.negf %628 : vector<2x128xf32>
    %630 = math.exp %629 : vector<2x128xf32>
    %cst_230 = arith.constant 1.000000e+00 : f32
    %631 = vector.broadcast %cst_230 : f32 to vector<2x128xf32>
    %632 = arith.addf %631, %630 : vector<2x128xf32>
    %633 = arith.divf %631, %632 : vector<2x128xf32>
    %634 = math.tanh %628 : vector<2x128xf32>
    %635 = vector.extract_strided_slice %633 {offsets = [0, 0], sizes = [2, 32], strides = [1, 1]} : vector<2x128xf32> to vector<2x32xf32>
    %636 = vector.extract_strided_slice %633 {offsets = [0, 32], sizes = [2, 32], strides = [1, 1]} : vector<2x128xf32> to vector<2x32xf32>
    %637 = vector.extract_strided_slice %634 {offsets = [0, 64], sizes = [2, 32], strides = [1, 1]} : vector<2x128xf32> to vector<2x32xf32>
    %638 = vector.extract_strided_slice %633 {offsets = [0, 96], sizes = [2, 32], strides = [1, 1]} : vector<2x128xf32> to vector<2x32xf32>
    %639 = arith.mulf %636, %583 : vector<2x32xf32>
    %640 = arith.mulf %635, %637 : vector<2x32xf32>
    %641 = arith.addf %639, %640 : vector<2x32xf32>
    %642 = math.tanh %641 : vector<2x32xf32>
    %643 = arith.mulf %638, %642 : vector<2x32xf32>
    %644 = arith.truncf %643 : vector<2x32xf32> to vector<2x32xbf16>
    %c0_231 = arith.constant 0 : index
    %c0_232 = arith.constant 0 : index
    %645 = vector.load %arg12[%c0_231, %c0_232] : memref<32x128xbf16, #tpu.memory_space<vmem>>, vector<32x128xbf16>
    %cst_233 = arith.constant dense<0.000000e+00> : vector<2x128xf32>
    %646 = tpu.matmul %644, %645, %cst_233 {dimension_numbers = #tpu.dot_dimension_numbers<[1], [0], [0], [1], [0, 0, 1, 1], [], []>} : vector<2x32xbf16>, vector<32x128xbf16>, vector<2x128xf32> -> vector<2x128xf32>
    %647 = arith.addf %646, %8 : vector<2x128xf32>
    %c5_234 = arith.constant 5 : index
    %c0_235 = arith.constant 0 : index
    %c0_236 = arith.constant 0 : index
    %648 = vector.load %arg14[%c5_234, %c0_235, %c0_236] : memref<8x2x128xf32, #tpu.memory_space<vmem>>, vector<1x2x128xf32>
    %649 = vector.shape_cast %648 : vector<1x2x128xf32> to vector<2x128xf32>
    %650 = vector.shape_cast %647 : vector<2x128xf32> to vector<1x2x128xf32>
    tpu.vector_store %arg14[%c5_234, %c0_235, %c0_236], %650 {strides = array<i32>} : memref<8x2x128xf32, #tpu.memory_space<vmem>>, vector<1x2x128xf32>,
    %c5_237 = arith.constant 5 : index
    %651 = memref.load %arg2[%c5_237] : memref<8xi32, #tpu.memory_space<smem>>
    %c0_i32_238 = arith.constant 0 : i32
    %652 = arith.cmpi sgt, %651, %c0_i32_238 : i32
    %653 = arith.extui %652 : i1 to i32
    %c0_i32_239 = arith.constant 0 : i32
    %654 = arith.cmpi ne, %653, %c0_i32_239 : i32
    scf.if %654 {
      %c5_293 = arith.constant 5 : index
      %c0_294 = arith.constant 0 : index
      %c0_295 = arith.constant 0 : index
      %775 = vector.load %arg1[%c5_293, %c0_294, %c0_295] : memref<8x2x128xf32, #tpu.memory_space<vmem>>, vector<1x2x128xf32>
      %776 = vector.shape_cast %775 : vector<1x2x128xf32> to vector<2x128xf32>
      %c0_296 = arith.constant 0 : index
      %c0_297 = arith.constant 0 : index
      %777 = vector.load %arg15[%c0_296, %c0_297] : memref<2x128xf32, #tpu.memory_space<vmem>>, vector<2x128xf32>
      tpu.vector_store %arg15[%c0_296, %c0_297], %776 {strides = array<i32>} : memref<2x128xf32, #tpu.memory_space<vmem>>, vector<2x128xf32>,
    } else {
    }
    %c5_240 = arith.constant 5 : index
    %655 = memref.load %arg2[%c5_240] : memref<8xi32, #tpu.memory_space<smem>>
    %c0_i32_241 = arith.constant 0 : i32
    %656 = arith.cmpi eq, %655, %c0_i32_241 : i32
    %657 = arith.extui %656 : i1 to i32
    %c0_i32_242 = arith.constant 0 : i32
    %658 = arith.cmpi ne, %657, %c0_i32_242 : i32
    scf.if %658 {
      %cst_293 = arith.constant dense<0xFF800000> : vector<2xf32>
      %775 = vector.multi_reduction <maximumf>, %647, %cst_293 [1] : vector<2x128xf32> to vector<2xf32>
      %776 = vector.shape_cast %775 : vector<2xf32> to vector<2x1xf32>
      %777 = vector.broadcast %776 : vector<2x1xf32> to vector<2x128xf32>
      %778 = arith.cmpf oeq, %647, %777 : vector<2x128xf32>
      %779 = arith.extui %778 : vector<2x128xi1> to vector<2x128xi32>
      %780 = arith.sitofp %779 : vector<2x128xi32> to vector<2x128xf32>
      %781 = arith.truncf %780 : vector<2x128xf32> to vector<2x128xbf16>
      %c0_294 = arith.constant 0 : index
      %c0_295 = arith.constant 0 : index
      %782 = vector.load %arg11[%c0_294, %c0_295] : memref<128x128xbf16, #tpu.memory_space<vmem>>, vector<128x128xbf16>
      %cst_296 = arith.constant dense<0.000000e+00> : vector<2x128xf32>
      %783 = tpu.matmul %781, %782, %cst_296 {dimension_numbers = #tpu.dot_dimension_numbers<[1], [0], [0], [1], [0, 0, 1, 1], [], []>} : vector<2x128xbf16>, vector<128x128xbf16>, vector<2x128xf32> -> vector<2x128xf32>
      %c0_297 = arith.constant 0 : index
      %c0_298 = arith.constant 0 : index
      %784 = vector.load %arg15[%c0_297, %c0_298] : memref<2x128xf32, #tpu.memory_space<vmem>>, vector<2x128xf32>
      tpu.vector_store %arg15[%c0_297, %c0_298], %783 {strides = array<i32>} : memref<2x128xf32, #tpu.memory_space<vmem>>, vector<2x128xf32>,
    } else {
    }
    %c0_243 = arith.constant 0 : index
    %c0_244 = arith.constant 0 : index
    %659 = vector.load %arg15[%c0_243, %c0_244] : memref<2x128xf32, #tpu.memory_space<vmem>>, vector<2x128xf32>
    %660 = arith.truncf %620 : vector<2x32xf32> to vector<2x32xbf16>
    %c0_245 = arith.constant 0 : index
    %c0_246 = arith.constant 0 : index
    %661 = vector.load %arg7[%c0_245, %c0_246] : memref<32x128xbf16, #tpu.memory_space<vmem>>, vector<32x128xbf16>
    %cst_247 = arith.constant dense<0.000000e+00> : vector<2x128xf32>
    %662 = tpu.matmul %660, %661, %cst_247 {dimension_numbers = #tpu.dot_dimension_numbers<[1], [0], [0], [1], [0, 0, 1, 1], [], []>} : vector<2x32xbf16>, vector<32x128xbf16>, vector<2x128xf32> -> vector<2x128xf32>
    %663 = arith.addf %659, %662 : vector<2x128xf32>
    %664 = arith.negf %663 : vector<2x128xf32>
    %665 = math.exp %664 : vector<2x128xf32>
    %cst_248 = arith.constant 1.000000e+00 : f32
    %666 = vector.broadcast %cst_248 : f32 to vector<2x128xf32>
    %667 = arith.addf %666, %665 : vector<2x128xf32>
    %668 = arith.divf %666, %667 : vector<2x128xf32>
    %669 = math.tanh %663 : vector<2x128xf32>
    %670 = vector.extract_strided_slice %668 {offsets = [0, 0], sizes = [2, 32], strides = [1, 1]} : vector<2x128xf32> to vector<2x32xf32>
    %671 = vector.extract_strided_slice %668 {offsets = [0, 32], sizes = [2, 32], strides = [1, 1]} : vector<2x128xf32> to vector<2x32xf32>
    %672 = vector.extract_strided_slice %669 {offsets = [0, 64], sizes = [2, 32], strides = [1, 1]} : vector<2x128xf32> to vector<2x32xf32>
    %673 = vector.extract_strided_slice %668 {offsets = [0, 96], sizes = [2, 32], strides = [1, 1]} : vector<2x128xf32> to vector<2x32xf32>
    %674 = arith.mulf %671, %618 : vector<2x32xf32>
    %675 = arith.mulf %670, %672 : vector<2x32xf32>
    %676 = arith.addf %674, %675 : vector<2x32xf32>
    %677 = math.tanh %676 : vector<2x32xf32>
    %678 = arith.mulf %673, %677 : vector<2x32xf32>
    %679 = arith.truncf %678 : vector<2x32xf32> to vector<2x32xbf16>
    %c0_249 = arith.constant 0 : index
    %c0_250 = arith.constant 0 : index
    %680 = vector.load %arg8[%c0_249, %c0_250] : memref<32x128xbf16, #tpu.memory_space<vmem>>, vector<32x128xbf16>
    %cst_251 = arith.constant dense<0.000000e+00> : vector<2x128xf32>
    %681 = tpu.matmul %679, %680, %cst_251 {dimension_numbers = #tpu.dot_dimension_numbers<[1], [0], [0], [1], [0, 0, 1, 1], [], []>} : vector<2x32xbf16>, vector<32x128xbf16>, vector<2x128xf32> -> vector<2x128xf32>
    %682 = arith.addf %681, %5 : vector<2x128xf32>
    %683 = arith.truncf %643 : vector<2x32xf32> to vector<2x32xbf16>
    %c0_252 = arith.constant 0 : index
    %c0_253 = arith.constant 0 : index
    %684 = vector.load %arg9[%c0_252, %c0_253] : memref<32x128xbf16, #tpu.memory_space<vmem>>, vector<32x128xbf16>
    %cst_254 = arith.constant dense<0.000000e+00> : vector<2x128xf32>
    %685 = tpu.matmul %683, %684, %cst_254 {dimension_numbers = #tpu.dot_dimension_numbers<[1], [0], [0], [1], [0, 0, 1, 1], [], []>} : vector<2x32xbf16>, vector<32x128xbf16>, vector<2x128xf32> -> vector<2x128xf32>
    %686 = arith.addf %682, %685 : vector<2x128xf32>
    %687 = arith.negf %686 : vector<2x128xf32>
    %688 = math.exp %687 : vector<2x128xf32>
    %cst_255 = arith.constant 1.000000e+00 : f32
    %689 = vector.broadcast %cst_255 : f32 to vector<2x128xf32>
    %690 = arith.addf %689, %688 : vector<2x128xf32>
    %691 = arith.divf %689, %690 : vector<2x128xf32>
    %692 = math.tanh %686 : vector<2x128xf32>
    %693 = vector.extract_strided_slice %691 {offsets = [0, 0], sizes = [2, 32], strides = [1, 1]} : vector<2x128xf32> to vector<2x32xf32>
    %694 = vector.extract_strided_slice %691 {offsets = [0, 32], sizes = [2, 32], strides = [1, 1]} : vector<2x128xf32> to vector<2x32xf32>
    %695 = vector.extract_strided_slice %692 {offsets = [0, 64], sizes = [2, 32], strides = [1, 1]} : vector<2x128xf32> to vector<2x32xf32>
    %696 = vector.extract_strided_slice %691 {offsets = [0, 96], sizes = [2, 32], strides = [1, 1]} : vector<2x128xf32> to vector<2x32xf32>
    %697 = arith.mulf %694, %641 : vector<2x32xf32>
    %698 = arith.mulf %693, %695 : vector<2x32xf32>
    %699 = arith.addf %697, %698 : vector<2x32xf32>
    %700 = math.tanh %699 : vector<2x32xf32>
    %701 = arith.mulf %696, %700 : vector<2x32xf32>
    %702 = arith.truncf %701 : vector<2x32xf32> to vector<2x32xbf16>
    %c0_256 = arith.constant 0 : index
    %c0_257 = arith.constant 0 : index
    %703 = vector.load %arg12[%c0_256, %c0_257] : memref<32x128xbf16, #tpu.memory_space<vmem>>, vector<32x128xbf16>
    %cst_258 = arith.constant dense<0.000000e+00> : vector<2x128xf32>
    %704 = tpu.matmul %702, %703, %cst_258 {dimension_numbers = #tpu.dot_dimension_numbers<[1], [0], [0], [1], [0, 0, 1, 1], [], []>} : vector<2x32xbf16>, vector<32x128xbf16>, vector<2x128xf32> -> vector<2x128xf32>
    %705 = arith.addf %704, %8 : vector<2x128xf32>
    %c6_259 = arith.constant 6 : index
    %c0_260 = arith.constant 0 : index
    %c0_261 = arith.constant 0 : index
    %706 = vector.load %arg14[%c6_259, %c0_260, %c0_261] : memref<8x2x128xf32, #tpu.memory_space<vmem>>, vector<1x2x128xf32>
    %707 = vector.shape_cast %706 : vector<1x2x128xf32> to vector<2x128xf32>
    %708 = vector.shape_cast %705 : vector<2x128xf32> to vector<1x2x128xf32>
    tpu.vector_store %arg14[%c6_259, %c0_260, %c0_261], %708 {strides = array<i32>} : memref<8x2x128xf32, #tpu.memory_space<vmem>>, vector<1x2x128xf32>,
    %c6_262 = arith.constant 6 : index
    %709 = memref.load %arg2[%c6_262] : memref<8xi32, #tpu.memory_space<smem>>
    %c0_i32_263 = arith.constant 0 : i32
    %710 = arith.cmpi sgt, %709, %c0_i32_263 : i32
    %711 = arith.extui %710 : i1 to i32
    %c0_i32_264 = arith.constant 0 : i32
    %712 = arith.cmpi ne, %711, %c0_i32_264 : i32
    scf.if %712 {
      %c6_293 = arith.constant 6 : index
      %c0_294 = arith.constant 0 : index
      %c0_295 = arith.constant 0 : index
      %775 = vector.load %arg1[%c6_293, %c0_294, %c0_295] : memref<8x2x128xf32, #tpu.memory_space<vmem>>, vector<1x2x128xf32>
      %776 = vector.shape_cast %775 : vector<1x2x128xf32> to vector<2x128xf32>
      %c0_296 = arith.constant 0 : index
      %c0_297 = arith.constant 0 : index
      %777 = vector.load %arg15[%c0_296, %c0_297] : memref<2x128xf32, #tpu.memory_space<vmem>>, vector<2x128xf32>
      tpu.vector_store %arg15[%c0_296, %c0_297], %776 {strides = array<i32>} : memref<2x128xf32, #tpu.memory_space<vmem>>, vector<2x128xf32>,
    } else {
    }
    %c6_265 = arith.constant 6 : index
    %713 = memref.load %arg2[%c6_265] : memref<8xi32, #tpu.memory_space<smem>>
    %c0_i32_266 = arith.constant 0 : i32
    %714 = arith.cmpi eq, %713, %c0_i32_266 : i32
    %715 = arith.extui %714 : i1 to i32
    %c0_i32_267 = arith.constant 0 : i32
    %716 = arith.cmpi ne, %715, %c0_i32_267 : i32
    scf.if %716 {
      %cst_293 = arith.constant dense<0xFF800000> : vector<2xf32>
      %775 = vector.multi_reduction <maximumf>, %705, %cst_293 [1] : vector<2x128xf32> to vector<2xf32>
      %776 = vector.shape_cast %775 : vector<2xf32> to vector<2x1xf32>
      %777 = vector.broadcast %776 : vector<2x1xf32> to vector<2x128xf32>
      %778 = arith.cmpf oeq, %705, %777 : vector<2x128xf32>
      %779 = arith.extui %778 : vector<2x128xi1> to vector<2x128xi32>
      %780 = arith.sitofp %779 : vector<2x128xi32> to vector<2x128xf32>
      %781 = arith.truncf %780 : vector<2x128xf32> to vector<2x128xbf16>
      %c0_294 = arith.constant 0 : index
      %c0_295 = arith.constant 0 : index
      %782 = vector.load %arg11[%c0_294, %c0_295] : memref<128x128xbf16, #tpu.memory_space<vmem>>, vector<128x128xbf16>
      %cst_296 = arith.constant dense<0.000000e+00> : vector<2x128xf32>
      %783 = tpu.matmul %781, %782, %cst_296 {dimension_numbers = #tpu.dot_dimension_numbers<[1], [0], [0], [1], [0, 0, 1, 1], [], []>} : vector<2x128xbf16>, vector<128x128xbf16>, vector<2x128xf32> -> vector<2x128xf32>
      %c0_297 = arith.constant 0 : index
      %c0_298 = arith.constant 0 : index
      %784 = vector.load %arg15[%c0_297, %c0_298] : memref<2x128xf32, #tpu.memory_space<vmem>>, vector<2x128xf32>
      tpu.vector_store %arg15[%c0_297, %c0_298], %783 {strides = array<i32>} : memref<2x128xf32, #tpu.memory_space<vmem>>, vector<2x128xf32>,
    } else {
    }
    %c0_268 = arith.constant 0 : index
    %c0_269 = arith.constant 0 : index
    %717 = vector.load %arg15[%c0_268, %c0_269] : memref<2x128xf32, #tpu.memory_space<vmem>>, vector<2x128xf32>
    %718 = arith.truncf %678 : vector<2x32xf32> to vector<2x32xbf16>
    %c0_270 = arith.constant 0 : index
    %c0_271 = arith.constant 0 : index
    %719 = vector.load %arg7[%c0_270, %c0_271] : memref<32x128xbf16, #tpu.memory_space<vmem>>, vector<32x128xbf16>
    %cst_272 = arith.constant dense<0.000000e+00> : vector<2x128xf32>
    %720 = tpu.matmul %718, %719, %cst_272 {dimension_numbers = #tpu.dot_dimension_numbers<[1], [0], [0], [1], [0, 0, 1, 1], [], []>} : vector<2x32xbf16>, vector<32x128xbf16>, vector<2x128xf32> -> vector<2x128xf32>
    %721 = arith.addf %717, %720 : vector<2x128xf32>
    %722 = arith.negf %721 : vector<2x128xf32>
    %723 = math.exp %722 : vector<2x128xf32>
    %cst_273 = arith.constant 1.000000e+00 : f32
    %724 = vector.broadcast %cst_273 : f32 to vector<2x128xf32>
    %725 = arith.addf %724, %723 : vector<2x128xf32>
    %726 = arith.divf %724, %725 : vector<2x128xf32>
    %727 = math.tanh %721 : vector<2x128xf32>
    %728 = vector.extract_strided_slice %726 {offsets = [0, 0], sizes = [2, 32], strides = [1, 1]} : vector<2x128xf32> to vector<2x32xf32>
    %729 = vector.extract_strided_slice %726 {offsets = [0, 32], sizes = [2, 32], strides = [1, 1]} : vector<2x128xf32> to vector<2x32xf32>
    %730 = vector.extract_strided_slice %727 {offsets = [0, 64], sizes = [2, 32], strides = [1, 1]} : vector<2x128xf32> to vector<2x32xf32>
    %731 = vector.extract_strided_slice %726 {offsets = [0, 96], sizes = [2, 32], strides = [1, 1]} : vector<2x128xf32> to vector<2x32xf32>
    %732 = arith.mulf %729, %676 : vector<2x32xf32>
    %733 = arith.mulf %728, %730 : vector<2x32xf32>
    %734 = arith.addf %732, %733 : vector<2x32xf32>
    %735 = math.tanh %734 : vector<2x32xf32>
    %736 = arith.mulf %731, %735 : vector<2x32xf32>
    %737 = arith.truncf %736 : vector<2x32xf32> to vector<2x32xbf16>
    %c0_274 = arith.constant 0 : index
    %c0_275 = arith.constant 0 : index
    %738 = vector.load %arg8[%c0_274, %c0_275] : memref<32x128xbf16, #tpu.memory_space<vmem>>, vector<32x128xbf16>
    %cst_276 = arith.constant dense<0.000000e+00> : vector<2x128xf32>
    %739 = tpu.matmul %737, %738, %cst_276 {dimension_numbers = #tpu.dot_dimension_numbers<[1], [0], [0], [1], [0, 0, 1, 1], [], []>} : vector<2x32xbf16>, vector<32x128xbf16>, vector<2x128xf32> -> vector<2x128xf32>
    %740 = arith.addf %739, %5 : vector<2x128xf32>
    %741 = arith.truncf %701 : vector<2x32xf32> to vector<2x32xbf16>
    %c0_277 = arith.constant 0 : index
    %c0_278 = arith.constant 0 : index
    %742 = vector.load %arg9[%c0_277, %c0_278] : memref<32x128xbf16, #tpu.memory_space<vmem>>, vector<32x128xbf16>
    %cst_279 = arith.constant dense<0.000000e+00> : vector<2x128xf32>
    %743 = tpu.matmul %741, %742, %cst_279 {dimension_numbers = #tpu.dot_dimension_numbers<[1], [0], [0], [1], [0, 0, 1, 1], [], []>} : vector<2x32xbf16>, vector<32x128xbf16>, vector<2x128xf32> -> vector<2x128xf32>
    %744 = arith.addf %740, %743 : vector<2x128xf32>
    %745 = arith.negf %744 : vector<2x128xf32>
    %746 = math.exp %745 : vector<2x128xf32>
    %cst_280 = arith.constant 1.000000e+00 : f32
    %747 = vector.broadcast %cst_280 : f32 to vector<2x128xf32>
    %748 = arith.addf %747, %746 : vector<2x128xf32>
    %749 = arith.divf %747, %748 : vector<2x128xf32>
    %750 = math.tanh %744 : vector<2x128xf32>
    %751 = vector.extract_strided_slice %749 {offsets = [0, 0], sizes = [2, 32], strides = [1, 1]} : vector<2x128xf32> to vector<2x32xf32>
    %752 = vector.extract_strided_slice %749 {offsets = [0, 32], sizes = [2, 32], strides = [1, 1]} : vector<2x128xf32> to vector<2x32xf32>
    %753 = vector.extract_strided_slice %750 {offsets = [0, 64], sizes = [2, 32], strides = [1, 1]} : vector<2x128xf32> to vector<2x32xf32>
    %754 = vector.extract_strided_slice %749 {offsets = [0, 96], sizes = [2, 32], strides = [1, 1]} : vector<2x128xf32> to vector<2x32xf32>
    %755 = arith.mulf %752, %699 : vector<2x32xf32>
    %756 = arith.mulf %751, %753 : vector<2x32xf32>
    %757 = arith.addf %755, %756 : vector<2x32xf32>
    %758 = math.tanh %757 : vector<2x32xf32>
    %759 = arith.mulf %754, %758 : vector<2x32xf32>
    %760 = arith.truncf %759 : vector<2x32xf32> to vector<2x32xbf16>
    %c0_281 = arith.constant 0 : index
    %c0_282 = arith.constant 0 : index
    %761 = vector.load %arg12[%c0_281, %c0_282] : memref<32x128xbf16, #tpu.memory_space<vmem>>, vector<32x128xbf16>
    %cst_283 = arith.constant dense<0.000000e+00> : vector<2x128xf32>
    %762 = tpu.matmul %760, %761, %cst_283 {dimension_numbers = #tpu.dot_dimension_numbers<[1], [0], [0], [1], [0, 0, 1, 1], [], []>} : vector<2x32xbf16>, vector<32x128xbf16>, vector<2x128xf32> -> vector<2x128xf32>
    %763 = arith.addf %762, %8 : vector<2x128xf32>
    %c7_284 = arith.constant 7 : index
    %c0_285 = arith.constant 0 : index
    %c0_286 = arith.constant 0 : index
    %764 = vector.load %arg14[%c7_284, %c0_285, %c0_286] : memref<8x2x128xf32, #tpu.memory_space<vmem>>, vector<1x2x128xf32>
    %765 = vector.shape_cast %764 : vector<1x2x128xf32> to vector<2x128xf32>
    %766 = vector.shape_cast %763 : vector<2x128xf32> to vector<1x2x128xf32>
    tpu.vector_store %arg14[%c7_284, %c0_285, %c0_286], %766 {strides = array<i32>} : memref<8x2x128xf32, #tpu.memory_space<vmem>>, vector<1x2x128xf32>,
    %c7_287 = arith.constant 7 : index
    %767 = memref.load %arg2[%c7_287] : memref<8xi32, #tpu.memory_space<smem>>
    %c0_i32_288 = arith.constant 0 : i32
    %768 = arith.cmpi sgt, %767, %c0_i32_288 : i32
    %769 = arith.extui %768 : i1 to i32
    %c0_i32_289 = arith.constant 0 : i32
    %770 = arith.cmpi ne, %769, %c0_i32_289 : i32
    scf.if %770 {
      %c7_293 = arith.constant 7 : index
      %c0_294 = arith.constant 0 : index
      %c0_295 = arith.constant 0 : index
      %775 = vector.load %arg1[%c7_293, %c0_294, %c0_295] : memref<8x2x128xf32, #tpu.memory_space<vmem>>, vector<1x2x128xf32>
      %776 = vector.shape_cast %775 : vector<1x2x128xf32> to vector<2x128xf32>
      %c0_296 = arith.constant 0 : index
      %c0_297 = arith.constant 0 : index
      %777 = vector.load %arg15[%c0_296, %c0_297] : memref<2x128xf32, #tpu.memory_space<vmem>>, vector<2x128xf32>
      tpu.vector_store %arg15[%c0_296, %c0_297], %776 {strides = array<i32>} : memref<2x128xf32, #tpu.memory_space<vmem>>, vector<2x128xf32>,
    } else {
    }
    %c7_290 = arith.constant 7 : index
    %771 = memref.load %arg2[%c7_290] : memref<8xi32, #tpu.memory_space<smem>>
    %c0_i32_291 = arith.constant 0 : i32
    %772 = arith.cmpi eq, %771, %c0_i32_291 : i32
    %773 = arith.extui %772 : i1 to i32
    %c0_i32_292 = arith.constant 0 : i32
    %774 = arith.cmpi ne, %773, %c0_i32_292 : i32
    scf.if %774 {
      %cst_293 = arith.constant dense<0xFF800000> : vector<2xf32>
      %775 = vector.multi_reduction <maximumf>, %763, %cst_293 [1] : vector<2x128xf32> to vector<2xf32>
      %776 = vector.shape_cast %775 : vector<2xf32> to vector<2x1xf32>
      %777 = vector.broadcast %776 : vector<2x1xf32> to vector<2x128xf32>
      %778 = arith.cmpf oeq, %763, %777 : vector<2x128xf32>
      %779 = arith.extui %778 : vector<2x128xi1> to vector<2x128xi32>
      %780 = arith.sitofp %779 : vector<2x128xi32> to vector<2x128xf32>
      %781 = arith.truncf %780 : vector<2x128xf32> to vector<2x128xbf16>
      %c0_294 = arith.constant 0 : index
      %c0_295 = arith.constant 0 : index
      %782 = vector.load %arg11[%c0_294, %c0_295] : memref<128x128xbf16, #tpu.memory_space<vmem>>, vector<128x128xbf16>
      %cst_296 = arith.constant dense<0.000000e+00> : vector<2x128xf32>
      %783 = tpu.matmul %781, %782, %cst_296 {dimension_numbers = #tpu.dot_dimension_numbers<[1], [0], [0], [1], [0, 0, 1, 1], [], []>} : vector<2x128xbf16>, vector<128x128xbf16>, vector<2x128xf32> -> vector<2x128xf32>
      %c0_297 = arith.constant 0 : index
      %c0_298 = arith.constant 0 : index
      %784 = vector.load %arg15[%c0_297, %c0_298] : memref<2x128xf32, #tpu.memory_space<vmem>>, vector<2x128xf32>
      tpu.vector_store %arg15[%c0_297, %c0_298], %783 {strides = array<i32>} : memref<2x128xf32, #tpu.memory_space<vmem>>, vector<2x128xf32>,
    } else {
    }
    return
  }
}

</mosaic_0001>

<bundles_post_ra>
// kernel: seq2seq_forward.1
= control target key start
LH: loop header
LB: loop body
LE: loop exit
PB: predicated region body
PF: predicated region fallthrough
CT: control target
= control target key end

     0   :  { %19 = vsyncpa [#allocation5], 0  ;;  %s5309_s0 = inlined_call_operand.vmem [shape: f32[8,2,128], index: 0, kind: input, shape index: {}]   ;;  %s5310_s1 = inlined_call_operand.vmem [shape: f32[8,2,128], index: 1, kind: input, shape index: {}]   ;;  %s5311_s2 = inlined_call_operand.vmem [shape: s32[8], index: 2, kind: input, shape index: {}]   ;;  %s5312_s3 = inlined_call_operand.vmem [shape: bf16[32,128], index: 3, kind: input, shape index: {}]   ;;  %s5313_s4 = inlined_call_operand.vmem [shape: bf16[32,128], index: 4, kind: input, shape index: {}]   ;;  %s5314_s5 = inlined_call_operand.vmem [shape: bf16[32,128], index: 5, kind: input, shape index: {}]   ;;  %s5315_s6 = inlined_call_operand.vmem [shape: f32[1,128], index: 6, kind: input, shape index: {}]   ;;  %s5316_s7 = inlined_call_operand.vmem [shape: bf16[32,128], index: 7, kind: input, shape index: {}]   ;;  %s5317_s8 = inlined_call_operand.vmem [shape: bf16[32,128], index: 8, kind: input, shape index: {}]   ;;  %s5318_s9 = inlined_call_operand.vmem [shape: bf16[32,128], index: 9, kind: input, shape index: {}]   ;;  %s5319_s10 = inlined_call_operand.vmem [shape: f32[1,128], index: 10, kind: input, shape index: {}]   ;;  %s5320_s11 = inlined_call_operand.vmem [shape: bf16[128,128], index: 11, kind: input, shape index: {}]   ;;  %s5321_s12 = inlined_call_operand.vmem [shape: bf16[32,128], index: 12, kind: input, shape index: {}]   ;;  %s5322_s13 = inlined_call_operand.vmem [shape: f32[1,128], index: 13, kind: input, shape index: {}]   ;;  %s5323_s14 = inlined_call_operand.hbm [shape: f32[8,2,128], index: 14, kind: output, shape index: {}]  }
   0x1   :  { %20 = vsyncpa [#allocation4], 0  ;;  %s30_s15 = sshll.u32 %s5311_s2, 4  ;;  %s4382_s16 = smov [#allocation3]   ;;  %s31_s15 = int_to_ptr.vmem [resolvable:$true] %s30_s15 }
   0x2   :  { %33 = dma.vmem_to_smem %s31_s15, 16, %s4382_s16, [#allocation5]  }
   0x3   :  { %4378 = dma.done.wait [#allocation5], 16  }
   0x4   :  { %4379 = vsyncadd [#allocation5], 4294967280 }
   0x5   :  { %60 = sfence }
   0x6   :  { %v4477_v0 = vld [vmem:[%s5312_s3 + $0x8] sm:$0xff]  ;;  %v4483_v1 = vld [vmem:[%s5312_s3] sm:$0xff]  ;;  %v4383_v2 = vmov 0   ;;  %s4384_s22 = smov 64   ;;  %s4385_s3 = smov 32   ;;  %vm91_vm4 = vcmask 261120  }
   0x7   :  { %101 = vmatpush.bf16.msra.mxu0 %v4477_v0  ;;  %257 = vmatpush.bf16.msra.mxu3 %v4477_v0  ;;  %v74_v3 = vld [vmem:[%s5309_s0] sm:$0x3]  ;;  %v4500_v27 = vld [vmem:[%s5314_s5 + $0x8] sm:$0xff]  ;;  %v3378_v38 = vld [vmem:[%s5309_s0 + $0x2] sm:$0x3]  ;;  %s3458_s30 = sld [smem:[#allocation3 + $0x1]] }
   0x8   :  { %v4505_v28 = vld [vmem:[%s5313_s4 + $0x8] sm:$0xff]  ;;  %204 = vmatpush.bf16.msra.mxu2 %v4500_v27  ;;  %v4512_v29 = vld [vmem:[%s5314_s5] sm:$0xff] }
   0x9   :  { %175 = vmatpush.bf16.msra.mxu1 %v4505_v28  ;;  %v4517_v30 = vld [vmem:[%s5313_s4] sm:$0xff] }
   0xa   :  { %v4546_v39 = vld [vmem:[%s5315_s6] ss:$0 sm:$0xff] }
   0xb   :  { %102 = vmatpush.bf16.msra.mxu0 %v4483_v1  ;;  %258 = vmatpush.bf16.msra.mxu3 %v4483_v1 }
   0xc   :  { %205 = vmatpush.bf16.msra.mxu2 %v4512_v29 }
   0xd   :  { %176 = vmatpush.bf16.msra.mxu1 %v4517_v30  ;;  %p3459_p0 = scmp.le.s32.totalorder %s3458_s30, 0 }
   0xe   :  { %103 = vmatmul.bf16.vlgmr.msra.gmra.mxu0 %v4383_v2 }
   0xf   :  { %315 = vmatpush.bf16.msrb.mxu0 %v4505_v28  ;;  %446 = vmatpush.bf16.msrb.mxu3 %v4505_v28 }
  0x10   :  { %388 = vmatpush.bf16.msrb.mxu2 %v4477_v0 }
  0x11   :  { %335 = vmatpush.bf16.msrb.mxu1 %v4500_v27  ;;  %206 = vmatmul.bf16.vlgmr.msra.gmra.mxu2 %v4383_v2 }
  0x13   :  { %316 = vmatpush.bf16.msrb.mxu0 %v4517_v30  ;;  %447 = vmatpush.bf16.msrb.mxu3 %v4517_v30 }
  0x14   :  { %389 = vmatpush.bf16.msrb.mxu2 %v4483_v1 }
  0x15   :  { %336 = vmatpush.bf16.msrb.mxu1 %v4512_v29 }
  0x17   :  { %466 = vmatpush.bf16.msra.mxu0 %v4500_v27 }
  0x18   :  { %577 = vmatpush.bf16.msra.mxu2 %v4505_v28 }
  0x1b   :  { %467 = vmatpush.bf16.msra.mxu0 %v4512_v29 }
  0x1c   :  { %578 = vmatpush.bf16.msra.mxu2 %v4517_v30 }
  0x8b   :  { %v104_v4 = vpop.f32.mrf.mxu0 }
  0x8c   :  { %v108_v5 = vadd.f32 %v104_v4, %v74_v3 }
  0x8e   :  { %4101 = vtanh.f32 %v108_v5  ;;  %v3359_v8 = vmul.f32 -1.442695, %v108_v5 }
  0x90   :  { %4103 = vpow2.f32 %v3359_v8 }
  0x93   :  { %v106_v6 = vpop.f32.mrf.mxu0 }
  0x94   :  { %v4102_v7 = vpop.eup %4101  ;;  %v207_v35 = vpop.f32.mrf.mxu2 }
  0x95   :  { %131 = vrot.lane.b32.xlu0 %v4102_v7, %s4384_s22 }
  0x96   :  { %v4104_v9 = vpop.eup %4103 }
  0x97   :  { %v112_v10 = vadd.f32 1.0, %v4104_v9 }
  0x99   :  { %4105 = vrcp.f32 %v112_v10  ;;  %v124_v16 = vand.u32 2147483648, %v112_v10  ;;  %vm118_vm1 = vweird.f32 %v112_v10  ;;  %v122_v17 = vand.u32 2147483647, %v112_v10 }
  0x9b   :  { %v125_v19 = vor.u32 1.1754944e-38, %v124_v16  ;;  %vm123_vm3 = vcmp.eq.f32.partialorder %v122_v17, 8.507059e+37 }
  0x9c   :  { %v209_v36 = vpop.f32.mrf.mxu2 }
  0x9f   :  { %v4106_v11 = vpop.eup %4105 }
  0xa0   :  { %v114_v12 = vmul.f32 %v4106_v11, %v112_v10  ;;  %vm119_vm0 = vweird.f32 %v4106_v11 }
  0xa1   :  { %vm120_vm2 = vmor %vm118_vm1, %vm119_vm0 }
  0xa2   :  { %v115_v13 = vsub.f32 1.0, %v114_v12 }
  0xa4   :  { %v116_v14 = vmul.f32 %v4106_v11, %v115_v13 }
  0xa6   :  { %v117_v15 = vadd.f32 %v4106_v11, %v116_v14 }
  0xa8   :  { %v121_v18 = vsel %vm120_vm2, %v4106_v11, %v117_v15 }
  0xa9   :  { %v126_v21 = vsel %vm123_vm3, %v125_v19, %v121_v18 }
  0xaa   :  { %v129_v23 = vmul.f32 0.0, %v126_v21 }
 0x107   :  { %v132_v20 = vpop.permute.xlu0 %131 }
 0x108   :  { %v134_v22 = vmul.f32 %v132_v20, %v126_v21 }
 0x10a   :  { %136 = vrot.lane.b32.xlu0 %v134_v22, %s4385_s3 }
 0x17c   :  { %v137_v24 = vpop.permute.xlu0 %136 }
 0x17d   :  { %v4493_v25 = vadd.f32 %v137_v24, %v129_v23 }
 0x17f   :  { %4107 = vtanh.f32 %v4493_v25 }
 0x185   :  { %v4108_v26 = vpop.eup %4107 }
 0x186   :  { %142 = vrot.lane.b32.xlu1 %v4108_v26, %s4384_s22 }
 0x1f8   :  { %v143_v31 = vpop.permute.xlu1 %142 }
 0x1f9   :  { %v145_v32 = vmul.f32 %v143_v31, %v126_v21 }
 0x1fb   :  { %v146_v33 = vpack.c.bf16 %v145_v32, %v145_v32 }
 0x1fd   :  { %152 = vrot.lane.b32.xlu1 %v146_v33, %s4385_s3 }
 0x26f   :  { %v153_v34 = vpop.permute.xlu1 %152 }
 0x270   :  { %3368 = vmatmul.msk.bf16.vlgmr.msra.gmra.mxu1 %vm91_vm4, %v153_v34  ;;  %3379 = vmatmul.msk.bf16.vlgmr.msra.gmra.mxu3 %vm91_vm4, %v153_v34 }
 0x271   :  { %519 = vmatpush.bf16.msra.mxu1 %v4477_v0  ;;  %597 = vmatpush.bf16.msra.mxu3 %v4500_v27 }
 0x275   :  { %520 = vmatpush.bf16.msra.mxu1 %v4483_v1  ;;  %598 = vmatpush.bf16.msra.mxu3 %v4512_v29 }
 0x2ed   :  { %v178_v37 = vpop.f32.mrf.mxu1 }
 0x2ee   :  { %v179_v43 = vadd.f32 %v4546_v39, %v178_v37  ;;  %v3384_v37 = vld [vmem:[%s5309_s0 + $0x4] sm:$0x3] }
 0x2f0   :  { %v211_v44 = vadd.f32 %v207_v35, %v179_v43 }
 0x2f2   :  { %v3377_v49 = vmul.f32 -1.442695, %v211_v44 }
 0x2f3   :  { %v260_v40 = vpop.f32.mrf.mxu3 }
 0x2f4   :  { %v264_v41 = vadd.f32 %v3378_v38, %v260_v40 }
 0x2f5   :  { %v180_v42 = vpop.f32.mrf.mxu1 }
 0x2f6   :  { %4109 = vtanh.f32 %v264_v41  ;;  %v3380_v48 = vmul.f32 -1.442695, %v264_v41 }
 0x2f7   :  { %4111 = vtanh.f32 %v211_v44 }
 0x2f8   :  { %4113 = vpow2.f32 %v3380_v48 }
 0x2f9   :  { %4115 = vpow2.f32 %v3377_v49 }
 0x2fb   :  { %v262_v45 = vpop.f32.mrf.mxu3 }
 0x2fc   :  { %v4110_v46 = vpop.eup %4109 }
 0x2fd   :  { %287 = vrot.lane.b32.xlu2 %v4110_v46, %s4384_s22  ;;  %v4112_v47 = vpop.eup %4111 }
 0x2fe   :  { %v4114_v50 = vpop.eup %4113 }
 0x2ff   :  { %v268_v51 = vadd.f32 1.0, %v4114_v50  ;;  %v4116_v52 = vpop.eup %4115 }
 0x300   :  { %v215_v53 = vadd.f32 1.0, %v4116_v52 }
 0x301   :  { %4117 = vrcp.f32 %v268_v51  ;;  %v280_v62 = vand.u32 2147483648, %v268_v51  ;;  %vm274_vm6 = vweird.f32 %v268_v51  ;;  %v278_v63 = vand.u32 2147483647, %v268_v51 }
 0x302   :  { %4119 = vrcp.f32 %v215_v53  ;;  %v227_v9 = vand.u32 2147483648, %v215_v53  ;;  %vm221_vm10 = vweird.f32 %v215_v53  ;;  %v225_v10 = vand.u32 2147483647, %v215_v53 }
 0x303   :  { %v281_v4 = vor.u32 1.1754944e-38, %v280_v62  ;;  %vm279_vm8 = vcmp.eq.f32.partialorder %v278_v63, 8.507059e+37 }
 0x304   :  { %v228_v12 = vor.u32 1.1754944e-38, %v227_v9  ;;  %vm226_vm12 = vcmp.eq.f32.partialorder %v225_v10, 8.507059e+37 }
 0x305   :  { %234 = vrot.lane.b32.xlu2 %v4112_v47, %s4384_s22 }
 0x307   :  { %v4118_v54 = vpop.eup %4117 }
 0x308   :  { %v270_v55 = vmul.f32 %v4118_v54, %v268_v51  ;;  %v4120_v57 = vpop.eup %4119  ;;  %vm275_vm5 = vweird.f32 %v4118_v54 }
 0x309   :  { %v217_v59 = vmul.f32 %v4120_v57, %v215_v53  ;;  %vm276_vm7 = vmor %vm274_vm6, %vm275_vm5  ;;  %vm222_vm9 = vweird.f32 %v4120_v57 }
 0x30a   :  { %v271_v56 = vsub.f32 1.0, %v270_v55  ;;  %vm223_vm11 = vmor %vm221_vm10, %vm222_vm9 }
 0x30b   :  { %v218_v61 = vsub.f32 1.0, %v217_v59 }
 0x30c   :  { %v272_v58 = vmul.f32 %v4118_v54, %v271_v56 }
 0x30d   :  { %v219_v3 = vmul.f32 %v4120_v57, %v218_v61 }
 0x30e   :  { %v273_v60 = vadd.f32 %v4118_v54, %v272_v58 }
 0x30f   :  { %v220_v8 = vadd.f32 %v4120_v57, %v219_v3 }
 0x310   :  { %v277_v2 = vsel %vm276_vm7, %v4118_v54, %v273_v60 }
 0x311   :  { %v282_v6 = vsel %vm279_vm8, %v281_v4, %v277_v2  ;;  %v224_v11 = vsel %vm223_vm11, %v4120_v57, %v220_v8 }
 0x312   :  { %v229_v14 = vsel %vm226_vm12, %v228_v12, %v224_v11  ;;  %v285_v16 = vmul.f32 %v282_v6, %v4493_v25 }
 0x313   :  { %v232_v19 = vmul.f32 0.0, %v229_v14 }
 0x357   :  { %v288_v5 = vpop.permute.xlu2 %287 }
 0x358   :  { %v290_v7 = vmul.f32 %v288_v5, %v282_v6 }
 0x35a   :  { %292 = vrot.lane.b32.xlu0 %v290_v7, %s4385_s3 }
 0x35f   :  { %v235_v13 = vpop.permute.xlu2 %234 }
 0x360   :  { %v237_v15 = vmul.f32 %v235_v13, %v229_v14 }
 0x362   :  { %239 = vrot.lane.b32.xlu1 %v237_v15, %s4385_s3 }
 0x3cc   :  { %v293_v17 = vpop.permute.xlu0 %292 }
 0x3cd   :  { %v4554_v18 = vadd.f32 %v293_v17, %v285_v16 }
 0x3cf   :  { %4121 = vtanh.f32 %v4554_v18 }
 0x3d4   :  { %v240_v20 = vpop.permute.xlu1 %239 }
 0x3d5   :  { %v4122_v21 = vpop.eup %4121  ;;  %v4557_v22 = vadd.f32 %v240_v20, %v232_v19 }
 0x3d6   :  { %298 = vrot.lane.b32.xlu2 %v4122_v21, %s4384_s22 }
 0x3d7   :  { %4123 = vtanh.f32 %v4557_v22 }
 0x3dd   :  { %v4124_v23 = vpop.eup %4123 }
 0x3de   :  { %245 = vrot.lane.b32.xlu0 %v4124_v23, %s4384_s22 }
 0x430   :  { %v299_v24 = vpop.permute.xlu2 %298 }
 0x431   :  { %v301_v26 = vmul.f32 %v299_v24, %v282_v6 }
 0x433   :  { %v302_v25 = vpack.c.bf16 %v301_v26, %v301_v26 }
 0x435   :  { %304 = vrot.lane.b32.xlu1 %v302_v25, %s4385_s3 }
 0x450   :  { %v246_v31 = vpop.permute.xlu0 %245 }
 0x451   :  { %v248_v32 = vmul.f32 %v246_v31, %v229_v14 }
 0x453   :  { %v322_v33 = vpack.c.bf16 %v248_v32, %v248_v32 }
 0x455   :  { %324 = vrot.lane.b32.xlu2 %v322_v33, %s4385_s3 }
 0x4a7   :  { %v305_v34 = vpop.permute.xlu1 %304 }
 0x4a8   :  { %3381 = vmatmul.msk.bf16.vlgmr.msrb.gmra.mxu0 %vm91_vm4, %v305_v34  ;;  %3385 = vmatmul.msk.bf16.vlgmr.msrb.gmra.mxu2 %vm91_vm4, %v305_v34 }
 0x4a9   :  { %650 = vmatpush.bf16.msrb.mxu0 %v4477_v0  ;;  %728 = vmatpush.bf16.msrb.mxu2 %v4500_v27 }
 0x4ad   :  { %651 = vmatpush.bf16.msrb.mxu0 %v4483_v1  ;;  %729 = vmatpush.bf16.msrb.mxu2 %v4512_v29 }
 0x4af   :  { %v325_v35 = vpop.permute.xlu2 %324 }
 0x4b0   :  { %3382 = vmatmul.msk.bf16.vlgmr.msrb.gmra.mxu1 %vm91_vm4, %v325_v35 }
 0x4b1   :  { %708 = vmatpush.bf16.msrb.mxu1 %v4505_v28 }
 0x4b5   :  { %709 = vmatpush.bf16.msrb.mxu1 %v4517_v30 }
 0x525   :  { %v318_v36 = vpop.f32.mrf.mxu0 }
 0x526   :  { %v319_v40 = vadd.f32 %v4546_v39, %v318_v36 }
 0x52b   :  { %v391_v38 = vpop.f32.mrf.mxu2 }
 0x52c   :  { %v395_v41 = vadd.f32 %v3384_v37, %v391_v38  ;;  %v3390_v37 = vld [vmem:[%s5309_s0 + $0x6] sm:$0x3] }
 0x52d   :  { %v320_v42 = vpop.f32.mrf.mxu0  ;;  %v338_v43 = vpop.f32.mrf.mxu1 }
 0x52e   :  { %4125 = vtanh.f32 %v395_v41  ;;  %v342_v44 = vadd.f32 %v338_v43, %v319_v40  ;;  %v3386_v49 = vmul.f32 -1.442695, %v395_v41 }
 0x530   :  { %4127 = vtanh.f32 %v342_v44  ;;  %v3383_v50 = vmul.f32 -1.442695, %v342_v44 }
 0x531   :  { %4129 = vpow2.f32 %v3386_v49 }
 0x532   :  { %4131 = vpow2.f32 %v3383_v50 }
 0x533   :  { %v393_v45 = vpop.f32.mrf.mxu2 }
 0x534   :  { %v4126_v46 = vpop.eup %4125 }
 0x535   :  { %418 = vrot.lane.b32.xlu0 %v4126_v46, %s4384_s22  ;;  %v340_v47 = vpop.f32.mrf.mxu1 }
 0x536   :  { %v4128_v48 = vpop.eup %4127 }
 0x537   :  { %365 = vrot.lane.b32.xlu1 %v4128_v48, %s4384_s22  ;;  %v4130_v51 = vpop.eup %4129 }
 0x538   :  { %v4132_v52 = vpop.eup %4131  ;;  %v399_v53 = vadd.f32 1.0, %v4130_v51 }
 0x539   :  { %v346_v54 = vadd.f32 1.0, %v4132_v52 }
 0x53a   :  { %4133 = vrcp.f32 %v399_v53  ;;  %v411_v2 = vand.u32 2147483648, %v399_v53  ;;  %vm405_vm14 = vweird.f32 %v399_v53  ;;  %v409_v3 = vand.u32 2147483647, %v399_v53 }
 0x53b   :  { %4135 = vrcp.f32 %v346_v54  ;;  %v358_v6 = vand.u32 2147483648, %v346_v54  ;;  %vm352_vm1 = vweird.f32 %v346_v54  ;;  %v356_v8 = vand.u32 2147483647, %v346_v54 }
 0x53c   :  { %v412_v7 = vor.u32 1.1754944e-38, %v411_v2  ;;  %vm410_vm2 = vcmp.eq.f32.partialorder %v409_v3, 8.507059e+37 }
 0x53d   :  { %v359_v13 = vor.u32 1.1754944e-38, %v358_v6  ;;  %vm357_vm5 = vcmp.eq.f32.partialorder %v356_v8, 8.507059e+37 }
 0x540   :  { %v4134_v55 = vpop.eup %4133 }
 0x541   :  { %v4136_v56 = vpop.eup %4135  ;;  %v401_v57 = vmul.f32 %v4134_v55, %v399_v53  ;;  %vm406_vm13 = vweird.f32 %v4134_v55 }
 0x542   :  { %v348_v58 = vmul.f32 %v4136_v56, %v346_v54  ;;  %vm407_vm15 = vmor %vm405_vm14, %vm406_vm13  ;;  %vm353_vm0 = vweird.f32 %v4136_v56 }
 0x543   :  { %v402_v59 = vsub.f32 1.0, %v401_v57  ;;  %vm354_vm3 = vmor %vm352_vm1, %vm353_vm0 }
 0x544   :  { %v349_v60 = vsub.f32 1.0, %v348_v58 }
 0x545   :  { %v403_v61 = vmul.f32 %v4134_v55, %v402_v59 }
 0x546   :  { %v350_v62 = vmul.f32 %v4136_v56, %v349_v60 }
 0x547   :  { %v404_v63 = vadd.f32 %v4134_v55, %v403_v61 }
 0x548   :  { %v351_v4 = vadd.f32 %v4136_v56, %v350_v62 }
 0x549   :  { %v408_v5 = vsel %vm407_vm15, %v4134_v55, %v404_v63 }
 0x54a   :  { %v413_v9 = vsel %vm410_vm2, %v412_v7, %v408_v5  ;;  %v355_v11 = vsel %vm354_vm3, %v4136_v56, %v351_v4 }
 0x54b   :  { %v360_v15 = vsel %vm357_vm5, %v359_v13, %v355_v11  ;;  %v416_v17 = vmul.f32 %v413_v9, %v4554_v18 }
 0x54c   :  { %v363_v23 = vmul.f32 %v360_v15, %v4557_v22 }
 0x5a7   :  { %v419_v10 = vpop.permute.xlu0 %418 }
 0x5a8   :  { %v421_v12 = vmul.f32 %v419_v10, %v413_v9 }
 0x5a9   :  { %v366_v14 = vpop.permute.xlu1 %365 }
 0x5aa   :  { %423 = vrot.lane.b32.xlu2 %v421_v12, %s4385_s3  ;;  %v368_v16 = vmul.f32 %v366_v14, %v360_v15 }
 0x5ac   :  { %370 = vrot.lane.b32.xlu0 %v368_v16, %s4385_s3 }
 0x604   :  { %v424_v19 = vpop.permute.xlu2 %423 }
 0x605   :  { %v4582_v20 = vadd.f32 %v424_v19, %v416_v17 }
 0x607   :  { %4137 = vtanh.f32 %v4582_v20 }
 0x60d   :  { %v4138_v21 = vpop.eup %4137 }
 0x60e   :  { %429 = vrot.lane.b32.xlu1 %v4138_v21, %s4384_s22 }
 0x61e   :  { %v371_v24 = vpop.permute.xlu0 %370 }
 0x61f   :  { %v4587_v26 = vadd.f32 %v371_v24, %v363_v23 }
 0x621   :  { %4139 = vtanh.f32 %v4587_v26 }
 0x627   :  { %v4140_v25 = vpop.eup %4139 }
 0x628   :  { %376 = vrot.lane.b32.xlu2 %v4140_v25, %s4384_s22 }
 0x680   :  { %v430_v31 = vpop.permute.xlu1 %429 }
 0x681   :  { %v432_v18 = vmul.f32 %v430_v31, %v413_v9 }
 0x682   :  { %v377_v33 = vpop.permute.xlu2 %376 }
 0x683   :  { %v433_v32 = vpack.c.bf16 %v432_v18, %v432_v18  ;;  %v379_v34 = vmul.f32 %v377_v33, %v360_v15 }
 0x685   :  { %435 = vrot.lane.b32.xlu0 %v433_v32, %s4385_s3  ;;  %v453_v35 = vpack.c.bf16 %v379_v34, %v379_v34 }
 0x687   :  { %455 = vrot.lane.b32.xlu1 %v453_v35, %s4385_s3 }
 0x6f7   :  { %v436_v36 = vpop.permute.xlu0 %435 }
 0x6f8   :  { %3387 = vmatmul.msk.bf16.vlgmr.msrb.gmra.mxu3 %vm91_vm4, %v436_v36  ;;  %3391 = vmatmul.msk.bf16.vlgmr.msra.gmra.mxu1 %vm91_vm4, %v436_v36 }
 0x6f9   :  { %781 = vmatpush.bf16.msrb.mxu3 %v4477_v0  ;;  %859 = vmatpush.bf16.msra.mxu1 %v4500_v27  ;;  %v456_v22 = vpop.permute.xlu1 %455 }
 0x6fa   :  { %3388 = vmatmul.msk.bf16.vlgmr.msra.gmra.mxu0 %vm91_vm4, %v456_v22 }
 0x6fb   :  { %839 = vmatpush.bf16.msra.mxu0 %v4505_v28 }
 0x6fd   :  { %782 = vmatpush.bf16.msrb.mxu3 %v4483_v1  ;;  %860 = vmatpush.bf16.msra.mxu1 %v4512_v29 }
 0x6ff   :  { %840 = vmatpush.bf16.msra.mxu0 %v4517_v30 }
 0x775   :  { %v522_v38 = vpop.f32.mrf.mxu1 }
 0x776   :  { %v526_v40 = vadd.f32 %v3390_v37, %v522_v38  ;;  %v3396_v38 = vld [vmem:[%s5309_s0 + $0x8] sm:$0x3] }
 0x777   :  { %v469_v41 = vpop.f32.mrf.mxu0 }
 0x778   :  { %4141 = vtanh.f32 %v526_v40  ;;  %v3392_v50 = vmul.f32 -1.442695, %v526_v40 }
 0x77b   :  { %v449_v42 = vpop.f32.mrf.mxu3 }
 0x77c   :  { %v450_v43 = vadd.f32 %v4546_v39, %v449_v42 }
 0x77d   :  { %v524_v44 = vpop.f32.mrf.mxu1 }
 0x77e   :  { %v4142_v45 = vpop.eup %4141  ;;  %v473_v46 = vadd.f32 %v469_v41, %v450_v43 }
 0x77f   :  { %549 = vrot.lane.b32.xlu2 %v4142_v45, %s4384_s22  ;;  %v471_v47 = vpop.f32.mrf.mxu0 }
 0x780   :  { %4143 = vtanh.f32 %v473_v46  ;;  %v3389_v56 = vmul.f32 -1.442695, %v473_v46 }
 0x781   :  { %4145 = vpow2.f32 %v3392_v50 }
 0x783   :  { %v451_v48 = vpop.f32.mrf.mxu3 }
 0x786   :  { %v4144_v49 = vpop.eup %4143 }
 0x787   :  { %496 = vrot.lane.b32.xlu0 %v4144_v49, %s4384_s22  ;;  %v4146_v51 = vpop.eup %4145 }
 0x788   :  { %v530_v52 = vadd.f32 1.0, %v4146_v51 }
 0x78a   :  { %4147 = vrcp.f32 %v530_v52  ;;  %v542_v59 = vand.u32 2147483648, %v530_v52  ;;  %vm536_vm7 = vweird.f32 %v530_v52  ;;  %v540_v60 = vand.u32 2147483647, %v530_v52 }
 0x78b   :  { %4149 = vpow2.f32 %v3389_v56 }
 0x78c   :  { %v543_v63 = vor.u32 1.1754944e-38, %v542_v59  ;;  %vm541_vm9 = vcmp.eq.f32.partialorder %v540_v60, 8.507059e+37 }
 0x790   :  { %v4148_v53 = vpop.eup %4147 }
 0x791   :  { %v532_v54 = vmul.f32 %v4148_v53, %v530_v52  ;;  %vm537_vm6 = vweird.f32 %v4148_v53  ;;  %v4150_v61 = vpop.eup %4149 }
 0x792   :  { %vm538_vm8 = vmor %vm536_vm7, %vm537_vm6  ;;  %v477_v2 = vadd.f32 1.0, %v4150_v61 }
 0x793   :  { %v533_v55 = vsub.f32 1.0, %v532_v54 }
 0x794   :  { %4151 = vrcp.f32 %v477_v2  ;;  %v489_v11 = vand.u32 2147483648, %v477_v2  ;;  %vm483_vm11 = vweird.f32 %v477_v2  ;;  %v487_v12 = vand.u32 2147483647, %v477_v2 }
 0x795   :  { %v534_v57 = vmul.f32 %v4148_v53, %v533_v55 }
 0x796   :  { %v490_v14 = vor.u32 1.1754944e-38, %v489_v11  ;;  %vm488_vm13 = vcmp.eq.f32.partialorder %v487_v12, 8.507059e+37 }
 0x797   :  { %v535_v58 = vadd.f32 %v4148_v53, %v534_v57 }
 0x799   :  { %v539_v62 = vsel %vm538_vm8, %v4148_v53, %v535_v58 }
 0x79a   :  { %v544_v4 = vsel %vm541_vm9, %v543_v63, %v539_v62  ;;  %v4152_v6 = vpop.eup %4151 }
 0x79b   :  { %v479_v7 = vmul.f32 %v4152_v6, %v477_v2  ;;  %vm484_vm10 = vweird.f32 %v4152_v6  ;;  %v547_v19 = vmul.f32 %v544_v4, %v4582_v20 }
 0x79c   :  { %vm485_vm12 = vmor %vm483_vm11, %vm484_vm10 }
 0x79d   :  { %v480_v8 = vsub.f32 1.0, %v479_v7 }
 0x79f   :  { %v481_v9 = vmul.f32 %v4152_v6, %v480_v8 }
 0x7a1   :  { %v482_v10 = vadd.f32 %v4152_v6, %v481_v9 }
 0x7a3   :  { %v486_v13 = vsel %vm485_vm12, %v4152_v6, %v482_v10 }
 0x7a4   :  { %v491_v16 = vsel %vm488_vm13, %v490_v14, %v486_v13 }
 0x7a5   :  { %v494_v24 = vmul.f32 %v491_v16, %v4587_v26 }
 0x7d9   :  { %v550_v3 = vpop.permute.xlu2 %549 }
 0x7da   :  { %v552_v5 = vmul.f32 %v550_v3, %v544_v4 }
 0x7dc   :  { %554 = vrot.lane.b32.xlu1 %v552_v5, %s4385_s3 }
 0x7f9   :  { %v497_v15 = vpop.permute.xlu0 %496 }
 0x7fa   :  { %v499_v17 = vmul.f32 %v497_v15, %v491_v16 }
 0x7fc   :  { %501 = vrot.lane.b32.xlu2 %v499_v17, %s4385_s3 }
 0x84e   :  { %v555_v21 = vpop.permute.xlu1 %554 }
 0x84f   :  { %v4611_v23 = vadd.f32 %v555_v21, %v547_v19 }
 0x851   :  { %4153 = vtanh.f32 %v4611_v23 }
 0x856   :  { %v502_v25 = vpop.permute.xlu2 %501 }
 0x857   :  { %v4154_v31 = vpop.eup %4153  ;;  %v4615_v18 = vadd.f32 %v502_v25, %v494_v24 }
 0x858   :  { %560 = vrot.lane.b32.xlu0 %v4154_v31, %s4384_s22 }
 0x859   :  { %4155 = vtanh.f32 %v4615_v18 }
 0x85f   :  { %v4156_v32 = vpop.eup %4155 }
 0x860   :  { %507 = vrot.lane.b32.xlu1 %v4156_v32, %s4384_s22 }
 0x8ca   :  { %v561_v33 = vpop.permute.xlu0 %560 }
 0x8cb   :  { %v563_v20 = vmul.f32 %v561_v33, %v544_v4 }
 0x8cd   :  { %v564_v34 = vpack.c.bf16 %v563_v20, %v563_v20 }
 0x8cf   :  { %566 = vrot.lane.b32.xlu2 %v564_v34, %s4385_s3 }
 0x8d2   :  { %v508_v35 = vpop.permute.xlu1 %507 }
 0x8d3   :  { %v510_v36 = vmul.f32 %v508_v35, %v491_v16 }
 0x8d5   :  { %v584_v22 = vpack.c.bf16 %v510_v36, %v510_v36 }
 0x8d7   :  { %586 = vrot.lane.b32.xlu0 %v584_v22, %s4385_s3 }
 0x929   :  { %v567_v26 = vpop.permute.xlu2 %566 }
 0x92a   :  { %3393 = vmatmul.msk.bf16.vlgmr.msra.gmra.mxu2 %vm91_vm4, %v567_v26  ;;  %3397 = vmatmul.msk.bf16.vlgmr.msrb.gmra.mxu0 %vm91_vm4, %v567_v26 }
 0x92b   :  { %912 = vmatpush.bf16.msra.mxu2 %v4477_v0  ;;  %990 = vmatpush.bf16.msrb.mxu0 %v4500_v27 }
 0x92f   :  { %913 = vmatpush.bf16.msra.mxu2 %v4483_v1  ;;  %991 = vmatpush.bf16.msrb.mxu0 %v4512_v29 }
 0x949   :  { %v587_v37 = vpop.permute.xlu0 %586 }
 0x94a   :  { %3394 = vmatmul.msk.bf16.vlgmr.msra.gmra.mxu3 %vm91_vm4, %v587_v37 }
 0x94b   :  { %970 = vmatpush.bf16.msra.mxu3 %v4505_v28 }
 0x94f   :  { %971 = vmatpush.bf16.msra.mxu3 %v4517_v30 }
 0x9a7   :  { %v653_v40 = vpop.f32.mrf.mxu0 }
 0x9a8   :  { %v657_v41 = vadd.f32 %v3396_v38, %v653_v40 }
 0x9aa   :  { %4157 = vtanh.f32 %v657_v41  ;;  %v3398_v51 = vmul.f32 -1.442695, %v657_v41  ;;  %v3402_v41 = vld [vmem:[%s5309_s0 + $0xa] sm:$0x3] }
 0x9ad   :  { %v580_v42 = vpop.f32.mrf.mxu2 }
 0x9ae   :  { %v581_v46 = vadd.f32 %v4546_v39, %v580_v42 }
 0x9af   :  { %v655_v43 = vpop.f32.mrf.mxu0 }
 0x9b0   :  { %v4158_v44 = vpop.eup %4157 }
 0x9b1   :  { %680 = vrot.lane.b32.xlu1 %v4158_v44, %s4384_s22 }
 0x9b5   :  { %v582_v45 = vpop.f32.mrf.mxu2 }
 0x9cd   :  { %v600_v47 = vpop.f32.mrf.mxu3 }
 0x9ce   :  { %v604_v48 = vadd.f32 %v600_v47, %v581_v46 }
 0x9d0   :  { %4159 = vtanh.f32 %v604_v48  ;;  %v3395_v54 = vmul.f32 -1.442695, %v604_v48 }
 0x9d1   :  { %4161 = vpow2.f32 %v3398_v51 }
 0x9d5   :  { %v602_v49 = vpop.f32.mrf.mxu3 }
 0x9d6   :  { %v4160_v50 = vpop.eup %4159 }
 0x9d7   :  { %627 = vrot.lane.b32.xlu2 %v4160_v50, %s4384_s22  ;;  %v4162_v52 = vpop.eup %4161 }
 0x9d8   :  { %v661_v53 = vadd.f32 1.0, %v4162_v52 }
 0x9da   :  { %4163 = vrcp.f32 %v661_v53  ;;  %v673_v63 = vand.u32 2147483648, %v661_v53  ;;  %vm667_vm15 = vweird.f32 %v661_v53  ;;  %v671_v2 = vand.u32 2147483647, %v661_v53 }
 0x9db   :  { %4165 = vpow2.f32 %v3395_v54 }
 0x9dc   :  { %v674_v5 = vor.u32 1.1754944e-38, %v673_v63  ;;  %vm672_vm1 = vcmp.eq.f32.partialorder %v671_v2, 8.507059e+37 }
 0x9e0   :  { %v4164_v55 = vpop.eup %4163 }
 0x9e1   :  { %v4166_v56 = vpop.eup %4165  ;;  %v663_v57 = vmul.f32 %v4164_v55, %v661_v53  ;;  %vm668_vm14 = vweird.f32 %v4164_v55 }
 0x9e2   :  { %v608_v58 = vadd.f32 1.0, %v4166_v56  ;;  %vm669_vm0 = vmor %vm667_vm15, %vm668_vm14 }
 0x9e3   :  { %v664_v59 = vsub.f32 1.0, %v663_v57 }
 0x9e4   :  { %4167 = vrcp.f32 %v608_v58  ;;  %v620_v12 = vand.u32 2147483648, %v608_v58  ;;  %vm614_vm3 = vweird.f32 %v608_v58  ;;  %v618_v13 = vand.u32 2147483647, %v608_v58 }
 0x9e5   :  { %v665_v60 = vmul.f32 %v4164_v55, %v664_v59 }
 0x9e6   :  { %v621_v15 = vor.u32 1.1754944e-38, %v620_v12  ;;  %vm619_vm6 = vcmp.eq.f32.partialorder %v618_v13, 8.507059e+37 }
 0x9e7   :  { %v666_v62 = vadd.f32 %v4164_v55, %v665_v60 }
 0x9e9   :  { %v670_v4 = vsel %vm669_vm0, %v4164_v55, %v666_v62 }
 0x9ea   :  { %v4168_v61 = vpop.eup %4167  ;;  %v675_v7 = vsel %vm672_vm1, %v674_v5, %v670_v4 }
 0x9eb   :  { %v610_v3 = vmul.f32 %v4168_v61, %v608_v58  ;;  %vm615_vm2 = vweird.f32 %v4168_v61  ;;  %v678_v21 = vmul.f32 %v675_v7, %v4611_v23 }
 0x9ec   :  { %vm616_vm5 = vmor %vm614_vm3, %vm615_vm2 }
 0x9ed   :  { %v611_v6 = vsub.f32 1.0, %v610_v3 }
 0x9ef   :  { %v612_v10 = vmul.f32 %v4168_v61, %v611_v6 }
 0x9f1   :  { %v613_v11 = vadd.f32 %v4168_v61, %v612_v10 }
 0x9f3   :  { %v617_v14 = vsel %vm616_vm5, %v4168_v61, %v613_v11 }
 0x9f4   :  { %v622_v17 = vsel %vm619_vm6, %v621_v15, %v617_v14 }
 0x9f5   :  { %v625_v32 = vmul.f32 %v622_v17, %v4615_v18 }
 0xa23   :  { %v681_v8 = vpop.permute.xlu1 %680 }
 0xa24   :  { %v683_v9 = vmul.f32 %v681_v8, %v675_v7 }
 0xa26   :  { %685 = vrot.lane.b32.xlu0 %v683_v9, %s4385_s3 }
 0xa31   :  { %v628_v16 = vpop.permute.xlu2 %627 }
 0xa32   :  { %v630_v19 = vmul.f32 %v628_v16, %v622_v17 }
 0xa34   :  { %632 = vrot.lane.b32.xlu1 %v630_v19, %s4385_s3 }
 0xa98   :  { %v686_v24 = vpop.permute.xlu0 %685 }
 0xa99   :  { %v4640_v25 = vadd.f32 %v686_v24, %v678_v21 }
 0xa9b   :  { %4169 = vtanh.f32 %v4640_v25 }
 0xaa1   :  { %v4170_v31 = vpop.eup %4169 }
 0xaa2   :  { %691 = vrot.lane.b32.xlu2 %v4170_v31, %s4384_s22 }
 0xaa6   :  { %v633_v33 = vpop.permute.xlu1 %632 }
 0xaa7   :  { %v4645_v20 = vadd.f32 %v633_v33, %v625_v32 }
 0xaa9   :  { %4171 = vtanh.f32 %v4645_v20 }
 0xaaf   :  { %v4172_v34 = vpop.eup %4171 }
 0xab0   :  { %638 = vrot.lane.b32.xlu0 %v4172_v34, %s4384_s22 }
 0xafc   :  { %v692_v35 = vpop.permute.xlu2 %691 }
 0xafd   :  { %v694_v23 = vmul.f32 %v692_v35, %v675_v7 }
 0xaff   :  { %v695_v36 = vpack.c.bf16 %v694_v23, %v694_v23 }
 0xb01   :  { %697 = vrot.lane.b32.xlu1 %v695_v36, %s4385_s3 }
 0xb22   :  { %v639_v22 = vpop.permute.xlu0 %638 }
 0xb23   :  { %v641_v26 = vmul.f32 %v639_v22, %v622_v17 }
 0xb25   :  { %v715_v37 = vpack.c.bf16 %v641_v26, %v641_v26  ;;  %v3408_v26 = vld [vmem:[%s5309_s0 + $0xc] sm:$0x3] }
 0xb27   :  { %717 = vrot.lane.b32.xlu2 %v715_v37, %s4385_s3 }
 0xb73   :  { %v698_v38 = vpop.permute.xlu1 %697 }
 0xb74   :  { %3399 = vmatmul.msk.bf16.vlgmr.msrb.gmra.mxu1 %vm91_vm4, %v698_v38  ;;  %3403 = vmatmul.msk.bf16.vlgmr.msrb.gmra.mxu3 %vm91_vm4, %v698_v38 }
 0xb75   :  { %1043 = vmatpush.bf16.msrb.mxu1 %v4477_v0  ;;  %1121 = vmatpush.bf16.msrb.mxu3 %v4500_v27 }
 0xb79   :  { %1044 = vmatpush.bf16.msrb.mxu1 %v4483_v1  ;;  %1122 = vmatpush.bf16.msrb.mxu3 %v4512_v29 }
 0xb81   :  { %v718_v18 = vpop.permute.xlu2 %717 }
 0xb82   :  { %3400 = vmatmul.msk.bf16.vlgmr.msrb.gmra.mxu2 %vm91_vm4, %v718_v18 }
 0xb83   :  { %1101 = vmatpush.bf16.msrb.mxu2 %v4505_v28 }
 0xb87   :  { %1102 = vmatpush.bf16.msrb.mxu2 %v4517_v30 }
 0xbf1   :  { %v711_v40 = vpop.f32.mrf.mxu1 }
 0xbf2   :  { %v712_v29 = vadd.f32 %v4546_v39, %v711_v40 }
 0xbf7   :  { %v784_v42 = vpop.f32.mrf.mxu3 }
 0xbf8   :  { %v788_v0 = vadd.f32 %v3402_v41, %v784_v42 }
 0xbf9   :  { %v713_v43 = vpop.f32.mrf.mxu1 }
 0xbfa   :  { %4173 = vtanh.f32 %v788_v0  ;;  %v3404_v46 = vmul.f32 -1.442695, %v788_v0 }
 0xbff   :  { %v786_v27 = vpop.f32.mrf.mxu3 }
 0xc00   :  { %v4174_v1 = vpop.eup %4173 }
 0xc01   :  { %811 = vrot.lane.b32.xlu0 %v4174_v1, %s4384_s22 }
 0xc05   :  { %v731_v44 = vpop.f32.mrf.mxu2 }
 0xc06   :  { %v735_v45 = vadd.f32 %v731_v44, %v712_v29 }
 0xc08   :  { %4175 = vtanh.f32 %v735_v45  ;;  %v3401_v49 = vmul.f32 -1.442695, %v735_v45 }
 0xc09   :  { %4177 = vpow2.f32 %v3404_v46 }
 0xc0d   :  { %v733_v28 = vpop.f32.mrf.mxu2 }
 0xc0e   :  { %v4176_v30 = vpop.eup %4175 }
 0xc0f   :  { %758 = vrot.lane.b32.xlu1 %v4176_v30, %s4384_s22  ;;  %v4178_v47 = vpop.eup %4177 }
 0xc10   :  { %v792_v48 = vadd.f32 1.0, %v4178_v47 }
 0xc12   :  { %4179 = vrcp.f32 %v792_v48  ;;  %v804_v58 = vand.u32 2147483648, %v792_v48  ;;  %vm798_vm8 = vweird.f32 %v792_v48  ;;  %v802_v59 = vand.u32 2147483647, %v792_v48 }
 0xc13   :  { %4181 = vpow2.f32 %v3401_v49 }
 0xc14   :  { %v805_v62 = vor.u32 1.1754944e-38, %v804_v58  ;;  %vm803_vm10 = vcmp.eq.f32.partialorder %v802_v59, 8.507059e+37 }
 0xc18   :  { %v4180_v50 = vpop.eup %4179 }
 0xc19   :  { %v4182_v51 = vpop.eup %4181  ;;  %v794_v52 = vmul.f32 %v4180_v50, %v792_v48  ;;  %vm799_vm7 = vweird.f32 %v4180_v50 }
 0xc1a   :  { %v739_v53 = vadd.f32 1.0, %v4182_v51  ;;  %vm800_vm9 = vmor %vm798_vm8, %vm799_vm7 }
 0xc1b   :  { %v795_v54 = vsub.f32 1.0, %v794_v52 }
 0xc1c   :  { %4183 = vrcp.f32 %v739_v53  ;;  %v751_v7 = vand.u32 2147483648, %v739_v53  ;;  %vm745_vm12 = vweird.f32 %v739_v53  ;;  %v749_v8 = vand.u32 2147483647, %v739_v53 }
 0xc1d   :  { %v796_v55 = vmul.f32 %v4180_v50, %v795_v54 }
 0xc1e   :  { %v752_v10 = vor.u32 1.1754944e-38, %v751_v7  ;;  %vm750_vm14 = vcmp.eq.f32.partialorder %v749_v8, 8.507059e+37 }
 0xc1f   :  { %v797_v57 = vadd.f32 %v4180_v50, %v796_v55 }
 0xc21   :  { %v801_v61 = vsel %vm800_vm9, %v4180_v50, %v797_v57 }
 0xc22   :  { %v4184_v56 = vpop.eup %4183  ;;  %v806_v3 = vsel %vm803_vm10, %v805_v62, %v801_v61 }
 0xc23   :  { %v741_v60 = vmul.f32 %v4184_v56, %v739_v53  ;;  %vm746_vm11 = vweird.f32 %v4184_v56  ;;  %v809_v14 = vmul.f32 %v806_v3, %v4640_v25 }
 0xc24   :  { %vm747_vm13 = vmor %vm745_vm12, %vm746_vm11 }
 0xc25   :  { %v742_v63 = vsub.f32 1.0, %v741_v60 }
 0xc27   :  { %v743_v5 = vmul.f32 %v4184_v56, %v742_v63 }
 0xc29   :  { %v744_v6 = vadd.f32 %v4184_v56, %v743_v5 }
 0xc2b   :  { %v748_v9 = vsel %vm747_vm13, %v4184_v56, %v744_v6 }
 0xc2c   :  { %v753_v12 = vsel %vm750_vm14, %v752_v10, %v748_v9 }
 0xc2d   :  { %v756_v19 = vmul.f32 %v753_v12, %v4645_v20 }
 0xc73   :  { %v812_v2 = vpop.permute.xlu0 %811 }
 0xc74   :  { %v814_v4 = vmul.f32 %v812_v2, %v806_v3 }
 0xc76   :  { %816 = vrot.lane.b32.xlu2 %v814_v4, %s4385_s3 }
 0xc81   :  { %v759_v11 = vpop.permute.xlu1 %758 }
 0xc82   :  { %v761_v13 = vmul.f32 %v759_v11, %v753_v12 }
 0xc84   :  { %763 = vrot.lane.b32.xlu0 %v761_v13, %s4385_s3 }
 0xcd0   :  { %v817_v15 = vpop.permute.xlu2 %816 }
 0xcd1   :  { %v4669_v16 = vadd.f32 %v817_v15, %v809_v14 }
 0xcd3   :  { %4185 = vtanh.f32 %v4669_v16 }
 0xcd9   :  { %v4186_v17 = vpop.eup %4185 }
 0xcda   :  { %822 = vrot.lane.b32.xlu1 %v4186_v17, %s4384_s22 }
 0xcf6   :  { %v764_v21 = vpop.permute.xlu0 %763 }
 0xcf7   :  { %v4674_v24 = vadd.f32 %v764_v21, %v756_v19 }
 0xcf9   :  { %4187 = vtanh.f32 %v4674_v24 }
 0xcff   :  { %v4188_v31 = vpop.eup %4187 }
 0xd00   :  { %769 = vrot.lane.b32.xlu2 %v4188_v31, %s4384_s22 }
 0xd4c   :  { %v823_v32 = vpop.permute.xlu1 %822 }
 0xd4d   :  { %v825_v25 = vmul.f32 %v823_v32, %v806_v3 }
 0xd4f   :  { %v826_v33 = vpack.c.bf16 %v825_v25, %v825_v25 }
 0xd51   :  { %828 = vrot.lane.b32.xlu0 %v826_v33, %s4385_s3  ;;  %v3414_v33 = vld [vmem:[%s5309_s0 + $0xe] sm:$0x3] }
 0xd5a   :  { %v770_v34 = vpop.permute.xlu2 %769 }
 0xd5b   :  { %v772_v35 = vmul.f32 %v770_v34, %v753_v12 }
 0xd5d   :  { %v846_v23 = vpack.c.bf16 %v772_v35, %v772_v35 }
 0xd5f   :  { %848 = vrot.lane.b32.xlu1 %v846_v23, %s4385_s3 }
 0xdc3   :  { %v829_v36 = vpop.permute.xlu0 %828 }
 0xdc4   :  { %3405 = vmatmul.msk.bf16.vlgmr.msra.gmra.mxu0 %vm91_vm4, %v829_v36  ;;  %3409 = vmatmul.msk.bf16.vlgmr.msra.gmra.mxu2 %vm91_vm4, %v829_v36 }
 0xdd1   :  { %v849_v20 = vpop.permute.xlu1 %848 }
 0xdd2   :  { %3406 = vmatmul.msk.bf16.vlgmr.msra.gmra.mxu1 %vm91_vm4, %v849_v20 }
 0xe41   :  { %v842_v22 = vpop.f32.mrf.mxu0 }
 0xe42   :  { %v843_v40 = vadd.f32 %v4546_v39, %v842_v22 }
 0xe47   :  { %v915_v37 = vpop.f32.mrf.mxu2 }
 0xe48   :  { %v919_v38 = vadd.f32 %v3408_v26, %v915_v37  ;;  %v4713_v26 = vld [vmem:[%s5315_s6] ss:$0 sm:$0xff] }
 0xe49   :  { %v844_v18 = vpop.f32.mrf.mxu0 }
 0xe4a   :  { %4189 = vtanh.f32 %v919_v38  ;;  %v3410_v29 = vmul.f32 -1.442695, %v919_v38 }
 0xe4f   :  { %v862_v41 = vpop.f32.mrf.mxu1  ;;  %v917_v42 = vpop.f32.mrf.mxu2 }
 0xe50   :  { %v4190_v0 = vpop.eup %4189  ;;  %v866_v43 = vadd.f32 %v862_v41, %v843_v40 }
 0xe51   :  { %942 = vrot.lane.b32.xlu2 %v4190_v0, %s4384_s22 }
 0xe52   :  { %4191 = vtanh.f32 %v866_v43  ;;  %v3407_v39 = vmul.f32 -1.442695, %v866_v43 }
 0xe53   :  { %4193 = vpow2.f32 %v3410_v29 }
 0xe57   :  { %v864_v27 = vpop.f32.mrf.mxu1 }
 0xe58   :  { %v4192_v1 = vpop.eup %4191 }
 0xe59   :  { %889 = vrot.lane.b32.xlu0 %v4192_v1, %s4384_s22  ;;  %v4194_v44 = vpop.eup %4193 }
 0xe5a   :  { %v923_v45 = vadd.f32 1.0, %v4194_v44 }
 0xe5c   :  { %4195 = vrcp.f32 %v923_v45  ;;  %v935_v49 = vand.u32 2147483648, %v923_v45  ;;  %vm929_vm0 = vweird.f32 %v923_v45  ;;  %v933_v50 = vand.u32 2147483647, %v923_v45 }
 0xe5d   :  { %4197 = vpow2.f32 %v3407_v39 }
 0xe5e   :  { %v936_v53 = vor.u32 1.1754944e-38, %v935_v49  ;;  %vm934_vm2 = vcmp.eq.f32.partialorder %v933_v50, 8.507059e+37 }
 0xe62   :  { %v4196_v28 = vpop.eup %4195 }
 0xe63   :  { %v925_v30 = vmul.f32 %v4196_v28, %v923_v45  ;;  %vm930_vm15 = vweird.f32 %v4196_v28  ;;  %v4198_v51 = vpop.eup %4197 }
 0xe64   :  { %vm931_vm1 = vmor %vm929_vm0, %vm930_vm15  ;;  %v870_v54 = vadd.f32 1.0, %v4198_v51 }
 0xe65   :  { %v926_v46 = vsub.f32 1.0, %v925_v30 }
 0xe66   :  { %4199 = vrcp.f32 %v870_v54  ;;  %v882_v63 = vand.u32 2147483648, %v870_v54  ;;  %vm876_vm5 = vweird.f32 %v870_v54  ;;  %v880_v2 = vand.u32 2147483647, %v870_v54 }
 0xe67   :  { %v927_v47 = vmul.f32 %v4196_v28, %v926_v46 }
 0xe68   :  { %v883_v4 = vor.u32 1.1754944e-38, %v882_v63  ;;  %vm881_vm7 = vcmp.eq.f32.partialorder %v880_v2, 8.507059e+37 }
 0xe69   :  { %v928_v48 = vadd.f32 %v4196_v28, %v927_v47 }
 0xe6b   :  { %v932_v52 = vsel %vm931_vm1, %v4196_v28, %v928_v48 }
 0xe6c   :  { %v937_v55 = vsel %vm934_vm2, %v936_v53, %v932_v52  ;;  %v4200_v58 = vpop.eup %4199 }
 0xe6d   :  { %v872_v59 = vmul.f32 %v4200_v58, %v870_v54  ;;  %vm877_vm3 = vweird.f32 %v4200_v58  ;;  %v940_v8 = vmul.f32 %v937_v55, %v4669_v16 }
 0xe6e   :  { %vm878_vm6 = vmor %vm876_vm5, %vm877_vm3 }
 0xe6f   :  { %v873_v60 = vsub.f32 1.0, %v872_v59 }
 0xe71   :  { %v874_v61 = vmul.f32 %v4200_v58, %v873_v60 }
 0xe73   :  { %v875_v62 = vadd.f32 %v4200_v58, %v874_v61 }
 0xe75   :  { %v879_v3 = vsel %vm878_vm6, %v4200_v58, %v875_v62 }
 0xe76   :  { %v884_v6 = vsel %vm881_vm7, %v883_v4, %v879_v3 }
 0xe77   :  { %v887_v11 = vmul.f32 %v884_v6, %v4674_v24 }
 0xeab   :  { %v943_v56 = vpop.permute.xlu2 %942 }
 0xeac   :  { %v945_v57 = vmul.f32 %v943_v56, %v937_v55 }
 0xeae   :  { %947 = vrot.lane.b32.xlu1 %v945_v57, %s4385_s3 }
 0xecb   :  { %v890_v5 = vpop.permute.xlu0 %889 }
 0xecc   :  { %v892_v7 = vmul.f32 %v890_v5, %v884_v6 }
 0xece   :  { %894 = vrot.lane.b32.xlu2 %v892_v7, %s4385_s3 }
 0xf20   :  { %v948_v9 = vpop.permute.xlu1 %947 }
 0xf21   :  { %v4692_v10 = vadd.f32 %v948_v9, %v940_v8 }
 0xf23   :  { %4201 = vtanh.f32 %v4692_v10 }
 0xf28   :  { %v895_v12 = vpop.permute.xlu2 %894 }
 0xf29   :  { %v4202_v13 = vpop.eup %4201  ;;  %v4696_v14 = vadd.f32 %v895_v12, %v887_v11 }
 0xf2a   :  { %953 = vrot.lane.b32.xlu0 %v4202_v13, %s4384_s22 }
 0xf2b   :  { %4203 = vtanh.f32 %v4696_v14 }
 0xf31   :  { %v4204_v15 = vpop.eup %4203 }
 0xf32   :  { %900 = vrot.lane.b32.xlu1 %v4204_v15, %s4384_s22  ;;  %v4386_v15 = vmov 0.0  }
 0xf33   :  { %1166 = vst [vmem:[#allocation6] sm:$0x3] %v4386_v15 }
 0xf9c   :  { %v954_v17 = vpop.permute.xlu0 %953 }
 0xf9d   :  { %v956_v16 = vmul.f32 %v954_v17, %v937_v55  ;;  %v3972_v17 = vld [vmem:[%s5316_s7] sm:$0xff] }
 0xf9f   :  { %v957_v19 = vpack.c.bf16 %v956_v16, %v956_v16 }
 0xfa1   :  { %959 = vrot.lane.b32.xlu2 %v957_v19, %s4385_s3 }
 0xfa4   :  { %v901_v21 = vpop.permute.xlu1 %900 }
 0xfa5   :  { %v903_v31 = vmul.f32 %v901_v21, %v884_v6 }
 0xfa7   :  { %v977_v32 = vpack.c.bf16 %v903_v31, %v903_v31  ;;  %v1167_v31 = vld [vmem:[%s5310_s1] sm:$0x3] }
 0xfa8   :  { %1168 = vst [vmem:[#allocation2] sm:$0x3] %v1167_v31 }
 0xfa9   :  { %979 = vrot.lane.b32.xlu0 %v977_v32, %s4385_s3 }
 0xffb   :  { %v960_v24 = vpop.permute.xlu2 %959 }
 0xffc   :  { %3411 = vmatmul.msk.bf16.vlgmr.msra.gmra.mxu3 %vm91_vm4, %v960_v24  ;;  %3415 = vmatmul.msk.bf16.vlgmr.msrb.gmra.mxu1 %vm91_vm4, %v960_v24 }
0x101b   :  { %v980_v25 = vpop.permute.xlu0 %979 }
0x101c   :  { %3412 = vmatmul.msk.bf16.vlgmr.msrb.gmra.mxu0 %vm91_vm4, %v980_v25  ;;  %v1169_v25 = vld [vmem:[#allocation2] sm:$0x3] }
0x1079   :  { %v1046_v34 = vpop.f32.mrf.mxu1 }
0x107a   :  { %v1050_v35 = vadd.f32 %v3414_v33, %v1046_v34 }
0x107c   :  { %4205 = vtanh.f32 %v1050_v35  ;;  %v3416_v42 = vmul.f32 -1.442695, %v1050_v35 }
0x107f   :  { %v973_v23 = vpop.f32.mrf.mxu3 }
0x1080   :  { %v974_v37 = vadd.f32 %v4713_v26, %v973_v23 }
0x1081   :  { %v1048_v36 = vpop.f32.mrf.mxu1 }
0x1082   :  { %v4206_v20 = vpop.eup %4205 }
0x1083   :  { %1073 = vrot.lane.b32.xlu1 %v4206_v20, %s4384_s22 }
0x1087   :  { %v975_v22 = vpop.f32.mrf.mxu3 }
0x1099   :  { %v993_v38 = vpop.f32.mrf.mxu0 }
0x109a   :  { %v997_v18 = vadd.f32 %v993_v38, %v974_v37 }
0x109c   :  { %4207 = vtanh.f32 %v997_v18  ;;  %v3413_v0 = vmul.f32 -1.442695, %v997_v18 }
0x109d   :  { %4209 = vpow2.f32 %v3416_v42 }
0x109e   :  { %4211 = vpow2.f32 %v3413_v0 }
0x10a1   :  { %v995_v40 = vpop.f32.mrf.mxu0 }
0x10a2   :  { %v4208_v41 = vpop.eup %4207 }
0x10a3   :  { %1020 = vrot.lane.b32.xlu2 %v4208_v41, %s4384_s22  ;;  %v4210_v43 = vpop.eup %4209 }
0x10a4   :  { %v1054_v27 = vadd.f32 1.0, %v4210_v43  ;;  %v4212_v1 = vpop.eup %4211 }
0x10a5   :  { %v1001_v29 = vadd.f32 1.0, %v4212_v1 }
0x10a6   :  { %4213 = vrcp.f32 %v1054_v27  ;;  %v1066_v49 = vand.u32 2147483648, %v1054_v27  ;;  %vm1060_vm9 = vweird.f32 %v1054_v27  ;;  %v1064_v50 = vand.u32 2147483647, %v1054_v27 }
0x10a7   :  { %4215 = vrcp.f32 %v1001_v29  ;;  %v1013_v58 = vand.u32 2147483648, %v1001_v29  ;;  %vm1007_vm13 = vweird.f32 %v1001_v29  ;;  %v1011_v59 = vand.u32 2147483647, %v1001_v29 }
0x10a8   :  { %v1067_v53 = vor.u32 1.1754944e-38, %v1066_v49  ;;  %vm1065_vm11 = vcmp.eq.f32.partialorder %v1064_v50, 8.507059e+37 }
0x10a9   :  { %v1014_v61 = vor.u32 1.1754944e-38, %v1013_v58  ;;  %vm1012_vm15 = vcmp.eq.f32.partialorder %v1011_v59, 8.507059e+37 }
0x10ac   :  { %v4214_v44 = vpop.eup %4213 }
0x10ad   :  { %v1056_v45 = vmul.f32 %v4214_v44, %v1054_v27  ;;  %v4216_v30 = vpop.eup %4215  ;;  %vm1061_vm8 = vweird.f32 %v4214_v44 }
0x10ae   :  { %v1003_v39 = vmul.f32 %v4216_v30, %v1001_v29  ;;  %vm1062_vm10 = vmor %vm1060_vm9, %vm1061_vm8  ;;  %vm1008_vm12 = vweird.f32 %v4216_v30 }
0x10af   :  { %v1057_v28 = vsub.f32 1.0, %v1056_v45  ;;  %vm1009_vm14 = vmor %vm1007_vm13, %vm1008_vm12 }
0x10b0   :  { %v1004_v48 = vsub.f32 1.0, %v1003_v39 }
0x10b1   :  { %v1058_v46 = vmul.f32 %v4214_v44, %v1057_v28 }
0x10b2   :  { %v1005_v52 = vmul.f32 %v4216_v30, %v1004_v48 }
0x10b3   :  { %v1059_v47 = vadd.f32 %v4214_v44, %v1058_v46 }
0x10b4   :  { %v1006_v57 = vadd.f32 %v4216_v30, %v1005_v52 }
0x10b5   :  { %v1063_v51 = vsel %vm1062_vm10, %v4214_v44, %v1059_v47 }
0x10b6   :  { %v1068_v55 = vsel %vm1065_vm11, %v1067_v53, %v1063_v51  ;;  %v1010_v60 = vsel %vm1009_vm14, %v4216_v30, %v1006_v57 }
0x10b7   :  { %v1015_v63 = vsel %vm1012_vm15, %v1014_v61, %v1010_v60  ;;  %v1071_v3 = vmul.f32 %v1068_v55, %v4692_v10 }
0x10b8   :  { %v1018_v6 = vmul.f32 %v1015_v63, %v4696_v14  ;;  %v3973_v14 = vld [vmem:[%s5316_s7 + $0x8] sm:$0xff] }
0x10b9   :  { %1192 = vmatpush.bf16.msra.mxu0 %v3973_v14 }
0x10bd   :  { %1193 = vmatpush.bf16.msra.mxu0 %v3972_v17 }
0x10f5   :  { %v1074_v54 = vpop.permute.xlu1 %1073 }
0x10f6   :  { %v1076_v56 = vmul.f32 %v1074_v54, %v1068_v55 }
0x10f8   :  { %1078 = vrot.lane.b32.xlu0 %v1076_v56, %s4385_s3 }
0x10fd   :  { %v1021_v62 = vpop.permute.xlu2 %1020 }
0x10fe   :  { %v1023_v2 = vmul.f32 %v1021_v62, %v1015_v63 }
0x1100   :  { %1025 = vrot.lane.b32.xlu1 %v1023_v2, %s4385_s3 }
0x116a   :  { %v1079_v4 = vpop.permute.xlu0 %1078 }
0x116b   :  { %v4720_v5 = vadd.f32 %v1079_v4, %v1071_v3 }
0x116d   :  { %4217 = vtanh.f32 %v4720_v5 }
0x1172   :  { %v1026_v7 = vpop.permute.xlu1 %1025 }
0x1173   :  { %v4218_v8 = vpop.eup %4217  ;;  %v4724_v9 = vadd.f32 %v1026_v7, %v1018_v6 }
0x1174   :  { %1084 = vrot.lane.b32.xlu2 %v4218_v8, %s4384_s22 }
0x1175   :  { %4219 = vtanh.f32 %v4724_v9 }
0x117b   :  { %v4220_v11 = vpop.eup %4219 }
0x117c   :  { %1031 = vrot.lane.b32.xlu0 %v4220_v11, %s4384_s22 }
0x11ce   :  { %v1085_v12 = vpop.permute.xlu2 %1084 }
0x11cf   :  { %v1087_v10 = vmul.f32 %v1085_v12, %v1068_v55  ;;  %v3977_v12 = vld [vmem:[%s5318_s9 + $0x8] sm:$0xff] }
0x11d0   :  { %1302 = vmatpush.bf16.msra.mxu2 %v3977_v12 }
0x11d1   :  { %v1088_v13 = vpack.c.bf16 %v1087_v10, %v1087_v10 }
0x11d3   :  { %1090 = vrot.lane.b32.xlu1 %v1088_v13, %s4385_s3 }
0x11ee   :  { %v1032_v16 = vpop.permute.xlu0 %1031 }
0x11ef   :  { %v1034_v19 = vmul.f32 %v1032_v16, %v1015_v63 }
0x11f1   :  { %v1108_v21 = vpack.c.bf16 %v1034_v19, %v1034_v19  ;;  %v3976_v19 = vld [vmem:[%s5318_s9] sm:$0xff] }
0x11f2   :  { %1303 = vmatpush.bf16.msra.mxu2 %v3976_v19 }
0x11f3   :  { %1110 = vrot.lane.b32.xlu2 %v1108_v21, %s4385_s3 }
0x1245   :  { %v1091_v32 = vpop.permute.xlu1 %1090 }
0x1246   :  { %3417 = vmatmul.msk.bf16.vlgmr.msrb.gmra.mxu2 %vm91_vm4, %v1091_v32  ;;  %3428 = vmatmul.msk.bf16.vlgmr.msra.gmra.mxu0 %vm91_vm4, %v1091_v32 }
0x124d   :  { %v1111_v24 = vpop.permute.xlu2 %1110 }
0x124e   :  { %3418 = vmatmul.msk.bf16.vlgmr.msrb.gmra.mxu3 %vm91_vm4, %v1111_v24 }
0x12c3   :  { %v1195_v33 = vpop.f32.mrf.mxu0 }
0x12c4   :  { %v1199_v34 = vadd.f32 %v1195_v33, %v1169_v25  ;;  %v4777_v25 = vld [vmem:[%s5319_s10] ss:$0 sm:$0xff] }
0x12c6   :  { %4221 = vtanh.f32 %v1199_v34  ;;  %v3429_v41 = vmul.f32 -1.442695, %v1199_v34 }
0x12c9   :  { %v1104_v35 = vpop.f32.mrf.mxu2 }
0x12ca   :  { %v1105_v20 = vadd.f32 %v4713_v26, %v1104_v35 }
0x12cb   :  { %v1197_v23 = vpop.f32.mrf.mxu0 }
0x12cc   :  { %v4222_v36 = vpop.eup %4221 }
0x12cd   :  { %1222 = vrot.lane.b32.xlu1 %v4222_v36, %s4384_s22 }
0x12d1   :  { %v1106_v22 = vpop.f32.mrf.mxu2  ;;  %v1124_v37 = vpop.f32.mrf.mxu3 }
0x12d2   :  { %v1128_v38 = vadd.f32 %v1124_v37, %v1105_v20 }
0x12d4   :  { %4223 = vtanh.f32 %v1128_v38  ;;  %v3419_v43 = vmul.f32 -1.442695, %v1128_v38 }
0x12d5   :  { %4225 = vpow2.f32 %v3429_v41 }
0x12d9   :  { %v1126_v18 = vpop.f32.mrf.mxu3 }
0x12da   :  { %v4224_v40 = vpop.eup %4223 }
0x12db   :  { %1151 = vrot.lane.b32.xlu0 %v4224_v40, %s4384_s22  ;;  %v4226_v42 = vpop.eup %4225 }
0x12dc   :  { %v1203_v0 = vadd.f32 1.0, %v4226_v42 }
0x12de   :  { %4227 = vrcp.f32 %v1203_v0  ;;  %v1215_v46 = vand.u32 2147483648, %v1203_v0  ;;  %vm1209_vm1 = vweird.f32 %v1203_v0  ;;  %v1213_v39 = vand.u32 2147483647, %v1203_v0 }
0x12df   :  { %4229 = vpow2.f32 %v3419_v43 }
0x12e0   :  { %v1216_v49 = vor.u32 1.1754944e-38, %v1215_v46  ;;  %vm1214_vm3 = vcmp.eq.f32.partialorder %v1213_v39, 8.507059e+37  ;;  %v3979_v39 = vld [vmem:[%s5321_s12 + $0x8] sm:$0xff] }
0x12e1   :  { %1376 = vmatpush.bf16.msra.mxu3 %v3979_v39 }
0x12e4   :  { %v4228_v27 = vpop.eup %4227 }
0x12e5   :  { %v4230_v1 = vpop.eup %4229  ;;  %v1205_v29 = vmul.f32 %v4228_v27, %v1203_v0  ;;  %vm1210_vm0 = vweird.f32 %v4228_v27 }
0x12e6   :  { %v1132_v44 = vadd.f32 1.0, %v4230_v1  ;;  %vm1211_vm2 = vmor %vm1209_vm1, %vm1210_vm0 }
0x12e7   :  { %v1206_v26 = vsub.f32 1.0, %v1205_v29 }
0x12e8   :  { %4231 = vrcp.f32 %v1132_v44  ;;  %v1144_v56 = vand.u32 2147483648, %v1132_v44  ;;  %vm1138_vm6 = vweird.f32 %v1132_v44  ;;  %v1142_v57 = vand.u32 2147483647, %v1132_v44 }
0x12e9   :  { %v1207_v45 = vmul.f32 %v4228_v27, %v1206_v26 }
0x12ea   :  { %v1145_v59 = vor.u32 1.1754944e-38, %v1144_v56  ;;  %vm1143_vm8 = vcmp.eq.f32.partialorder %v1142_v57, 8.507059e+37 }
0x12eb   :  { %v1208_v30 = vadd.f32 %v4228_v27, %v1207_v45 }
0x12ed   :  { %v1212_v48 = vsel %vm1211_vm2, %v4228_v27, %v1208_v30 }
0x12ee   :  { %v4232_v28 = vpop.eup %4231  ;;  %v1217_v52 = vsel %vm1214_vm3, %v1216_v49, %v1212_v48 }
0x12ef   :  { %v1134_v47 = vmul.f32 %v4232_v28, %v1132_v44  ;;  %vm1139_vm5 = vweird.f32 %v4232_v28  ;;  %v1220_v6 = vmul.f32 %v1217_v52, %v4720_v5  ;;  %v3974_v5 = vld [vmem:[%s5317_s8] sm:$0xff] }
0x12f0   :  { %vm1140_vm7 = vmor %vm1138_vm6, %vm1139_vm5 }
0x12f1   :  { %v1135_v50 = vsub.f32 1.0, %v1134_v47  ;;  %v3978_v47 = vld [vmem:[%s5321_s12] sm:$0xff] }
0x12f2   :  { %1377 = vmatpush.bf16.msra.mxu3 %v3978_v47 }
0x12f3   :  { %v1136_v54 = vmul.f32 %v4232_v28, %v1135_v50 }
0x12f5   :  { %v1137_v55 = vadd.f32 %v4232_v28, %v1136_v54 }
0x12f7   :  { %v1141_v58 = vsel %vm1140_vm7, %v4232_v28, %v1137_v55 }
0x12f8   :  { %v1146_v61 = vsel %vm1143_vm8, %v1145_v59, %v1141_v58 }
0x12f9   :  { %v1149_v63 = vmul.f32 %v1146_v61, %v4724_v9  ;;  %v3975_v9 = vld [vmem:[%s5317_s8 + $0x8] sm:$0xff] }
0x12fa   :  { %1266 = vmatpush.bf16.msra.mxu1 %v3975_v9 }
0x12fe   :  { %1267 = vmatpush.bf16.msra.mxu1 %v3974_v5 }
0x133f   :  { %v1223_v51 = vpop.permute.xlu1 %1222 }
0x1340   :  { %v1225_v53 = vmul.f32 %v1223_v51, %v1217_v52 }
0x1342   :  { %1227 = vrot.lane.b32.xlu0 %v1225_v53, %s4385_s3 }
0x134d   :  { %v1152_v60 = vpop.permute.xlu0 %1151 }
0x134e   :  { %v1154_v62 = vmul.f32 %v1152_v60, %v1146_v61 }
0x1350   :  { %1156 = vrot.lane.b32.xlu2 %v1154_v62, %s4385_s3 }
0x13aa   :  { %v1157_v2 = vpop.permute.xlu2 %1156 }
0x13ab   :  { %v1159_v3 = vadd.f32 %v1157_v2, %v1149_v63 }
0x13ad   :  { %4233 = vtanh.f32 %v1159_v3 }
0x13b3   :  { %v4234_v4 = vpop.eup %4233 }
0x13b4   :  { %v1228_v7 = vpop.permute.xlu0 %1227  ;;  %1162 = vrot.lane.b32.xlu1 %v4234_v4, %s4384_s22 }
0x13b5   :  { %v4751_v8 = vadd.f32 %v1228_v7, %v1220_v6 }
0x13b7   :  { %4235 = vtanh.f32 %v4751_v8 }
0x13bd   :  { %v4236_v11 = vpop.eup %4235 }
0x13be   :  { %1233 = vrot.lane.b32.xlu2 %v4236_v11, %s4384_s22 }
0x1418   :  { %v1234_v10 = vpop.permute.xlu2 %1233 }
0x1419   :  { %v1236_v13 = vmul.f32 %v1234_v10, %v1217_v52  ;;  %v4800_v52 = vld [vmem:[%s5322_s13] ss:$0 sm:$0xff] }
0x141b   :  { %v1237_v14 = vpack.c.bf16 %v1236_v13, %v1236_v13 }
0x141d   :  { %1243 = vrot.lane.b32.xlu1 %v1237_v14, %s4385_s3 }
0x1426   :  { %v1163_v15 = vpop.permute.xlu1 %1162 }
0x1427   :  { %v1165_v17 = vmul.f32 %v1163_v15, %v1146_v61 }
0x1429   :  { %v1273_v16 = vpack.c.bf16 %v1165_v17, %v1165_v17 }
0x142b   :  { %1279 = vrot.lane.b32.xlu0 %v1273_v16, %s4385_s3 }
0x148f   :  { %v4769_v21 = vpop.permute.xlu1 %1243 }
0x1490   :  { %3438 = vmatmul.msk.bf16.vlgmr.msra.gmra.mxu1 %vm91_vm4, %v4769_v21 }
0x149d   :  { %v1280_v31 = vpop.permute.xlu0 %1279 }
0x149e   :  { %3447 = vmatmul.msk.bf16.vlgmr.msra.gmra.mxu2 %vm91_vm4, %v1280_v31 }
0x150d   :  { %v1269_v32 = vpop.f32.mrf.mxu1 }
0x150e   :  { %v1270_v33 = vadd.f32 %v4777_v25, %v1269_v32 }
0x1515   :  { %v1271_v24 = vpop.f32.mrf.mxu1 }
0x1521   :  { %v1305_v34 = vpop.f32.mrf.mxu2 }
0x1522   :  { %v1309_v35 = vadd.f32 %v1305_v34, %v1270_v33 }
0x1524   :  { %4237 = vtanh.f32 %v1309_v35  ;;  %v3448_v20 = vmul.f32 -1.442695, %v1309_v35 }
0x1526   :  { %4239 = vpow2.f32 %v3448_v20 }
0x1529   :  { %v1307_v23 = vpop.f32.mrf.mxu2 }
0x152a   :  { %v4238_v36 = vpop.eup %4237 }
0x152b   :  { %1332 = vrot.lane.b32.xlu2 %v4238_v36, %s4384_s22 }
0x152c   :  { %v4240_v22 = vpop.eup %4239 }
0x152d   :  { %v1313_v37 = vadd.f32 1.0, %v4240_v22 }
0x152f   :  { %4241 = vrcp.f32 %v1313_v37  ;;  %v1325_v0 = vand.u32 2147483648, %v1313_v37  ;;  %vm1319_vm10 = vweird.f32 %v1313_v37  ;;  %v1323_v43 = vand.u32 2147483647, %v1313_v37 }
0x1531   :  { %v1326_v1 = vor.u32 1.1754944e-38, %v1325_v0  ;;  %vm1324_vm12 = vcmp.eq.f32.partialorder %v1323_v43, 8.507059e+37 }
0x1535   :  { %v4242_v38 = vpop.eup %4241 }
0x1536   :  { %v1315_v18 = vmul.f32 %v4242_v38, %v1313_v37  ;;  %vm1320_vm9 = vweird.f32 %v4242_v38 }
0x1537   :  { %vm1321_vm11 = vmor %vm1319_vm10, %vm1320_vm9 }
0x1538   :  { %v1316_v40 = vsub.f32 1.0, %v1315_v18 }
0x153a   :  { %v1317_v41 = vmul.f32 %v4242_v38, %v1316_v40 }
0x153c   :  { %v1318_v42 = vadd.f32 %v4242_v38, %v1317_v41 }
0x153e   :  { %v1322_v27 = vsel %vm1321_vm11, %v4242_v38, %v1318_v42 }
0x153f   :  { %v1327_v44 = vsel %vm1324_vm12, %v1326_v1, %v1322_v27 }
0x1540   :  { %v1330_v45 = vmul.f32 %v1327_v44, %v1159_v3 }
0x1585   :  { %v1333_v29 = vpop.permute.xlu2 %1332 }
0x1586   :  { %v1335_v26 = vmul.f32 %v1333_v29, %v1327_v44 }
0x1588   :  { %1337 = vrot.lane.b32.xlu0 %v1335_v26, %s4385_s3 }
0x15fa   :  { %v1338_v28 = vpop.permute.xlu0 %1337 }
0x15fb   :  { %v4782_v30 = vadd.f32 %v1338_v28, %v1330_v45 }
0x15fd   :  { %4243 = vtanh.f32 %v4782_v30 }
0x1603   :  { %v4244_v46 = vpop.eup %4243 }
0x1604   :  { %1343 = vrot.lane.b32.xlu1 %v4244_v46, %s4384_s22 }
0x1676   :  { %v1344_v48 = vpop.permute.xlu1 %1343 }
0x1677   :  { %v1346_v49 = vmul.f32 %v1344_v48, %v1327_v44 }
0x1679   :  { %v1347_v50 = vpack.c.bf16 %v1346_v49, %v1346_v49 }
0x167b   :  { %1353 = vrot.lane.b32.xlu2 %v1347_v50, %s4385_s3 }
0x16d5   :  { %v4793_v51 = vpop.permute.xlu2 %1353 }
0x16d6   :  { %3457 = vmatmul.msk.bf16.vlgmr.msra.gmra.mxu3 %vm91_vm4, %v4793_v51 }
0x1759   :  { %v1379_v53 = vpop.f32.mrf.mxu3 }
0x175a   :  { %v1380_v54 = vadd.f32 %v4800_v52, %v1379_v53 }
0x175c   :  { %1384 = vst [vmem:[#allocation6 + $0x2] sm:$0x3] %v1380_v54 }
0x175d   :  { %1389 = sbr.rel (%p3459_p0) target bundleno = 5988 (0x1764), region = 65 }
0x1761   :  { %v1381_v55 = vpop.f32.mrf.mxu3 }
0x1762   :  { %v3460_v56 = vld [vmem:[%s5310_s1 + $0x2] sm:$0x3] }
0x1763   :  { %1392 = vst [vmem:[#allocation2] sm:$0x3] %v3460_v56 }
0x1764 PF:  { %s3461_s15 = sld [smem:[#allocation3 + $0x1]] }
0x176a   :  { %p3462_p1 = scmp.ne.s32.totalorder %s3461_s15, 0 }
0x176c   :  { %1397 = sbr.rel (%p3462_p1) target bundleno = 6255 (0x186f), region = 69 }
0x1771   :  { %vm1398_vm13 = vcmask 1041408   ;;  %v3987_v57 = vld [vmem:[%s5320_s11 + $0x38] sm:$0xff]  ;;  %v3986_v59 = vld [vmem:[%s5320_s11 + $0x30] sm:$0xff]  ;;  %v3985_v60 = vld [vmem:[%s5320_s11 + $0x28] sm:$0xff]  ;;  %v4387_v6 = vmov 1.0|1.0  }
0x1772   :  { %v1399_v58 = vsel %vm1398_vm13, %v1380_v54, -inf  ;;  %1470 = vmatpush.bf16.msra.mxu0 %v3987_v57  ;;  %v3984_v61 = vld [vmem:[%s5320_s11 + $0x20] sm:$0xff]  ;;  %v3983_v62 = vld [vmem:[%s5320_s11 + $0x18] sm:$0xff]  ;;  %v3982_v63 = vld [vmem:[%s5320_s11 + $0x10] sm:$0xff] }
0x1773   :  { %1400 = vmax.xlane.f32.xlu0 %v1399_v58  ;;  %v3981_v2 = vld [vmem:[%s5320_s11 + $0x8] sm:$0xff]  ;;  %v3980_v3 = vld [vmem:[%s5320_s11] sm:$0xff] }
0x1776   :  { %1471 = vmatpush.bf16.msra.mxu0 %v3986_v59 }
0x177a   :  { %1472 = vmatpush.bf16.msra.mxu0 %v3985_v60 }
0x177e   :  { %1473 = vmatpush.bf16.msra.mxu0 %v3984_v61 }
0x1782   :  { %1474 = vmatpush.bf16.msra.mxu0 %v3983_v62 }
0x1786   :  { %1475 = vmatpush.bf16.msra.mxu0 %v3982_v63 }
0x178a   :  { %1476 = vmatpush.bf16.msra.mxu0 %v3981_v2 }
0x178e   :  { %1477 = vmatpush.bf16.msra.mxu0 %v3980_v3 }
0x17e6   :  { %v1401_v4 = vpop.xlane.xlu0 %1400 }
0x17e7   :  { %vm1402_vm14 = vcmp.eq.f32.partialorder %v1380_v54, %v1401_v4 }
0x17e8   :  { %vm3496_vm15 = vmpackc.low %vm1402_vm14, %vm1402_vm14 }
0x17e9   :  { %3497 = vmatmul.msk.bf16.vlgmr.msra.gmra.mxu0 %vm3496_vm15, %v4387_v6 }
0x1866   :  { %v1479_v7 = vpop.f32.mrf.mxu0 }
0x1867   :  { %1483 = vst [vmem:[#allocation2] sm:$0x3] %v1479_v7 }
0x186e   :  { %v1481_v11 = vpop.f32.mrf.mxu0 }
0x186f PF:  { %v3989_v9 = vld [vmem:[%s5316_s7 + $0x8] sm:$0xff]  ;;  %v3988_v12 = vld [vmem:[%s5316_s7] sm:$0xff]  ;;  %s3536_s25 = sld [smem:[#allocation3 + $0x2]] }
0x1870   :  { %1507 = vmatpush.bf16.msra.mxu0 %v3989_v9  ;;  %v1484_v5 = vld [vmem:[#allocation2] sm:$0x3]  ;;  %v3993_v42 = vld [vmem:[%s5318_s9 + $0x8] sm:$0xff] }
0x1871   :  { %v3991_v0 = vld [vmem:[%s5317_s8 + $0x8] sm:$0xff]  ;;  %1610 = vmatpush.bf16.msra.mxu2 %v3993_v42  ;;  %v3990_v43 = vld [vmem:[%s5317_s8] sm:$0xff] }
0x1872   :  { %1581 = vmatpush.bf16.msra.mxu1 %v3991_v0  ;;  %v3995_v11 = vld [vmem:[%s5321_s12 + $0x8] sm:$0xff]  ;;  %v3994_v9 = vld [vmem:[%s5321_s12] sm:$0xff] }
0x1873   :  { %1684 = vmatpush.bf16.msra.mxu3 %v3995_v11 }
0x1874   :  { %1508 = vmatpush.bf16.msra.mxu0 %v3988_v12 }
0x1875   :  { %p3537_p2 = scmp.le.s32.totalorder %s3536_s25, 0 }
0x1876   :  { %1582 = vmatpush.bf16.msra.mxu1 %v3990_v43 }
0x1877   :  { %3506 = vmatmul.msk.bf16.vlgmr.msra.gmra.mxu0 %vm91_vm4, %v4769_v21  ;;  %1685 = vmatpush.bf16.msra.mxu3 %v3994_v9 }
0x18f4   :  { %v1510_v10 = vpop.f32.mrf.mxu0 }
0x18f5   :  { %v1514_v13 = vadd.f32 %v1510_v10, %v1484_v5 }
0x18f7   :  { %4246 = vtanh.f32 %v1514_v13  ;;  %v3507_v17 = vmul.f32 -1.442695, %v1514_v13 }
0x18f9   :  { %4248 = vpow2.f32 %v3507_v17 }
0x18fc   :  { %v1512_v14 = vpop.f32.mrf.mxu0 }
0x18fd   :  { %v4247_v15 = vpop.eup %4246 }
0x18fe   :  { %1537 = vrot.lane.b32.xlu0 %v4247_v15, %s4384_s22 }
0x18ff   :  { %v4249_v16 = vpop.eup %4248 }
0x1900   :  { %v1518_v19 = vadd.f32 1.0, %v4249_v16 }
0x1902   :  { %4250 = vrcp.f32 %v1518_v19  ;;  %v1530_v21 = vand.u32 2147483648, %v1518_v19  ;;  %vm1524_vm1 = vweird.f32 %v1518_v19  ;;  %v1528_v35 = vand.u32 2147483647, %v1518_v19 }
0x1904   :  { %v1531_v36 = vor.u32 1.1754944e-38, %v1530_v21  ;;  %vm1529_vm3 = vcmp.eq.f32.partialorder %v1528_v35, 8.507059e+37 }
0x1908   :  { %v4251_v31 = vpop.eup %4250 }
0x1909   :  { %v1520_v32 = vmul.f32 %v4251_v31, %v1518_v19  ;;  %vm1525_vm0 = vweird.f32 %v4251_v31 }
0x190a   :  { %vm1526_vm2 = vmor %vm1524_vm1, %vm1525_vm0 }
0x190b   :  { %v1521_v24 = vsub.f32 1.0, %v1520_v32 }
0x190d   :  { %v1522_v33 = vmul.f32 %v4251_v31, %v1521_v24 }
0x190f   :  { %v1523_v34 = vadd.f32 %v4251_v31, %v1522_v33 }
0x1911   :  { %v1527_v23 = vsel %vm1526_vm2, %v4251_v31, %v1523_v34 }
0x1912   :  { %v1532_v22 = vsel %vm1529_vm3, %v1531_v36, %v1527_v23 }
0x1913   :  { %v1535_v38 = vmul.f32 %v1532_v22, %v4751_v8  ;;  %v3992_v8 = vld [vmem:[%s5318_s9] sm:$0xff] }
0x1914   :  { %1611 = vmatpush.bf16.msra.mxu2 %v3992_v8 }
0x1917   :  { %3525 = vmatmul.msk.bf16.vlgmr.msra.gmra.mxu2 %vm91_vm4, %v4793_v51 }
0x1970   :  { %v1538_v20 = vpop.permute.xlu0 %1537 }
0x1971   :  { %v1540_v37 = vmul.f32 %v1538_v20, %v1532_v22 }
0x1973   :  { %1542 = vrot.lane.b32.xlu0 %v1540_v37, %s4385_s3 }
0x199a   :  { %v1613_v44 = vpop.f32.mrf.mxu2 }
0x19a2   :  { %v1615_v45 = vpop.f32.mrf.mxu2 }
0x19e5   :  { %v1543_v18 = vpop.permute.xlu0 %1542 }
0x19e6   :  { %v4841_v40 = vadd.f32 %v1543_v18, %v1535_v38 }
0x19e8   :  { %4252 = vtanh.f32 %v4841_v40 }
0x19ee   :  { %v4253_v41 = vpop.eup %4252 }
0x19ef   :  { %1548 = vrot.lane.b32.xlu1 %v4253_v41, %s4384_s22 }
0x1a61   :  { %v1549_v27 = vpop.permute.xlu1 %1548 }
0x1a62   :  { %v1551_v1 = vmul.f32 %v1549_v27, %v1532_v22 }
0x1a64   :  { %v1552_v29 = vpack.c.bf16 %v1551_v1, %v1551_v1 }
0x1a66   :  { %1558 = vrot.lane.b32.xlu1 %v1552_v29, %s4385_s3 }
0x1ad8   :  { %v4860_v26 = vpop.permute.xlu1 %1558 }
0x1ad9   :  { %3516 = vmatmul.msk.bf16.vlgmr.msra.gmra.mxu1 %vm91_vm4, %v4860_v26 }
0x1b56   :  { %v1584_v28 = vpop.f32.mrf.mxu1 }
0x1b57   :  { %v1585_v46 = vadd.f32 %v4777_v25, %v1584_v28 }
0x1b59   :  { %v1617_v39 = vadd.f32 %v1613_v44, %v1585_v46 }
0x1b5b   :  { %4254 = vtanh.f32 %v1617_v39  ;;  %v3526_v49 = vmul.f32 -1.442695, %v1617_v39 }
0x1b5d   :  { %4256 = vpow2.f32 %v3526_v49 }
0x1b5e   :  { %v1586_v47 = vpop.f32.mrf.mxu1 }
0x1b61   :  { %v4255_v48 = vpop.eup %4254 }
0x1b62   :  { %1640 = vrot.lane.b32.xlu2 %v4255_v48, %s4384_s22 }
0x1b63   :  { %v4257_v50 = vpop.eup %4256 }
0x1b64   :  { %v1621_v51 = vadd.f32 1.0, %v4257_v50 }
0x1b66   :  { %4258 = vrcp.f32 %v1621_v51  ;;  %v1633_v58 = vand.u32 2147483648, %v1621_v51  ;;  %vm1627_vm6 = vweird.f32 %v1621_v51  ;;  %v1631_v59 = vand.u32 2147483647, %v1621_v51 }
0x1b68   :  { %v1634_v61 = vor.u32 1.1754944e-38, %v1633_v58  ;;  %vm1632_vm8 = vcmp.eq.f32.partialorder %v1631_v59, 8.507059e+37 }
0x1b6c   :  { %v4259_v53 = vpop.eup %4258 }
0x1b6d   :  { %v1623_v54 = vmul.f32 %v4259_v53, %v1621_v51  ;;  %vm1628_vm5 = vweird.f32 %v4259_v53 }
0x1b6e   :  { %vm1629_vm7 = vmor %vm1627_vm6, %vm1628_vm5 }
0x1b6f   :  { %v1624_v55 = vsub.f32 1.0, %v1623_v54 }
0x1b71   :  { %v1625_v56 = vmul.f32 %v4259_v53, %v1624_v55 }
0x1b73   :  { %v1626_v57 = vadd.f32 %v4259_v53, %v1625_v56 }
0x1b75   :  { %v1630_v60 = vsel %vm1629_vm7, %v4259_v53, %v1626_v57 }
0x1b76   :  { %v1635_v63 = vsel %vm1632_vm8, %v1634_v61, %v1630_v60 }
0x1b77   :  { %v1638_v3 = vmul.f32 %v1635_v63, %v4782_v30 }
0x1bbc   :  { %v1641_v62 = vpop.permute.xlu2 %1640 }
0x1bbd   :  { %v1643_v2 = vmul.f32 %v1641_v62, %v1635_v63 }
0x1bbf   :  { %1645 = vrot.lane.b32.xlu2 %v1643_v2, %s4385_s3 }
0x1c19   :  { %v1646_v4 = vpop.permute.xlu2 %1645 }
0x1c1a   :  { %v4868_v6 = vadd.f32 %v1646_v4, %v1638_v3 }
0x1c1c   :  { %4260 = vtanh.f32 %v4868_v6 }
0x1c22   :  { %v4261_v7 = vpop.eup %4260 }
0x1c23   :  { %1651 = vrot.lane.b32.xlu0 %v4261_v7, %s4384_s22 }
0x1c95   :  { %v1652_v12 = vpop.permute.xlu0 %1651 }
0x1c96   :  { %v1654_v30 = vmul.f32 %v1652_v12, %v1635_v63 }
0x1c98   :  { %v1655_v5 = vpack.c.bf16 %v1654_v30, %v1654_v30 }
0x1c9a   :  { %1661 = vrot.lane.b32.xlu1 %v1655_v5, %s4385_s3 }
0x1d0c   :  { %v4879_v10 = vpop.permute.xlu1 %1661 }
0x1d0d   :  { %3535 = vmatmul.msk.bf16.vlgmr.msra.gmra.mxu3 %vm91_vm4, %v4879_v10 }
0x1d90   :  { %v1687_v13 = vpop.f32.mrf.mxu3 }
0x1d91   :  { %v1688_v14 = vadd.f32 %v4800_v52, %v1687_v13 }
0x1d93   :  { %1692 = vst [vmem:[#allocation6 + $0x4] sm:$0x3] %v1688_v14 }
0x1d94   :  { %1697 = sbr.rel (%p3537_p2) target bundleno = 7579 (0x1d9b), region = 73 }
0x1d98   :  { %v1689_v15 = vpop.f32.mrf.mxu3 }
0x1d99   :  { %v3538_v17 = vld [vmem:[%s5310_s1 + $0x4] sm:$0x3] }
0x1d9a   :  { %1700 = vst [vmem:[#allocation2] sm:$0x3] %v3538_v17 }
0x1d9b PF:  { %s3539_s27 = sld [smem:[#allocation3 + $0x2]] }
0x1da1   :  { %p3540_p3 = scmp.ne.s32.totalorder %s3539_s27, 0 }
0x1da3   :  { %1705 = sbr.rel (%p3540_p3) target bundleno = 7846 (0x1ea6), region = 77 }
0x1da8   :  { %vm1706_vm9 = vcmask 1041408   ;;  %v4003_v16 = vld [vmem:[%s5320_s11 + $0x38] sm:$0xff]  ;;  %v4002_v31 = vld [vmem:[%s5320_s11 + $0x30] sm:$0xff]  ;;  %v4001_v32 = vld [vmem:[%s5320_s11 + $0x28] sm:$0xff]  ;;  %v4388_v36 = vmov 1.0|1.0  }
0x1da9   :  { %v1707_v19 = vsel %vm1706_vm9, %v1688_v14, -inf  ;;  %1778 = vmatpush.bf16.msra.mxu0 %v4003_v16  ;;  %v4000_v24 = vld [vmem:[%s5320_s11 + $0x20] sm:$0xff]  ;;  %v3999_v33 = vld [vmem:[%s5320_s11 + $0x18] sm:$0xff]  ;;  %v3998_v34 = vld [vmem:[%s5320_s11 + $0x10] sm:$0xff] }
0x1daa   :  { %1708 = vmax.xlane.f32.xlu0 %v1707_v19  ;;  %v3997_v21 = vld [vmem:[%s5320_s11 + $0x8] sm:$0xff]  ;;  %v3996_v35 = vld [vmem:[%s5320_s11] sm:$0xff] }
0x1dad   :  { %1779 = vmatpush.bf16.msra.mxu0 %v4002_v31 }
0x1db1   :  { %1780 = vmatpush.bf16.msra.mxu0 %v4001_v32 }
0x1db5   :  { %1781 = vmatpush.bf16.msra.mxu0 %v4000_v24 }
0x1db9   :  { %1782 = vmatpush.bf16.msra.mxu0 %v3999_v33 }
0x1dbd   :  { %1783 = vmatpush.bf16.msra.mxu0 %v3998_v34 }
0x1dc1   :  { %1784 = vmatpush.bf16.msra.mxu0 %v3997_v21 }
0x1dc5   :  { %1785 = vmatpush.bf16.msra.mxu0 %v3996_v35 }
0x1e1d   :  { %v1709_v23 = vpop.xlane.xlu0 %1708 }
0x1e1e   :  { %vm1710_vm10 = vcmp.eq.f32.partialorder %v1688_v14, %v1709_v23 }
0x1e1f   :  { %vm3574_vm11 = vmpackc.low %vm1710_vm10, %vm1710_vm10 }
0x1e20   :  { %3575 = vmatmul.msk.bf16.vlgmr.msra.gmra.mxu0 %vm3574_vm11, %v4388_v36 }
0x1e9d   :  { %v1787_v20 = vpop.f32.mrf.mxu0 }
0x1e9e   :  { %1791 = vst [vmem:[#allocation2] sm:$0x3] %v1787_v20 }
0x1ea5   :  { %v1789_v22 = vpop.f32.mrf.mxu0 }
0x1ea6 PF:  { %v4005_v37 = vld [vmem:[%s5316_s7 + $0x8] sm:$0xff]  ;;  %v4004_v38 = vld [vmem:[%s5316_s7] sm:$0xff]  ;;  %s3614_s17 = sld [smem:[#allocation3 + $0x3]] }
0x1ea7   :  { %1815 = vmatpush.bf16.msra.mxu0 %v4005_v37  ;;  %v1792_v18 = vld [vmem:[#allocation2] sm:$0x3]  ;;  %v4009_v57 = vld [vmem:[%s5318_s9 + $0x8] sm:$0xff] }
0x1ea8   :  { %v4007_v58 = vld [vmem:[%s5317_s8 + $0x8] sm:$0xff]  ;;  %1918 = vmatpush.bf16.msra.mxu2 %v4009_v57  ;;  %v4006_v59 = vld [vmem:[%s5317_s8] sm:$0xff] }
0x1ea9   :  { %1889 = vmatpush.bf16.msra.mxu1 %v4007_v58  ;;  %v4011_v22 = vld [vmem:[%s5321_s12 + $0x8] sm:$0xff]  ;;  %v4010_v37 = vld [vmem:[%s5321_s12] sm:$0xff] }
0x1eaa   :  { %1992 = vmatpush.bf16.msra.mxu3 %v4011_v22 }
0x1eab   :  { %1816 = vmatpush.bf16.msra.mxu0 %v4004_v38 }
0x1eac   :  { %p3615_p4 = scmp.le.s32.totalorder %s3614_s17, 0 }
0x1ead   :  { %1890 = vmatpush.bf16.msra.mxu1 %v4006_v59 }
0x1eae   :  { %3584 = vmatmul.msk.bf16.vlgmr.msra.gmra.mxu0 %vm91_vm4, %v4860_v26  ;;  %1993 = vmatpush.bf16.msra.mxu3 %v4010_v37 }
0x1f2b   :  { %v1818_v41 = vpop.f32.mrf.mxu0 }
0x1f2c   :  { %v1822_v42 = vadd.f32 %v1818_v41, %v1792_v18 }
0x1f2e   :  { %4262 = vtanh.f32 %v1822_v42  ;;  %v3585_v43 = vmul.f32 -1.442695, %v1822_v42 }
0x1f30   :  { %4264 = vpow2.f32 %v3585_v43 }
0x1f33   :  { %v1820_v0 = vpop.f32.mrf.mxu0 }
0x1f34   :  { %v4263_v8 = vpop.eup %4262 }
0x1f35   :  { %1845 = vrot.lane.b32.xlu0 %v4263_v8, %s4384_s22 }
0x1f36   :  { %v4265_v27 = vpop.eup %4264 }
0x1f37   :  { %v1826_v1 = vadd.f32 1.0, %v4265_v27 }
0x1f39   :  { %4266 = vrcp.f32 %v1826_v1  ;;  %v1838_v26 = vand.u32 2147483648, %v1826_v1  ;;  %vm1832_vm13 = vweird.f32 %v1826_v1  ;;  %v1836_v39 = vand.u32 2147483647, %v1826_v1 }
0x1f3b   :  { %v1839_v48 = vor.u32 1.1754944e-38, %v1838_v26  ;;  %vm1837_vm15 = vcmp.eq.f32.partialorder %v1836_v39, 8.507059e+37 }
0x1f3f   :  { %v4267_v29 = vpop.eup %4266 }
0x1f40   :  { %v1828_v44 = vmul.f32 %v4267_v29, %v1826_v1  ;;  %vm1833_vm12 = vweird.f32 %v4267_v29 }
0x1f41   :  { %vm1834_vm14 = vmor %vm1832_vm13, %vm1833_vm12 }
0x1f42   :  { %v1829_v45 = vsub.f32 1.0, %v1828_v44 }
0x1f44   :  { %v1830_v28 = vmul.f32 %v4267_v29, %v1829_v45 }
0x1f46   :  { %v1831_v46 = vadd.f32 %v4267_v29, %v1830_v28 }
0x1f48   :  { %v1835_v47 = vsel %vm1834_vm14, %v4267_v29, %v1831_v46 }
0x1f49   :  { %v1840_v50 = vsel %vm1837_vm15, %v1839_v48, %v1835_v47 }
0x1f4a   :  { %v1843_v53 = vmul.f32 %v1840_v50, %v4841_v40  ;;  %v4008_v40 = vld [vmem:[%s5318_s9] sm:$0xff] }
0x1f4b   :  { %1919 = vmatpush.bf16.msra.mxu2 %v4008_v40 }
0x1f4e   :  { %3603 = vmatmul.msk.bf16.vlgmr.msra.gmra.mxu2 %vm91_vm4, %v4879_v10 }
0x1fa7   :  { %v1846_v49 = vpop.permute.xlu0 %1845 }
0x1fa8   :  { %v1848_v51 = vmul.f32 %v1846_v49, %v1840_v50 }
0x1faa   :  { %1850 = vrot.lane.b32.xlu0 %v1848_v51, %s4385_s3 }
0x1fd1   :  { %v1921_v63 = vpop.f32.mrf.mxu2 }
0x1fd9   :  { %v1923_v3 = vpop.f32.mrf.mxu2 }
0x201c   :  { %v1851_v54 = vpop.permute.xlu0 %1850 }
0x201d   :  { %v4922_v55 = vadd.f32 %v1851_v54, %v1843_v53 }
0x201f   :  { %4268 = vtanh.f32 %v4922_v55 }
0x2025   :  { %v4269_v56 = vpop.eup %4268 }
0x2026   :  { %1856 = vrot.lane.b32.xlu1 %v4269_v56, %s4384_s22 }
0x2098   :  { %v1857_v60 = vpop.permute.xlu1 %1856 }
0x2099   :  { %v1859_v61 = vmul.f32 %v1857_v60, %v1840_v50 }
0x209b   :  { %v1860_v62 = vpack.c.bf16 %v1859_v61, %v1859_v61 }
0x209d   :  { %1866 = vrot.lane.b32.xlu1 %v1860_v62, %s4385_s3 }
0x210f   :  { %v4941_v2 = vpop.permute.xlu1 %1866 }
0x2110   :  { %3594 = vmatmul.msk.bf16.vlgmr.msra.gmra.mxu1 %vm91_vm4, %v4941_v2 }
0x218d   :  { %v1892_v4 = vpop.f32.mrf.mxu1 }
0x218e   :  { %v1893_v7 = vadd.f32 %v4777_v25, %v1892_v4 }
0x2190   :  { %v1925_v11 = vadd.f32 %v1921_v63, %v1893_v7 }
0x2192   :  { %4270 = vtanh.f32 %v1925_v11  ;;  %v3604_v30 = vmul.f32 -1.442695, %v1925_v11 }
0x2194   :  { %4272 = vpow2.f32 %v3604_v30 }
0x2195   :  { %v1894_v9 = vpop.f32.mrf.mxu1 }
0x2198   :  { %v4271_v12 = vpop.eup %4270 }
0x2199   :  { %1948 = vrot.lane.b32.xlu2 %v4271_v12, %s4384_s22 }
0x219a   :  { %v4273_v5 = vpop.eup %4272 }
0x219b   :  { %v1929_v10 = vadd.f32 1.0, %v4273_v5 }
0x219d   :  { %4274 = vrcp.f32 %v1929_v10  ;;  %v1941_v19 = vand.u32 2147483648, %v1929_v10  ;;  %vm1935_vm1 = vweird.f32 %v1929_v10  ;;  %v1939_v31 = vand.u32 2147483647, %v1929_v10 }
0x219f   :  { %v1942_v24 = vor.u32 1.1754944e-38, %v1941_v19  ;;  %vm1940_vm3 = vcmp.eq.f32.partialorder %v1939_v31, 8.507059e+37 }
0x21a3   :  { %v4275_v13 = vpop.eup %4274 }
0x21a4   :  { %v1931_v14 = vmul.f32 %v4275_v13, %v1929_v10  ;;  %vm1936_vm0 = vweird.f32 %v4275_v13 }
0x21a5   :  { %vm1937_vm2 = vmor %vm1935_vm1, %vm1936_vm0 }
0x21a6   :  { %v1932_v15 = vsub.f32 1.0, %v1931_v14 }
0x21a8   :  { %v1933_v17 = vmul.f32 %v4275_v13, %v1932_v15 }
0x21aa   :  { %v1934_v16 = vadd.f32 %v4275_v13, %v1933_v17 }
0x21ac   :  { %v1938_v32 = vsel %vm1937_vm2, %v4275_v13, %v1934_v16 }
0x21ad   :  { %v1943_v34 = vsel %vm1940_vm3, %v1942_v24, %v1938_v32 }
0x21ae   :  { %v1946_v35 = vmul.f32 %v1943_v34, %v4868_v6 }
0x21f3   :  { %v1949_v33 = vpop.permute.xlu2 %1948 }
0x21f4   :  { %v1951_v21 = vmul.f32 %v1949_v33, %v1943_v34 }
0x21f6   :  { %1953 = vrot.lane.b32.xlu2 %v1951_v21, %s4385_s3 }
0x2250   :  { %v1954_v23 = vpop.permute.xlu2 %1953 }
0x2251   :  { %v4949_v36 = vadd.f32 %v1954_v23, %v1946_v35 }
0x2253   :  { %4276 = vtanh.f32 %v4949_v36 }
0x2259   :  { %v4277_v20 = vpop.eup %4276 }
0x225a   :  { %1959 = vrot.lane.b32.xlu0 %v4277_v20, %s4384_s22 }
0x22cc   :  { %v1960_v38 = vpop.permute.xlu0 %1959 }
0x22cd   :  { %v1962_v6 = vmul.f32 %v1960_v38, %v1943_v34 }
0x22cf   :  { %v1963_v18 = vpack.c.bf16 %v1962_v6, %v1962_v6 }
0x22d1   :  { %1969 = vrot.lane.b32.xlu1 %v1963_v18, %s4385_s3 }
0x2343   :  { %v4960_v41 = vpop.permute.xlu1 %1969 }
0x2344   :  { %3613 = vmatmul.msk.bf16.vlgmr.msra.gmra.mxu3 %vm91_vm4, %v4960_v41 }
0x23c7   :  { %v1995_v42 = vpop.f32.mrf.mxu3 }
0x23c8   :  { %v1996_v0 = vadd.f32 %v4800_v52, %v1995_v42 }
0x23ca   :  { %2000 = vst [vmem:[#allocation6 + $0x6] sm:$0x3] %v1996_v0 }
0x23cb   :  { %2005 = sbr.rel (%p3615_p4) target bundleno = 9170 (0x23d2), region = 81 }
0x23cf   :  { %v1997_v8 = vpop.f32.mrf.mxu3 }
0x23d0   :  { %v3616_v43 = vld [vmem:[%s5310_s1 + $0x6] sm:$0x3] }
0x23d1   :  { %2008 = vst [vmem:[#allocation2] sm:$0x3] %v3616_v43 }
0x23d2 PF:  { %s3617_s20 = sld [smem:[#allocation3 + $0x3]] }
0x23d8   :  { %p3618_p5 = scmp.ne.s32.totalorder %s3617_s20, 0 }
0x23da   :  { %2013 = sbr.rel (%p3618_p5) target bundleno = 9437 (0x24dd), region = 85 }
0x23df   :  { %vm2014_vm5 = vcmask 1041408   ;;  %v4019_v27 = vld [vmem:[%s5320_s11 + $0x38] sm:$0xff]  ;;  %v4018_v29 = vld [vmem:[%s5320_s11 + $0x30] sm:$0xff]  ;;  %v4017_v44 = vld [vmem:[%s5320_s11 + $0x28] sm:$0xff]  ;;  %v4389_v48 = vmov 1.0|1.0  }
0x23e0   :  { %v2015_v1 = vsel %vm2014_vm5, %v1996_v0, -inf  ;;  %2086 = vmatpush.bf16.msra.mxu0 %v4019_v27  ;;  %v4016_v45 = vld [vmem:[%s5320_s11 + $0x20] sm:$0xff]  ;;  %v4015_v28 = vld [vmem:[%s5320_s11 + $0x18] sm:$0xff]  ;;  %v4014_v46 = vld [vmem:[%s5320_s11 + $0x10] sm:$0xff] }
0x23e1   :  { %2016 = vmax.xlane.f32.xlu0 %v2015_v1  ;;  %v4013_v26 = vld [vmem:[%s5320_s11 + $0x8] sm:$0xff]  ;;  %v4012_v39 = vld [vmem:[%s5320_s11] sm:$0xff] }
0x23e4   :  { %2087 = vmatpush.bf16.msra.mxu0 %v4018_v29 }
0x23e8   :  { %2088 = vmatpush.bf16.msra.mxu0 %v4017_v44 }
0x23ec   :  { %2089 = vmatpush.bf16.msra.mxu0 %v4016_v45 }
0x23f0   :  { %2090 = vmatpush.bf16.msra.mxu0 %v4015_v28 }
0x23f4   :  { %2091 = vmatpush.bf16.msra.mxu0 %v4014_v46 }
0x23f8   :  { %2092 = vmatpush.bf16.msra.mxu0 %v4013_v26 }
0x23fc   :  { %2093 = vmatpush.bf16.msra.mxu0 %v4012_v39 }
0x2454   :  { %v2017_v47 = vpop.xlane.xlu0 %2016 }
0x2455   :  { %vm2018_vm6 = vcmp.eq.f32.partialorder %v1996_v0, %v2017_v47 }
0x2456   :  { %vm3652_vm7 = vmpackc.low %vm2018_vm6, %vm2018_vm6 }
0x2457   :  { %3653 = vmatmul.msk.bf16.vlgmr.msra.gmra.mxu0 %vm3652_vm7, %v4389_v48 }
0x24d4   :  { %v2095_v49 = vpop.f32.mrf.mxu0 }
0x24d5   :  { %2099 = vst [vmem:[#allocation2] sm:$0x3] %v2095_v49 }
0x24dc   :  { %v2097_v50 = vpop.f32.mrf.mxu0 }
0x24dd PF:  { %v4021_v51 = vld [vmem:[%s5316_s7 + $0x8] sm:$0xff]  ;;  %v4020_v53 = vld [vmem:[%s5316_s7] sm:$0xff]  ;;  %s3692_s30 = sld [smem:[#allocation3 + $0x4]] }
0x24de   :  { %2123 = vmatpush.bf16.msra.mxu0 %v4021_v51  ;;  %v2100_v54 = vld [vmem:[#allocation2] sm:$0x3]  ;;  %v4025_v16 = vld [vmem:[%s5318_s9 + $0x8] sm:$0xff] }
0x24df   :  { %v4023_v19 = vld [vmem:[%s5317_s8 + $0x8] sm:$0xff]  ;;  %2226 = vmatpush.bf16.msra.mxu2 %v4025_v16  ;;  %v4022_v31 = vld [vmem:[%s5317_s8] sm:$0xff] }
0x24e0   :  { %2197 = vmatpush.bf16.msra.mxu1 %v4023_v19  ;;  %v4027_v50 = vld [vmem:[%s5321_s12 + $0x8] sm:$0xff]  ;;  %v4026_v51 = vld [vmem:[%s5321_s12] sm:$0xff] }
0x24e1   :  { %2300 = vmatpush.bf16.msra.mxu3 %v4027_v50 }
0x24e2   :  { %2124 = vmatpush.bf16.msra.mxu0 %v4020_v53 }
0x24e3   :  { %p3693_p6 = scmp.le.s32.totalorder %s3692_s30, 0 }
0x24e4   :  { %2198 = vmatpush.bf16.msra.mxu1 %v4022_v31 }
0x24e5   :  { %3662 = vmatmul.msk.bf16.vlgmr.msra.gmra.mxu0 %vm91_vm4, %v4941_v2  ;;  %2301 = vmatpush.bf16.msra.mxu3 %v4026_v51 }
0x2562   :  { %v2126_v56 = vpop.f32.mrf.mxu0 }
0x2563   :  { %v2130_v57 = vadd.f32 %v2126_v56, %v2100_v54 }
0x2565   :  { %4278 = vtanh.f32 %v2130_v57  ;;  %v3663_v59 = vmul.f32 -1.442695, %v2130_v57 }
0x2567   :  { %4280 = vpow2.f32 %v3663_v59 }
0x256a   :  { %v2128_v58 = vpop.f32.mrf.mxu0 }
0x256b   :  { %v4279_v40 = vpop.eup %4278 }
0x256c   :  { %2153 = vrot.lane.b32.xlu0 %v4279_v40, %s4384_s22 }
0x256d   :  { %v4281_v60 = vpop.eup %4280 }
0x256e   :  { %v2134_v61 = vadd.f32 1.0, %v4281_v60 }
0x2570   :  { %4282 = vrcp.f32 %v2134_v61  ;;  %v2146_v2 = vand.u32 2147483648, %v2134_v61  ;;  %vm2140_vm9 = vweird.f32 %v2134_v61  ;;  %v2144_v11 = vand.u32 2147483647, %v2134_v61 }
0x2572   :  { %v2147_v12 = vor.u32 1.1754944e-38, %v2146_v2  ;;  %vm2145_vm11 = vcmp.eq.f32.partialorder %v2144_v11, 8.507059e+37 }
0x2576   :  { %v4283_v62 = vpop.eup %4282 }
0x2577   :  { %v2136_v63 = vmul.f32 %v4283_v62, %v2134_v61  ;;  %vm2141_vm8 = vweird.f32 %v4283_v62 }
0x2578   :  { %vm2142_vm10 = vmor %vm2140_vm9, %vm2141_vm8 }
0x2579   :  { %v2137_v3 = vsub.f32 1.0, %v2136_v63 }
0x257b   :  { %v2138_v4 = vmul.f32 %v4283_v62, %v2137_v3 }
0x257d   :  { %v2139_v7 = vadd.f32 %v4283_v62, %v2138_v4 }
0x257f   :  { %v2143_v9 = vsel %vm2142_vm10, %v4283_v62, %v2139_v7 }
0x2580   :  { %v2148_v5 = vsel %vm2145_vm11, %v2147_v12, %v2143_v9 }
0x2581   :  { %v2151_v13 = vmul.f32 %v2148_v5, %v4922_v55  ;;  %v4024_v55 = vld [vmem:[%s5318_s9] sm:$0xff] }
0x2582   :  { %2227 = vmatpush.bf16.msra.mxu2 %v4024_v55 }
0x2585   :  { %3681 = vmatmul.msk.bf16.vlgmr.msra.gmra.mxu2 %vm91_vm4, %v4960_v41 }
0x25de   :  { %v2154_v30 = vpop.permute.xlu0 %2153 }
0x25df   :  { %v2156_v10 = vmul.f32 %v2154_v30, %v2148_v5 }
0x25e1   :  { %2158 = vrot.lane.b32.xlu0 %v2156_v10, %s4385_s3 }
0x2608   :  { %v2229_v34 = vpop.f32.mrf.mxu2 }
0x2610   :  { %v2231_v35 = vpop.f32.mrf.mxu2 }
0x2653   :  { %v2159_v14 = vpop.permute.xlu0 %2158 }
0x2654   :  { %v5003_v15 = vadd.f32 %v2159_v14, %v2151_v13 }
0x2656   :  { %4284 = vtanh.f32 %v5003_v15 }
0x265c   :  { %v4285_v17 = vpop.eup %4284 }
0x265d   :  { %2164 = vrot.lane.b32.xlu1 %v4285_v17, %s4384_s22 }
0x26cf   :  { %v2165_v32 = vpop.permute.xlu1 %2164 }
0x26d0   :  { %v2167_v24 = vmul.f32 %v2165_v32, %v2148_v5 }
0x26d2   :  { %v2168_v33 = vpack.c.bf16 %v2167_v24, %v2167_v24 }
0x26d4   :  { %2174 = vrot.lane.b32.xlu1 %v2168_v33, %s4385_s3 }
0x2746   :  { %v5022_v21 = vpop.permute.xlu1 %2174 }
0x2747   :  { %3672 = vmatmul.msk.bf16.vlgmr.msra.gmra.mxu1 %vm91_vm4, %v5022_v21 }
0x27c4   :  { %v2200_v23 = vpop.f32.mrf.mxu1 }
0x27c5   :  { %v2201_v20 = vadd.f32 %v4777_v25, %v2200_v23 }
0x27c7   :  { %v2233_v22 = vadd.f32 %v2229_v34, %v2201_v20 }
0x27c9   :  { %4286 = vtanh.f32 %v2233_v22  ;;  %v3682_v6 = vmul.f32 -1.442695, %v2233_v22 }
0x27cb   :  { %4288 = vpow2.f32 %v3682_v6 }
0x27cc   :  { %v2202_v37 = vpop.f32.mrf.mxu1 }
0x27cf   :  { %v4287_v38 = vpop.eup %4286 }
0x27d0   :  { %2256 = vrot.lane.b32.xlu2 %v4287_v38, %s4384_s22 }
0x27d1   :  { %v4289_v18 = vpop.eup %4288 }
0x27d2   :  { %v2237_v41 = vadd.f32 1.0, %v4289_v18 }
0x27d4   :  { %4290 = vrcp.f32 %v2237_v41  ;;  %v2249_v1 = vand.u32 2147483648, %v2237_v41  ;;  %vm2243_vm13 = vweird.f32 %v2237_v41  ;;  %v2247_v29 = vand.u32 2147483647, %v2237_v41 }
0x27d6   :  { %v2250_v45 = vor.u32 1.1754944e-38, %v2249_v1  ;;  %vm2248_vm15 = vcmp.eq.f32.partialorder %v2247_v29, 8.507059e+37 }
0x27da   :  { %v4291_v42 = vpop.eup %4290 }
0x27db   :  { %v2239_v0 = vmul.f32 %v4291_v42, %v2237_v41  ;;  %vm2244_vm12 = vweird.f32 %v4291_v42 }
0x27dc   :  { %vm2245_vm14 = vmor %vm2243_vm13, %vm2244_vm12 }
0x27dd   :  { %v2240_v8 = vsub.f32 1.0, %v2239_v0 }
0x27df   :  { %v2241_v43 = vmul.f32 %v4291_v42, %v2240_v8 }
0x27e1   :  { %v2242_v27 = vadd.f32 %v4291_v42, %v2241_v43 }
0x27e3   :  { %v2246_v44 = vsel %vm2245_vm14, %v4291_v42, %v2242_v27 }
0x27e4   :  { %v2251_v46 = vsel %vm2248_vm15, %v2250_v45, %v2246_v44 }
0x27e5   :  { %v2254_v39 = vmul.f32 %v2251_v46, %v4949_v36 }
0x282a   :  { %v2257_v28 = vpop.permute.xlu2 %2256 }
0x282b   :  { %v2259_v26 = vmul.f32 %v2257_v28, %v2251_v46 }
0x282d   :  { %2261 = vrot.lane.b32.xlu2 %v2259_v26, %s4385_s3 }
0x2887   :  { %v2262_v47 = vpop.permute.xlu2 %2261 }
0x2888   :  { %v5030_v48 = vadd.f32 %v2262_v47, %v2254_v39 }
0x288a   :  { %4292 = vtanh.f32 %v5030_v48 }
0x2890   :  { %v4293_v49 = vpop.eup %4292 }
0x2891   :  { %2267 = vrot.lane.b32.xlu0 %v4293_v49, %s4384_s22 }
0x2903   :  { %v2268_v53 = vpop.permute.xlu0 %2267 }
0x2904   :  { %v2270_v36 = vmul.f32 %v2268_v53, %v2251_v46 }
0x2906   :  { %v2271_v54 = vpack.c.bf16 %v2270_v36, %v2270_v36 }
0x2908   :  { %2277 = vrot.lane.b32.xlu1 %v2271_v54, %s4385_s3 }
0x297a   :  { %v5041_v56 = vpop.permute.xlu1 %2277 }
0x297b   :  { %3691 = vmatmul.msk.bf16.vlgmr.msra.gmra.mxu3 %vm91_vm4, %v5041_v56 }
0x29fe   :  { %v2303_v57 = vpop.f32.mrf.mxu3 }
0x29ff   :  { %v2304_v58 = vadd.f32 %v4800_v52, %v2303_v57 }
0x2a01   :  { %2308 = vst [vmem:[#allocation6 + $0x8] sm:$0x3] %v2304_v58 }
0x2a02   :  { %2313 = sbr.rel (%p3693_p6) target bundleno = 10761 (0x2a09), region = 89 }
0x2a06   :  { %v2305_v40 = vpop.f32.mrf.mxu3 }
0x2a07   :  { %v3694_v59 = vld [vmem:[%s5310_s1 + $0x8] sm:$0x3] }
0x2a08   :  { %2316 = vst [vmem:[#allocation2] sm:$0x3] %v3694_v59 }
0x2a09 PF:  { %s3695_s4 = sld [smem:[#allocation3 + $0x4]] }
0x2a0f   :  { %p3696_p7 = scmp.ne.s32.totalorder %s3695_s4, 0 }
0x2a11   :  { %2321 = sbr.rel (%p3696_p7) target bundleno = 11028 (0x2b14), region = 93 }
0x2a16   :  { %vm2322_vm0 = vcmask 1041408   ;;  %v4035_v60 = vld [vmem:[%s5320_s11 + $0x38] sm:$0xff]  ;;  %v4034_v62 = vld [vmem:[%s5320_s11 + $0x30] sm:$0xff]  ;;  %v4033_v63 = vld [vmem:[%s5320_s11 + $0x28] sm:$0xff]  ;;  %v4390_v12 = vmov 1.0|1.0  }
0x2a17   :  { %v2323_v61 = vsel %vm2322_vm0, %v2304_v58, -inf  ;;  %2394 = vmatpush.bf16.msra.mxu0 %v4035_v60  ;;  %v4032_v3 = vld [vmem:[%s5320_s11 + $0x20] sm:$0xff]  ;;  %v4031_v4 = vld [vmem:[%s5320_s11 + $0x18] sm:$0xff]  ;;  %v4030_v7 = vld [vmem:[%s5320_s11 + $0x10] sm:$0xff] }
0x2a18   :  { %2324 = vmax.xlane.f32.xlu0 %v2323_v61  ;;  %v4029_v2 = vld [vmem:[%s5320_s11 + $0x8] sm:$0xff]  ;;  %v4028_v11 = vld [vmem:[%s5320_s11] sm:$0xff] }
0x2a1b   :  { %2395 = vmatpush.bf16.msra.mxu0 %v4034_v62 }
0x2a1f   :  { %2396 = vmatpush.bf16.msra.mxu0 %v4033_v63 }
0x2a23   :  { %2397 = vmatpush.bf16.msra.mxu0 %v4032_v3 }
0x2a27   :  { %2398 = vmatpush.bf16.msra.mxu0 %v4031_v4 }
0x2a2b   :  { %2399 = vmatpush.bf16.msra.mxu0 %v4030_v7 }
0x2a2f   :  { %2400 = vmatpush.bf16.msra.mxu0 %v4029_v2 }
0x2a33   :  { %2401 = vmatpush.bf16.msra.mxu0 %v4028_v11 }
0x2a8b   :  { %v2325_v9 = vpop.xlane.xlu0 %2324 }
0x2a8c   :  { %vm2326_vm1 = vcmp.eq.f32.partialorder %v2304_v58, %v2325_v9 }
0x2a8d   :  { %vm3730_vm2 = vmpackc.low %vm2326_vm1, %vm2326_vm1 }
0x2a8e   :  { %3731 = vmatmul.msk.bf16.vlgmr.msra.gmra.mxu0 %vm3730_vm2, %v4390_v12 }
0x2b0b   :  { %v2403_v30 = vpop.f32.mrf.mxu0 }
0x2b0c   :  { %2407 = vst [vmem:[#allocation2] sm:$0x3] %v2403_v30 }
0x2b13   :  { %v2405_v5 = vpop.f32.mrf.mxu0 }
0x2b14 PF:  { %v4037_v10 = vld [vmem:[%s5316_s7 + $0x8] sm:$0xff]  ;;  %v4036_v13 = vld [vmem:[%s5316_s7] sm:$0xff]  ;;  %s3770_s23 = sld [smem:[#allocation3 + $0x5]] }
0x2b15   :  { %2431 = vmatpush.bf16.msra.mxu0 %v4037_v10  ;;  %v2408_v14 = vld [vmem:[#allocation2] sm:$0x3]  ;;  %v4041_v27 = vld [vmem:[%s5318_s9 + $0x8] sm:$0xff] }
0x2b16   :  { %v4039_v1 = vld [vmem:[%s5317_s8 + $0x8] sm:$0xff]  ;;  %2534 = vmatpush.bf16.msra.mxu2 %v4041_v27  ;;  %v4038_v29 = vld [vmem:[%s5317_s8] sm:$0xff] }
0x2b17   :  { %2505 = vmatpush.bf16.msra.mxu1 %v4039_v1  ;;  %v4043_v5 = vld [vmem:[%s5321_s12 + $0x8] sm:$0xff]  ;;  %v4042_v10 = vld [vmem:[%s5321_s12] sm:$0xff] }
0x2b18   :  { %2608 = vmatpush.bf16.msra.mxu3 %v4043_v5 }
0x2b19   :  { %2432 = vmatpush.bf16.msra.mxu0 %v4036_v13 }
0x2b1a   :  { %p3771_p8 = scmp.le.s32.totalorder %s3770_s23, 0 }
0x2b1b   :  { %2506 = vmatpush.bf16.msra.mxu1 %v4038_v29 }
0x2b1c   :  { %3740 = vmatmul.msk.bf16.vlgmr.msra.gmra.mxu0 %vm91_vm4, %v5022_v21  ;;  %2609 = vmatpush.bf16.msra.mxu3 %v4042_v10 }
0x2b99   :  { %v2434_v17 = vpop.f32.mrf.mxu0 }
0x2b9a   :  { %v2438_v16 = vadd.f32 %v2434_v17, %v2408_v14 }
0x2b9c   :  { %4294 = vtanh.f32 %v2438_v16  ;;  %v3741_v31 = vmul.f32 -1.442695, %v2438_v16 }
0x2b9e   :  { %4296 = vpow2.f32 %v3741_v31 }
0x2ba1   :  { %v2436_v19 = vpop.f32.mrf.mxu0 }
0x2ba2   :  { %v4295_v55 = vpop.eup %4294 }
0x2ba3   :  { %2461 = vrot.lane.b32.xlu0 %v4295_v55, %s4384_s22 }
0x2ba4   :  { %v4297_v32 = vpop.eup %4296 }
0x2ba5   :  { %v2442_v24 = vadd.f32 1.0, %v4297_v32 }
0x2ba7   :  { %4298 = vrcp.f32 %v2442_v24  ;;  %v2454_v21 = vand.u32 2147483648, %v2442_v24  ;;  %vm2448_vm5 = vweird.f32 %v2442_v24  ;;  %v2452_v22 = vand.u32 2147483647, %v2442_v24 }
0x2ba9   :  { %v2455_v38 = vor.u32 1.1754944e-38, %v2454_v21  ;;  %vm2453_vm7 = vcmp.eq.f32.partialorder %v2452_v22, 8.507059e+37 }
0x2bad   :  { %v4299_v33 = vpop.eup %4298 }
0x2bae   :  { %v2444_v34 = vmul.f32 %v4299_v33, %v2442_v24  ;;  %vm2449_vm3 = vweird.f32 %v4299_v33 }
0x2baf   :  { %vm2450_vm6 = vmor %vm2448_vm5, %vm2449_vm3 }
0x2bb0   :  { %v2445_v35 = vsub.f32 1.0, %v2444_v34 }
0x2bb2   :  { %v2446_v23 = vmul.f32 %v4299_v33, %v2445_v35 }
0x2bb4   :  { %v2447_v20 = vadd.f32 %v4299_v33, %v2446_v23 }
0x2bb6   :  { %v2451_v37 = vsel %vm2450_vm6, %v4299_v33, %v2447_v20 }
0x2bb7   :  { %v2456_v18 = vsel %vm2453_vm7, %v2455_v38, %v2451_v37 }
0x2bb8   :  { %v2459_v42 = vmul.f32 %v2456_v18, %v5003_v15  ;;  %v4040_v15 = vld [vmem:[%s5318_s9] sm:$0xff] }
0x2bb9   :  { %2535 = vmatpush.bf16.msra.mxu2 %v4040_v15 }
0x2bbc   :  { %3759 = vmatmul.msk.bf16.vlgmr.msra.gmra.mxu2 %vm91_vm4, %v5041_v56 }
0x2c15   :  { %v2462_v6 = vpop.permute.xlu0 %2461 }
0x2c16   :  { %v2464_v41 = vmul.f32 %v2462_v6, %v2456_v18 }
0x2c18   :  { %2466 = vrot.lane.b32.xlu0 %v2464_v41, %s4385_s3 }
0x2c3f   :  { %v2537_v46 = vpop.f32.mrf.mxu2 }
0x2c47   :  { %v2539_v39 = vpop.f32.mrf.mxu2 }
0x2c8a   :  { %v2467_v0 = vpop.permute.xlu0 %2466 }
0x2c8b   :  { %v5084_v8 = vadd.f32 %v2467_v0, %v2459_v42 }
0x2c8d   :  { %4300 = vtanh.f32 %v5084_v8 }
0x2c93   :  { %v4301_v43 = vpop.eup %4300 }
0x2c94   :  { %2472 = vrot.lane.b32.xlu1 %v4301_v43, %s4384_s22 }
0x2d06   :  { %v2473_v44 = vpop.permute.xlu1 %2472 }
0x2d07   :  { %v2475_v45 = vmul.f32 %v2473_v44, %v2456_v18 }
0x2d09   :  { %v2476_v28 = vpack.c.bf16 %v2475_v45, %v2475_v45 }
0x2d0b   :  { %2482 = vrot.lane.b32.xlu1 %v2476_v28, %s4385_s3 }
0x2d7d   :  { %v5103_v26 = vpop.permute.xlu1 %2482 }
0x2d7e   :  { %3750 = vmatmul.msk.bf16.vlgmr.msra.gmra.mxu1 %vm91_vm4, %v5103_v26 }
0x2dfb   :  { %v2508_v47 = vpop.f32.mrf.mxu1 }
0x2dfc   :  { %v2509_v49 = vadd.f32 %v4777_v25, %v2508_v47 }
0x2dfe   :  { %v2541_v50 = vadd.f32 %v2537_v46, %v2509_v49 }
0x2e00   :  { %4302 = vtanh.f32 %v2541_v50  ;;  %v3760_v36 = vmul.f32 -1.442695, %v2541_v50 }
0x2e02   :  { %4304 = vpow2.f32 %v3760_v36 }
0x2e03   :  { %v2510_v51 = vpop.f32.mrf.mxu1 }
0x2e06   :  { %v4303_v53 = vpop.eup %4302 }
0x2e07   :  { %2564 = vrot.lane.b32.xlu2 %v4303_v53, %s4384_s22 }
0x2e08   :  { %v4305_v54 = vpop.eup %4304 }
0x2e09   :  { %v2545_v56 = vadd.f32 1.0, %v4305_v54 }
0x2e0b   :  { %4306 = vrcp.f32 %v2545_v56  ;;  %v2557_v61 = vand.u32 2147483648, %v2545_v56  ;;  %vm2551_vm9 = vweird.f32 %v2545_v56  ;;  %v2555_v62 = vand.u32 2147483647, %v2545_v56 }
0x2e0d   :  { %v2558_v3 = vor.u32 1.1754944e-38, %v2557_v61  ;;  %vm2556_vm11 = vcmp.eq.f32.partialorder %v2555_v62, 8.507059e+37 }
0x2e11   :  { %v4307_v57 = vpop.eup %4306 }
0x2e12   :  { %v2547_v58 = vmul.f32 %v4307_v57, %v2545_v56  ;;  %vm2552_vm8 = vweird.f32 %v4307_v57 }
0x2e13   :  { %vm2553_vm10 = vmor %vm2551_vm9, %vm2552_vm8 }
0x2e14   :  { %v2548_v40 = vsub.f32 1.0, %v2547_v58 }
0x2e16   :  { %v2549_v59 = vmul.f32 %v4307_v57, %v2548_v40 }
0x2e18   :  { %v2550_v60 = vadd.f32 %v4307_v57, %v2549_v59 }
0x2e1a   :  { %v2554_v63 = vsel %vm2553_vm10, %v4307_v57, %v2550_v60 }
0x2e1b   :  { %v2559_v7 = vsel %vm2556_vm11, %v2558_v3, %v2554_v63 }
0x2e1c   :  { %v2562_v11 = vmul.f32 %v2559_v7, %v5030_v48 }
0x2e61   :  { %v2565_v4 = vpop.permute.xlu2 %2564 }
0x2e62   :  { %v2567_v2 = vmul.f32 %v2565_v4, %v2559_v7 }
0x2e64   :  { %2569 = vrot.lane.b32.xlu2 %v2567_v2, %s4385_s3 }
0x2ebe   :  { %v2570_v9 = vpop.permute.xlu2 %2569 }
0x2ebf   :  { %v5111_v12 = vadd.f32 %v2570_v9, %v2562_v11 }
0x2ec1   :  { %4308 = vtanh.f32 %v5111_v12 }
0x2ec7   :  { %v4309_v30 = vpop.eup %4308 }
0x2ec8   :  { %2575 = vrot.lane.b32.xlu0 %v4309_v30, %s4384_s22 }
0x2f3a   :  { %v2576_v13 = vpop.permute.xlu0 %2575 }
0x2f3b   :  { %v2578_v48 = vmul.f32 %v2576_v13, %v2559_v7 }
0x2f3d   :  { %v2579_v14 = vpack.c.bf16 %v2578_v48, %v2578_v48 }
0x2f3f   :  { %2585 = vrot.lane.b32.xlu1 %v2579_v14, %s4385_s3 }
0x2fb1   :  { %v5122_v17 = vpop.permute.xlu1 %2585 }
0x2fb2   :  { %3769 = vmatmul.msk.bf16.vlgmr.msra.gmra.mxu3 %vm91_vm4, %v5122_v17 }
0x3035   :  { %v2611_v16 = vpop.f32.mrf.mxu3 }
0x3036   :  { %v2612_v19 = vadd.f32 %v4800_v52, %v2611_v16 }
0x3038   :  { %2616 = vst [vmem:[#allocation6 + $0xa] sm:$0x3] %v2612_v19 }
0x3039   :  { %2621 = sbr.rel (%p3771_p8) target bundleno = 12352 (0x3040), region = 97 }
0x303d   :  { %v2613_v55 = vpop.f32.mrf.mxu3 }
0x303e   :  { %v3772_v31 = vld [vmem:[%s5310_s1 + $0xa] sm:$0x3] }
0x303f   :  { %2624 = vst [vmem:[#allocation2] sm:$0x3] %v3772_v31 }
0x3040 PF:  { %s3773_s26 = sld [smem:[#allocation3 + $0x5]] }
0x3046   :  { %p3774_p9 = scmp.ne.s32.totalorder %s3773_s26, 0 }
0x3048   :  { %2629 = sbr.rel (%p3774_p9) target bundleno = 12619 (0x314b), region = 101 }
0x304d   :  { %vm2630_vm12 = vcmask 1041408   ;;  %v4051_v32 = vld [vmem:[%s5320_s11 + $0x38] sm:$0xff]  ;;  %v4050_v33 = vld [vmem:[%s5320_s11 + $0x30] sm:$0xff]  ;;  %v4049_v34 = vld [vmem:[%s5320_s11 + $0x28] sm:$0xff]  ;;  %v4391_v38 = vmov 1.0|1.0  }
0x304e   :  { %v2631_v24 = vsel %vm2630_vm12, %v2612_v19, -inf  ;;  %2702 = vmatpush.bf16.msra.mxu0 %v4051_v32  ;;  %v4048_v35 = vld [vmem:[%s5320_s11 + $0x20] sm:$0xff]  ;;  %v4047_v23 = vld [vmem:[%s5320_s11 + $0x18] sm:$0xff]  ;;  %v4046_v20 = vld [vmem:[%s5320_s11 + $0x10] sm:$0xff] }
0x304f   :  { %2632 = vmax.xlane.f32.xlu0 %v2631_v24  ;;  %v4045_v21 = vld [vmem:[%s5320_s11 + $0x8] sm:$0xff]  ;;  %v4044_v22 = vld [vmem:[%s5320_s11] sm:$0xff] }
0x3052   :  { %2703 = vmatpush.bf16.msra.mxu0 %v4050_v33 }
0x3056   :  { %2704 = vmatpush.bf16.msra.mxu0 %v4049_v34 }
0x305a   :  { %2705 = vmatpush.bf16.msra.mxu0 %v4048_v35 }
0x305e   :  { %2706 = vmatpush.bf16.msra.mxu0 %v4047_v23 }
0x3062   :  { %2707 = vmatpush.bf16.msra.mxu0 %v4046_v20 }
0x3066   :  { %2708 = vmatpush.bf16.msra.mxu0 %v4045_v21 }
0x306a   :  { %2709 = vmatpush.bf16.msra.mxu0 %v4044_v22 }
0x30c2   :  { %v2633_v37 = vpop.xlane.xlu0 %2632 }
0x30c3   :  { %vm2634_vm13 = vcmp.eq.f32.partialorder %v2612_v19, %v2633_v37 }
0x30c4   :  { %vm3808_vm14 = vmpackc.low %vm2634_vm13, %vm2634_vm13 }
0x30c5   :  { %3809 = vmatmul.msk.bf16.vlgmr.msra.gmra.mxu0 %vm3808_vm14, %v4391_v38 }
0x3142   :  { %v2711_v6 = vpop.f32.mrf.mxu0 }
0x3143   :  { %2715 = vst [vmem:[#allocation2] sm:$0x3] %v2711_v6 }
0x314a   :  { %v2713_v18 = vpop.f32.mrf.mxu0 }
0x314b PF:  { %v4053_v41 = vld [vmem:[%s5316_s7 + $0x8] sm:$0xff]  ;;  %v4052_v42 = vld [vmem:[%s5316_s7] sm:$0xff]  ;;  %s3848_s16 = sld [smem:[#allocation3 + $0x6]] }
0x314c   :  { %2739 = vmatpush.bf16.msra.mxu0 %v4053_v41  ;;  %v2716_v0 = vld [vmem:[#allocation2] sm:$0x3]  ;;  %v4057_v60 = vld [vmem:[%s5318_s9 + $0x8] sm:$0xff] }
0x314d   :  { %v4055_v61 = vld [vmem:[%s5317_s8 + $0x8] sm:$0xff]  ;;  %2842 = vmatpush.bf16.msra.mxu2 %v4057_v60  ;;  %v4054_v62 = vld [vmem:[%s5317_s8] sm:$0xff] }
0x314e   :  { %2813 = vmatpush.bf16.msra.mxu1 %v4055_v61  ;;  %v4059_v18 = vld [vmem:[%s5321_s12 + $0x8] sm:$0xff]  ;;  %v4058_v41 = vld [vmem:[%s5321_s12] sm:$0xff] }
0x314f   :  { %2916 = vmatpush.bf16.msra.mxu3 %v4059_v18 }
0x3150   :  { %2740 = vmatpush.bf16.msra.mxu0 %v4052_v42 }
0x3151   :  { %p3849_p10 = scmp.le.s32.totalorder %s3848_s16, 0 }
0x3152   :  { %2814 = vmatpush.bf16.msra.mxu1 %v4054_v62 }
0x3153   :  { %3818 = vmatmul.msk.bf16.vlgmr.msra.gmra.mxu0 %vm91_vm4, %v5103_v26  ;;  %2917 = vmatpush.bf16.msra.mxu3 %v4058_v41 }
0x31d0   :  { %v2742_v43 = vpop.f32.mrf.mxu0 }
0x31d1   :  { %v2746_v27 = vadd.f32 %v2742_v43, %v2716_v0 }
0x31d3   :  { %4310 = vtanh.f32 %v2746_v27  ;;  %v3819_v29 = vmul.f32 -1.442695, %v2746_v27 }
0x31d5   :  { %4312 = vpow2.f32 %v3819_v29 }
0x31d8   :  { %v2744_v1 = vpop.f32.mrf.mxu0 }
0x31d9   :  { %v4311_v15 = vpop.eup %4310 }
0x31da   :  { %2769 = vrot.lane.b32.xlu0 %v4311_v15, %s4384_s22 }
0x31db   :  { %v4313_v44 = vpop.eup %4312 }
0x31dc   :  { %v2750_v45 = vadd.f32 1.0, %v4313_v44 }
0x31de   :  { %4314 = vrcp.f32 %v2750_v45  ;;  %v2762_v26 = vand.u32 2147483648, %v2750_v45  ;;  %vm2756_vm0 = vweird.f32 %v2750_v45  ;;  %v2760_v50 = vand.u32 2147483647, %v2750_v45 }
0x31e0   :  { %v2763_v53 = vor.u32 1.1754944e-38, %v2762_v26  ;;  %vm2761_vm2 = vcmp.eq.f32.partialorder %v2760_v50, 8.507059e+37 }
0x31e4   :  { %v4315_v28 = vpop.eup %4314 }
0x31e5   :  { %v2752_v46 = vmul.f32 %v4315_v28, %v2750_v45  ;;  %vm2757_vm15 = vweird.f32 %v4315_v28 }
0x31e6   :  { %vm2758_vm1 = vmor %vm2756_vm0, %vm2757_vm15 }
0x31e7   :  { %v2753_v39 = vsub.f32 1.0, %v2752_v46 }
0x31e9   :  { %v2754_v47 = vmul.f32 %v4315_v28, %v2753_v39 }
0x31eb   :  { %v2755_v49 = vadd.f32 %v4315_v28, %v2754_v47 }
0x31ed   :  { %v2759_v51 = vsel %vm2758_vm1, %v4315_v28, %v2755_v49 }
0x31ee   :  { %v2764_v54 = vsel %vm2761_vm2, %v2763_v53, %v2759_v51 }
0x31ef   :  { %v2767_v57 = vmul.f32 %v2764_v54, %v5084_v8  ;;  %v4056_v8 = vld [vmem:[%s5318_s9] sm:$0xff] }
0x31f0   :  { %2843 = vmatpush.bf16.msra.mxu2 %v4056_v8 }
0x31f3   :  { %3837 = vmatmul.msk.bf16.vlgmr.msra.gmra.mxu2 %vm91_vm4, %v5122_v17 }
0x324c   :  { %v2770_v36 = vpop.permute.xlu0 %2769 }
0x324d   :  { %v2772_v56 = vmul.f32 %v2770_v36, %v2764_v54 }
0x324f   :  { %2774 = vrot.lane.b32.xlu0 %v2772_v56, %s4385_s3 }
0x3276   :  { %v2845_v7 = vpop.f32.mrf.mxu2 }
0x327e   :  { %v2847_v11 = vpop.f32.mrf.mxu2 }
0x32c1   :  { %v2775_v58 = vpop.permute.xlu0 %2774 }
0x32c2   :  { %v5165_v40 = vadd.f32 %v2775_v58, %v2767_v57 }
0x32c4   :  { %4316 = vtanh.f32 %v5165_v40 }
0x32ca   :  { %v4317_v59 = vpop.eup %4316 }
0x32cb   :  { %2780 = vrot.lane.b32.xlu1 %v4317_v59, %s4384_s22 }
0x333d   :  { %v2781_v63 = vpop.permute.xlu1 %2780 }
0x333e   :  { %v2783_v3 = vmul.f32 %v2781_v63, %v2764_v54 }
0x3340   :  { %v2784_v4 = vpack.c.bf16 %v2783_v3, %v2783_v3 }
0x3342   :  { %2790 = vrot.lane.b32.xlu1 %v2784_v4, %s4385_s3 }
0x33b4   :  { %v5184_v2 = vpop.permute.xlu1 %2790 }
0x33b5   :  { %3828 = vmatmul.msk.bf16.vlgmr.msra.gmra.mxu1 %vm91_vm4, %v5184_v2 }
0x3432   :  { %v2816_v9 = vpop.f32.mrf.mxu1 }
0x3433   :  { %v2817_v30 = vadd.f32 %v4777_v25, %v2816_v9 }
0x3435   :  { %v2849_v5 = vadd.f32 %v2845_v7, %v2817_v30 }
0x3437   :  { %4318 = vtanh.f32 %v2849_v5  ;;  %v3838_v48 = vmul.f32 -1.442695, %v2849_v5 }
0x3439   :  { %4320 = vpow2.f32 %v3838_v48 }
0x343a   :  { %v2818_v10 = vpop.f32.mrf.mxu1 }
0x343d   :  { %v4319_v13 = vpop.eup %4318 }
0x343e   :  { %2872 = vrot.lane.b32.xlu2 %v4319_v13, %s4384_s22 }
0x343f   :  { %v4321_v14 = vpop.eup %4320 }
0x3440   :  { %v2853_v17 = vadd.f32 1.0, %v4321_v14 }
0x3442   :  { %4322 = vrcp.f32 %v2853_v17  ;;  %v2865_v24 = vand.u32 2147483648, %v2853_v17  ;;  %vm2859_vm5 = vweird.f32 %v2853_v17  ;;  %v2863_v33 = vand.u32 2147483647, %v2853_v17 }
0x3444   :  { %v2866_v35 = vor.u32 1.1754944e-38, %v2865_v24  ;;  %vm2864_vm7 = vcmp.eq.f32.partialorder %v2863_v33, 8.507059e+37 }
0x3448   :  { %v4323_v16 = vpop.eup %4322 }
0x3449   :  { %v2855_v19 = vmul.f32 %v4323_v16, %v2853_v17  ;;  %vm2860_vm3 = vweird.f32 %v4323_v16 }
0x344a   :  { %vm2861_vm6 = vmor %vm2859_vm5, %vm2860_vm3 }
0x344b   :  { %v2856_v55 = vsub.f32 1.0, %v2855_v19 }
0x344d   :  { %v2857_v31 = vmul.f32 %v4323_v16, %v2856_v55 }
0x344f   :  { %v2858_v32 = vadd.f32 %v4323_v16, %v2857_v31 }
0x3451   :  { %v2862_v34 = vsel %vm2861_vm6, %v4323_v16, %v2858_v32 }
0x3452   :  { %v2867_v20 = vsel %vm2864_vm7, %v2866_v35, %v2862_v34 }
0x3453   :  { %v2870_v22 = vmul.f32 %v2867_v20, %v5111_v12 }
0x3498   :  { %v2873_v23 = vpop.permute.xlu2 %2872 }
0x3499   :  { %v2875_v21 = vmul.f32 %v2873_v23, %v2867_v20 }
0x349b   :  { %2877 = vrot.lane.b32.xlu2 %v2875_v21, %s4385_s3 }
0x34f5   :  { %v2878_v37 = vpop.permute.xlu2 %2877 }
0x34f6   :  { %v5192_v38 = vadd.f32 %v2878_v37, %v2870_v22 }
0x34f8   :  { %4324 = vtanh.f32 %v5192_v38 }
0x34fe   :  { %v4325_v6 = vpop.eup %4324 }
0x34ff   :  { %2883 = vrot.lane.b32.xlu0 %v4325_v6, %s4384_s22 }
0x3571   :  { %v2884_v42 = vpop.permute.xlu0 %2883 }
0x3572   :  { %v2886_v12 = vmul.f32 %v2884_v42, %v2867_v20 }
0x3574   :  { %v2887_v0 = vpack.c.bf16 %v2886_v12, %v2886_v12 }
0x3576   :  { %2893 = vrot.lane.b32.xlu1 %v2887_v0, %s4385_s3 }
0x35e8   :  { %v5203_v43 = vpop.permute.xlu1 %2893 }
0x35e9   :  { %3847 = vmatmul.msk.bf16.vlgmr.msra.gmra.mxu3 %vm91_vm4, %v5203_v43 }
0x366c   :  { %v2919_v27 = vpop.f32.mrf.mxu3 }
0x366d   :  { %v2920_v1 = vadd.f32 %v4800_v52, %v2919_v27 }
0x366f   :  { %2924 = vst [vmem:[#allocation6 + $0xc] sm:$0x3] %v2920_v1 }
0x3670   :  { %2929 = sbr.rel (%p3849_p10) target bundleno = 13943 (0x3677), region = 105 }
0x3674   :  { %v2921_v15 = vpop.f32.mrf.mxu3 }
0x3675   :  { %v3850_v29 = vld [vmem:[%s5310_s1 + $0xc] sm:$0x3] }
0x3676   :  { %2932 = vst [vmem:[#allocation2] sm:$0x3] %v3850_v29 }
0x3677 PF:  { %s3851_s18 = sld [smem:[#allocation3 + $0x6]] }
0x367d   :  { %p3852_p11 = scmp.ne.s32.totalorder %s3851_s18, 0 }
0x367f   :  { %2937 = sbr.rel (%p3852_p11) target bundleno = 14210 (0x3782), region = 109 }
0x3684   :  { %vm2938_vm8 = vcmask 1041408   ;;  %v4067_v44 = vld [vmem:[%s5320_s11 + $0x38] sm:$0xff]  ;;  %v4066_v28 = vld [vmem:[%s5320_s11 + $0x30] sm:$0xff]  ;;  %v4065_v46 = vld [vmem:[%s5320_s11 + $0x28] sm:$0xff]  ;;  %v4392_v53 = vmov 1.0|1.0  }
0x3685   :  { %v2939_v45 = vsel %vm2938_vm8, %v2920_v1, -inf  ;;  %3010 = vmatpush.bf16.msra.mxu0 %v4067_v44  ;;  %v4064_v39 = vld [vmem:[%s5320_s11 + $0x20] sm:$0xff]  ;;  %v4063_v47 = vld [vmem:[%s5320_s11 + $0x18] sm:$0xff]  ;;  %v4062_v49 = vld [vmem:[%s5320_s11 + $0x10] sm:$0xff] }
0x3686   :  { %2940 = vmax.xlane.f32.xlu0 %v2939_v45  ;;  %v4061_v26 = vld [vmem:[%s5320_s11 + $0x8] sm:$0xff]  ;;  %v4060_v50 = vld [vmem:[%s5320_s11] sm:$0xff] }
0x3689   :  { %3011 = vmatpush.bf16.msra.mxu0 %v4066_v28 }
0x368d   :  { %3012 = vmatpush.bf16.msra.mxu0 %v4065_v46 }
0x3691   :  { %3013 = vmatpush.bf16.msra.mxu0 %v4064_v39 }
0x3695   :  { %3014 = vmatpush.bf16.msra.mxu0 %v4063_v47 }
0x3699   :  { %3015 = vmatpush.bf16.msra.mxu0 %v4062_v49 }
0x369d   :  { %3016 = vmatpush.bf16.msra.mxu0 %v4061_v26 }
0x36a1   :  { %3017 = vmatpush.bf16.msra.mxu0 %v4060_v50 }
0x36f9   :  { %v2941_v51 = vpop.xlane.xlu0 %2940 }
0x36fa   :  { %vm2942_vm9 = vcmp.eq.f32.partialorder %v2920_v1, %v2941_v51 }
0x36fb   :  { %vm3886_vm10 = vmpackc.low %vm2942_vm9, %vm2942_vm9 }
0x36fc   :  { %3887 = vmatmul.msk.bf16.vlgmr.msra.gmra.mxu0 %vm3886_vm10, %v4392_v53 }
0x3779   :  { %v3019_v36 = vpop.f32.mrf.mxu0 }
0x377a   :  { %3023 = vst [vmem:[#allocation2] sm:$0x3] %v3019_v36 }
0x3781   :  { %v3021_v54 = vpop.f32.mrf.mxu0 }
0x3782 PF:  { %v4069_v56 = vld [vmem:[%s5316_s7 + $0x8] sm:$0xff]  ;;  %v4068_v57 = vld [vmem:[%s5316_s7] sm:$0xff]  ;;  %s3926_s26 = sld [smem:[#allocation3 + $0x7]] }
0x3783   :  { %3047 = vmatpush.bf16.msra.mxu0 %v4069_v56  ;;  %v3024_v58 = vld [vmem:[#allocation2] sm:$0x3]  ;;  %v4073_v32 = vld [vmem:[%s5318_s9 + $0x8] sm:$0xff] }
0x3784   :  { %v4071_v24 = vld [vmem:[%s5317_s8 + $0x8] sm:$0xff]  ;;  %3150 = vmatpush.bf16.msra.mxu2 %v4073_v32  ;;  %v4072_v33 = vld [vmem:[%s5318_s9] sm:$0xff] }
0x3785   :  { %3121 = vmatpush.bf16.msra.mxu1 %v4071_v24  ;;  %v4075_v36 = vld [vmem:[%s5321_s12 + $0x8] sm:$0xff]  ;;  %v4074_v54 = vld [vmem:[%s5321_s12] sm:$0xff] }
0x3786   :  { %3224 = vmatpush.bf16.msra.mxu3 %v4075_v36 }
0x3787   :  { %3048 = vmatpush.bf16.msra.mxu0 %v4068_v57 }
0x3788   :  { %3151 = vmatpush.bf16.msra.mxu2 %v4072_v33  ;;  %p3927_p12 = scmp.le.s32.totalorder %s3926_s26, 0 }
0x378a   :  { %3896 = vmatmul.msk.bf16.vlgmr.msra.gmra.mxu0 %vm91_vm4, %v5184_v2  ;;  %3225 = vmatpush.bf16.msra.mxu3 %v4074_v54 }
0x378b   :  { %3915 = vmatmul.msk.bf16.vlgmr.msra.gmra.mxu2 %vm91_vm4, %v5203_v43 }
0x3807   :  { %v3050_v59 = vpop.f32.mrf.mxu0 }
0x3808   :  { %v3054_v60 = vadd.f32 %v3050_v59, %v3024_v58 }
0x380a   :  { %4326 = vtanh.f32 %v3054_v60  ;;  %v3897_v62 = vmul.f32 -1.442695, %v3054_v60 }
0x380c   :  { %4328 = vpow2.f32 %v3897_v62 }
0x380e   :  { %v3153_v20 = vpop.f32.mrf.mxu2 }
0x380f   :  { %v3052_v61 = vpop.f32.mrf.mxu0 }
0x3810   :  { %v4327_v8 = vpop.eup %4326 }
0x3811   :  { %3077 = vrot.lane.b32.xlu0 %v4327_v8, %s4384_s22 }
0x3812   :  { %v4329_v63 = vpop.eup %4328 }
0x3813   :  { %v3058_v3 = vadd.f32 1.0, %v4329_v63 }
0x3815   :  { %4330 = vrcp.f32 %v3058_v3  ;;  %v3070_v2 = vand.u32 2147483648, %v3058_v3  ;;  %vm3064_vm12 = vweird.f32 %v3058_v3  ;;  %v3068_v5 = vand.u32 2147483647, %v3058_v3 }
0x3816   :  { %v3155_v22 = vpop.f32.mrf.mxu2 }
0x3817   :  { %v3071_v13 = vor.u32 1.1754944e-38, %v3070_v2  ;;  %vm3069_vm14 = vcmp.eq.f32.partialorder %v3068_v5, 8.507059e+37 }
0x381b   :  { %v4331_v4 = vpop.eup %4330 }
0x381c   :  { %v3060_v7 = vmul.f32 %v4331_v4, %v3058_v3  ;;  %vm3065_vm11 = vweird.f32 %v4331_v4 }
0x381d   :  { %vm3066_vm13 = vmor %vm3064_vm12, %vm3065_vm11 }
0x381e   :  { %v3061_v11 = vsub.f32 1.0, %v3060_v7 }
0x3820   :  { %v3062_v9 = vmul.f32 %v4331_v4, %v3061_v11 }
0x3822   :  { %v3063_v30 = vadd.f32 %v4331_v4, %v3062_v9 }
0x3824   :  { %v3067_v10 = vsel %vm3066_vm13, %v4331_v4, %v3063_v30 }
0x3825   :  { %v3072_v14 = vsel %vm3069_vm14, %v3071_v13, %v3067_v10 }
0x3826   :  { %v3075_v16 = vmul.f32 %v3072_v14, %v5165_v40  ;;  %v4070_v40 = vld [vmem:[%s5317_s8] sm:$0xff] }
0x3827   :  { %3122 = vmatpush.bf16.msra.mxu1 %v4070_v40 }
0x3883   :  { %v3078_v48 = vpop.permute.xlu0 %3077 }
0x3884   :  { %v3080_v17 = vmul.f32 %v3078_v48, %v3072_v14 }
0x3886   :  { %3082 = vrot.lane.b32.xlu0 %v3080_v17, %s4385_s3 }
0x38f8   :  { %v3083_v19 = vpop.permute.xlu0 %3082 }
0x38f9   :  { %v3085_v55 = vadd.f32 %v3083_v19, %v3075_v16 }
0x38fb   :  { %4332 = vtanh.f32 %v3085_v55 }
0x3901   :  { %v4333_v31 = vpop.eup %4332 }
0x3902   :  { %3088 = vrot.lane.b32.xlu1 %v4333_v31, %s4384_s22 }
0x3974   :  { %v3089_v34 = vpop.permute.xlu1 %3088 }
0x3975   :  { %v3091_v35 = vmul.f32 %v3089_v34, %v3072_v14 }
0x3977   :  { %v3092_v23 = vpack.c.bf16 %v3091_v35, %v3091_v35 }
0x3979   :  { %3098 = vrot.lane.b32.xlu1 %v3092_v23, %s4385_s3 }
0x39eb   :  { %v3099_v21 = vpop.permute.xlu1 %3098 }
0x39ec   :  { %3906 = vmatmul.msk.bf16.vlgmr.msra.gmra.mxu1 %vm91_vm4, %v3099_v21 }
0x3a69   :  { %v3124_v37 = vpop.f32.mrf.mxu1 }
0x3a6a   :  { %v3125_v6 = vadd.f32 %v4777_v25, %v3124_v37 }
0x3a6c   :  { %v3157_v18 = vadd.f32 %v3153_v20, %v3125_v6 }
0x3a6e   :  { %4334 = vtanh.f32 %v3157_v18  ;;  %v3916_v12 = vmul.f32 -1.442695, %v3157_v18 }
0x3a70   :  { %4336 = vpow2.f32 %v3916_v12 }
0x3a71   :  { %v3126_v41 = vpop.f32.mrf.mxu1 }
0x3a74   :  { %v4335_v42 = vpop.eup %4334 }
0x3a75   :  { %3180 = vrot.lane.b32.xlu2 %v4335_v42, %s4384_s22 }
0x3a76   :  { %v4337_v0 = vpop.eup %4336 }
0x3a77   :  { %v3161_v43 = vadd.f32 1.0, %v4337_v0 }
0x3a79   :  { %4338 = vrcp.f32 %v3161_v43  ;;  %v3173_v45 = vand.u32 2147483648, %v3161_v43  ;;  %vm3167_vm0 = vweird.f32 %v3161_v43  ;;  %v3171_v25 = vand.u32 2147483647, %v3161_v43 }
0x3a7b   :  { %v3174_v46 = vor.u32 1.1754944e-38, %v3173_v45  ;;  %vm3172_vm2 = vcmp.eq.f32.partialorder %v3171_v25, 8.507059e+37 }
0x3a7f   :  { %v4339_v27 = vpop.eup %4338 }
0x3a80   :  { %v3163_v1 = vmul.f32 %v4339_v27, %v3161_v43  ;;  %vm3168_vm15 = vweird.f32 %v4339_v27 }
0x3a81   :  { %vm3169_vm1 = vmor %vm3167_vm0, %vm3168_vm15 }
0x3a82   :  { %v3164_v15 = vsub.f32 1.0, %v3163_v1 }
0x3a84   :  { %v3165_v29 = vmul.f32 %v4339_v27, %v3164_v15 }
0x3a86   :  { %v3166_v44 = vadd.f32 %v4339_v27, %v3165_v29 }
0x3a88   :  { %v3170_v28 = vsel %vm3169_vm1, %v4339_v27, %v3166_v44 }
0x3a89   :  { %v3175_v47 = vsel %vm3172_vm2, %v3174_v46, %v3170_v28 }
0x3a8a   :  { %v3178_v26 = vmul.f32 %v3175_v47, %v5192_v38 }
0x3acf   :  { %v3181_v39 = vpop.permute.xlu2 %3180 }
0x3ad0   :  { %v3183_v49 = vmul.f32 %v3181_v39, %v3175_v47 }
0x3ad2   :  { %3185 = vrot.lane.b32.xlu2 %v3183_v49, %s4385_s3 }
0x3b2c   :  { %v3186_v50 = vpop.permute.xlu2 %3185 }
0x3b2d   :  { %v3188_v51 = vadd.f32 %v3186_v50, %v3178_v26 }
0x3b2f   :  { %4340 = vtanh.f32 %v3188_v51 }
0x3b35   :  { %v4341_v53 = vpop.eup %4340 }
0x3b36   :  { %3191 = vrot.lane.b32.xlu0 %v4341_v53, %s4384_s22 }
0x3ba8   :  { %v3192_v56 = vpop.permute.xlu0 %3191 }
0x3ba9   :  { %v3194_v57 = vmul.f32 %v3192_v56, %v3175_v47 }
0x3bab   :  { %v3195_v58 = vpack.c.bf16 %v3194_v57, %v3194_v57 }
0x3bad   :  { %3201 = vrot.lane.b32.xlu1 %v3195_v58, %s4385_s3 }
0x3c1f   :  { %v3202_v38 = vpop.permute.xlu1 %3201 }
0x3c20   :  { %3925 = vmatmul.msk.bf16.vlgmr.msra.gmra.mxu3 %vm91_vm4, %v3202_v38 }
0x3ca3   :  { %v3227_v59 = vpop.f32.mrf.mxu3 }
0x3ca4   :  { %v3228_v60 = vadd.f32 %v4800_v52, %v3227_v59 }
0x3ca6   :  { %3232 = vst [vmem:[#allocation6 + $0xe] sm:$0x3] %v3228_v60 }
0x3ca7   :  { %3237 = sbr.rel (%p3927_p12) target bundleno = 15534 (0x3cae), region = 113 }
0x3cab   :  { %v3229_v61 = vpop.f32.mrf.mxu3 }
0x3cac   :  { %v3928_v8 = vld [vmem:[%s5310_s1 + $0xe] sm:$0x3] }
0x3cad   :  { %3240 = vst [vmem:[#allocation2] sm:$0x3] %v3928_v8 }
0x3cae PF:  { %s3929_s12 = sld [smem:[#allocation3 + $0x7]] }
0x3cb4   :  { %p3930_p13 = scmp.ne.s32.totalorder %s3929_s12, 0 }
0x3cb6   :  { %3245 = sbr.rel (%p3930_p13) target bundleno = 15801 (0x3db9), region = 117 }
0x3cbb   :  { %vm3246_vm3 = vcmask 1041408   ;;  %v4083_v62 = vld [vmem:[%s5320_s11 + $0x38] sm:$0xff]  ;;  %v4082_v52 = vld [vmem:[%s5320_s11 + $0x30] sm:$0xff]  ;;  %v4081_v3 = vld [vmem:[%s5320_s11 + $0x28] sm:$0xff]  ;;  %v4393_v5 = vmov 1.0|1.0  }
0x3cbc   :  { %v3247_v63 = vsel %vm3246_vm3, %v3228_v60, -inf  ;;  %3318 = vmatpush.bf16.msra.mxu0 %v4083_v62  ;;  %v4080_v4 = vld [vmem:[%s5320_s11 + $0x20] sm:$0xff]  ;;  %v4079_v7 = vld [vmem:[%s5320_s11 + $0x18] sm:$0xff]  ;;  %v4078_v11 = vld [vmem:[%s5320_s11 + $0x10] sm:$0xff] }
0x3cbd   :  { %3248 = vmax.xlane.f32.xlu0 %v3247_v63  ;;  %v4077_v9 = vld [vmem:[%s5320_s11 + $0x8] sm:$0xff]  ;;  %v4076_v30 = vld [vmem:[%s5320_s11] sm:$0xff] }
0x3cc0   :  { %3319 = vmatpush.bf16.msra.mxu0 %v4082_v52 }
0x3cc4   :  { %3320 = vmatpush.bf16.msra.mxu0 %v4081_v3 }
0x3cc8   :  { %3321 = vmatpush.bf16.msra.mxu0 %v4080_v4 }
0x3ccc   :  { %3322 = vmatpush.bf16.msra.mxu0 %v4079_v7 }
0x3cd0   :  { %3323 = vmatpush.bf16.msra.mxu0 %v4078_v11 }
0x3cd4   :  { %3324 = vmatpush.bf16.msra.mxu0 %v4077_v9 }
0x3cd8   :  { %3325 = vmatpush.bf16.msra.mxu0 %v4076_v30 }
0x3d30   :  { %v3249_v2 = vpop.xlane.xlu0 %3248 }
0x3d31   :  { %vm3250_vm4 = vcmp.eq.f32.partialorder %v3228_v60, %v3249_v2 }
0x3d32   :  { %vm3964_vm5 = vmpackc.low %vm3250_vm4, %vm3250_vm4 }
0x3d33   :  { %3965 = vmatmul.msk.bf16.vlgmr.msra.gmra.mxu0 %vm3964_vm5, %v4393_v5 }
0x3db0   :  { %v3327_v10 = vpop.f32.mrf.mxu0 }
0x3db1   :  { %3331 = vst [vmem:[#allocation2] sm:$0x3] %v3327_v10 }
0x3db8   :  { %v3329_v13 = vpop.f32.mrf.mxu0 }
0x3db9 PF:  { %s3338_s21 = sshll.u32 %s5323_s14, 4  ;;  %s4394_s23 = smov [#allocation6]   ;;  %s3339_s21 = int_to_ptr.hbm [resolvable:$true] %s3338_s21 }
0x3dba   :  { %s3336_s8 = sshll.u32 %s4394_s23, 4  ;;  %s4395_s9 = smov 2   ;;  %s3337_s8 = int_to_ptr.vmem [resolvable:$true] %s3336_s8 }
0x3dbb   :  { %3344 = dma.vmem_to_hbm [thread:$0]  %s3337_s8, 256, %s3339_s21, [#allocation4], %s4385_s3, %s4385_s3, %s4395_s9  }
0x3dbc   :  { %4380 = dma.done.wait [#allocation4], 256  }
0x3dbd   :  { %4381 = vsyncadd [#allocation4], 4294967040 }
0x3dbe   :  { %3349 = vsyncpa [#allocation4], 1 }
0x3dbf   :  { %3350 = vsyncpa [#allocation5], 1 }

</bundles_post_ra>
